<compile_context>
chip_gen: v5e
topology: v5e:2x2
jax: 0.10.0
libtpu: 0.0.40
codegen_flags: <defaults>
</compile_context>

<pallas_src>
import functools

import jax
import jax.numpy as jnp
from jax import lax
from jax.experimental import pallas as pl
from jax.experimental.pallas import tpu as pltpu


def _round_up(x, m):
    return (x + m - 1) // m * m


def _aspp_kernel(x_ref, w_ref, scale_ref, bias_ref, o_ref, xpad_ref, col_ref,
                 *, KH, KW, dilation, padding, H, W, H_out, W_out):
    # x_ref:     (1, H, W, Cin)            bf16  unpadded input tile (one batch item)
    # w_ref:     (KH*KW*Cin, Cout_p)       bf16  reshaped + Cout-padded weight
    # scale_ref: (1, Cout_p)               f32   gamma / sqrt(var + eps), zero-padded
    # bias_ref:  (1, Cout_p)               f32   beta - mean * scale,     zero-padded
    # o_ref:     (1, H_out*W_out, Cout_p)  f32   lane-dense output tile
    # xpad_ref:  (H_pad, W_pad, Cin)       bf16  VMEM scratch: zero-padded input
    # col_ref:   (H_out, W_out, KH*KW*Cin) bf16  VMEM scratch: im2col taps
    Cin = x_ref.shape[-1]
    M = H_out * W_out
    K = KH * KW * Cin

    # In-kernel zero padding (avoids materializing a padded activation in HBM).
    xpad_ref[...] = jnp.zeros_like(xpad_ref)
    xpad_ref[padding:padding + H, padding:padding + W, :] = x_ref[0]

    # im2col: gather the KH*KW dilated taps once (static offsets, unrolled).
    for kh in range(KH):
        for kw in range(KW):
            h0 = kh * dilation
            w0 = kw * dilation
            c0 = (kh * KW + kw) * Cin
            col_ref[:, :, c0:c0 + Cin] = xpad_ref[h0:h0 + H_out,
                                                  w0:w0 + W_out, :]

    # One lane-dense MXU contraction: (M, K) x (K, Cout_p) with f32 accumulation.
    cols = col_ref[...].reshape(M, K)
    acc = jnp.dot(cols, w_ref[...], preferred_element_type=jnp.float32)

    # Fused inference BatchNorm + ReLU epilogue (kept in f32).
    y = acc * scale_ref[...] + bias_ref[...]
    o_ref[0] = jnp.maximum(y, 0.0).astype(o_ref.dtype)


@functools.partial(jax.jit, static_argnames=("padding", "dilation", "eps"))
def aspp_module_pallas(x_nchw, weight_oihw, gamma, beta, running_mean,
                       running_var, *, padding, dilation, eps=1e-5):
    """Forward of _ASPPModule. x_nchw: (N, Cin, H, W) float32, returns NCHW."""
    N, Cin, H, W = x_nchw.shape
    Cout, _, KH, KW = weight_oihw.shape

    H_out = H + 2 * padding - dilation * (KH - 1)
    W_out = W + 2 * padding - dilation * (KW - 1)
    H_pad, W_pad = H + 2 * padding, W + 2 * padding
    M = H_out * W_out
    K = KH * KW * Cin
    Cout_p = _round_up(Cout, 128)   # lane-dense output / MXU N dimension

    # --- layout & dtype glue (fused by jit around the pallas_call) ---
    x_nhwc = jnp.transpose(x_nchw, (0, 2, 3, 1)).astype(jnp.bfloat16)

    # OIHW -> HWIO -> (KH*KW*Cin, Cout), zero-pad Cout, bf16 for the MXU.
    w2d = jnp.transpose(weight_oihw, (2, 3, 1, 0)).reshape(K, Cout)
    w2d = jnp.pad(w2d, ((0, 0), (0, Cout_p - Cout))).astype(jnp.bfloat16)

    # Fold BatchNorm (inference) into a per-channel scale/shift, zero-padded.
    scale = (gamma / jnp.sqrt(running_var + eps)).astype(jnp.float32)
    shift = (beta - running_mean * scale).astype(jnp.float32)
    scale_p = jnp.pad(scale, (0, Cout_p - Cout)).reshape(1, Cout_p)
    shift_p = jnp.pad(shift, (0, Cout_p - Cout)).reshape(1, Cout_p)

    kernel = functools.partial(
        _aspp_kernel, KH=KH, KW=KW, dilation=dilation, padding=padding,
        H=H, W=W, H_out=H_out, W_out=W_out)

    # TODO(synk): production ASPP sizes (Cin 256..2048, H=W 33..65) additionally
    # need spatial row tiling with halo DMA (pl.ANY input + pltpu.make_async_copy)
    # and a Cin-chunked reduction axis to stay within v7x's 32 MiB scoped VMEM;
    # at these toy shapes a per-batch-item block fits comfortably.
    out = pl.pallas_call(
        kernel,
        out_shape=jax.ShapeDtypeStruct((N, M, Cout_p), jnp.float32),
        grid_spec=pltpu.PrefetchScalarGridSpec(
            num_scalar_prefetch=0,
            grid=(N,),
            in_specs=[
                pl.BlockSpec((1, H, W, Cin), lambda n: (n, 0, 0, 0)),
                pl.BlockSpec((K, Cout_p), lambda n: (0, 0)),     # weight stays resident
                pl.BlockSpec((1, Cout_p), lambda n: (0, 0)),
                pl.BlockSpec((1, Cout_p), lambda n: (0, 0)),
            ],
            out_specs=pl.BlockSpec((1, M, Cout_p), lambda n: (n, 0, 0)),
            scratch_shapes=[
                pltpu.VMEM((H_pad, W_pad, Cin), jnp.bfloat16),
                pltpu.VMEM((H_out, W_out, K), jnp.bfloat16),
            ],
        ),
        compiler_params=pltpu.CompilerParams(
            dimension_semantics=("parallel",)),
    )(x_nhwc, w2d, scale_p, shift_p)

    # Undo lane padding + layout glue (HBM reshape is free; slice/transpose fuse).
    out = out.reshape(N, H_out, W_out, Cout_p)[..., :Cout]
    return jnp.transpose(out, (0, 3, 1, 2))                      # NHWC -> NCHW


def _reference(x_nchw, weight_oihw, gamma, beta, running_mean, running_var,
               *, padding, dilation, eps=1e-5):
    x_nhwc = jnp.transpose(x_nchw, (0, 2, 3, 1))
    w_hwio = jnp.transpose(weight_oihw, (2, 3, 1, 0))
    y = lax.conv_general_dilated(
        x_nhwc, w_hwio, window_strides=(1, 1),
        padding=[(padding, padding), (padding, padding)],
        rhs_dilation=(dilation, dilation),
        dimension_numbers=("NHWC", "HWIO", "NHWC"),
        preferred_element_type=jnp.float32)
    scale = gamma / jnp.sqrt(running_var + eps)
    shift = beta - running_mean * scale
    y = y * scale + shift
    y = jnp.maximum(y, 0.0)
    return jnp.transpose(y, (0, 3, 1, 2))


if __name__ == "__main__":
    # Module hyper-parameters (a typical ASPP 3x3 dilated branch, toy sizes).
    inplanes, planes = 4, 8
    kernel_size, dilation = 3, 2
    padding = dilation
    N, H, W = 2, 16, 16

    key = jax.random.PRNGKey(0)
    kx, kw = jax.random.split(key)

    x = jax.random.normal(kx, (N, inplanes, H, W), dtype=jnp.float32)

    # Conv2d weight: kaiming_normal_ (fan_in mode) -> std = sqrt(2 / (Cin*KH*KW))
    fan_in = inplanes * kernel_size * kernel_size
    w = jax.random.normal(kw, (planes, inplanes, kernel_size, kernel_size),
                          dtype=jnp.float32) * jnp.sqrt(2.0 / fan_in)

    # The kernel feeds the MXU in bf16 (intentional precision choice); quantize
    # the test operands so the f32 reference sees the same effective inputs.
    x = x.astype(jnp.bfloat16).astype(jnp.float32)
    w = w.astype(jnp.bfloat16).astype(jnp.float32)

    # BatchNorm2d params per _init_weight: weight=1, bias=0; default running stats.
    gamma = jnp.ones((planes,), jnp.float32)
    beta = jnp.zeros((planes,), jnp.float32)
    running_mean = jnp.zeros((planes,), jnp.float32)
    running_var = jnp.ones((planes,), jnp.float32)
    # TODO(synk): BatchNorm is applied in inference mode (running stats); PyTorch
    # training-mode batch statistics are not reproduced here.

    out = aspp_module_pallas(x, w, gamma, beta, running_mean, running_var,
                             padding=padding, dilation=dilation)
    out = jax.block_until_ready(out)

    ref = _reference(x, w, gamma, beta, running_mean, running_var,
                     padding=padding, dilation=dilation)
    assert out.shape == (N, planes, H, W)
    assert jnp.allclose(out, ref, atol=2e-2, rtol=2e-2), \
        float(jnp.max(jnp.abs(out - ref)))

    print("KERNEL_OK")
</pallas_src>

<mosaic_0001>
module attributes {stable_mosaic.version = 11 : i64} {
  func.func @_aspp_kernel(%arg0: i32, %arg1: memref<1x16x16x4xbf16, #tpu.memory_space<vmem>>, %arg2: memref<36x128xbf16, #tpu.memory_space<vmem>>, %arg3: memref<1x128xf32, #tpu.memory_space<vmem>>, %arg4: memref<1x128xf32, #tpu.memory_space<vmem>>, %arg5: memref<1x256x128xf32, #tpu.memory_space<vmem>>, %arg6: memref<20x20x4xbf16, #tpu.memory_space<vmem>>, %arg7: memref<16x16x36xbf16, #tpu.memory_space<vmem>>) attributes {dimension_semantics = [#tpu.dimension_semantics<parallel>], iteration_bounds = array<i64: 2>, scalar_prefetch = 0 : i64, scratch_operands = 2 : i64, tpu.core_type = #tpu.core_type<tc>, window_params = [{transform_indices = @transform_0, window_bounds = array<i64: 1, 16, 16, 4>}, {pipeline_mode = #tpu.pipeline_mode<synchronous>, transform_indices = @transform_1, window_bounds = array<i64: 36, 128>}, {pipeline_mode = #tpu.pipeline_mode<synchronous>, transform_indices = @transform_2, window_bounds = array<i64: 1, 128>}, {pipeline_mode = #tpu.pipeline_mode<synchronous>, transform_indices = @transform_3, window_bounds = array<i64: 1, 128>}, {transform_indices = @transform_4, window_bounds = array<i64: 1, 256, 128>}]} {
    %cst = arith.constant 0.000000e+00 : bf16
    %0 = vector.broadcast %cst : bf16 to vector<20x20x4xbf16>
    %c0 = arith.constant 0 : index
    %c0_0 = arith.constant 0 : index
    %c0_1 = arith.constant 0 : index
    %1 = vector.load %arg6[%c0, %c0_0, %c0_1] : memref<20x20x4xbf16, #tpu.memory_space<vmem>>, vector<20x20x4xbf16>
    tpu.vector_store %arg6[%c0, %c0_0, %c0_1], %0 {strides = array<i32>} : memref<20x20x4xbf16, #tpu.memory_space<vmem>>, vector<20x20x4xbf16>,
    %c0_2 = arith.constant 0 : index
    %c0_3 = arith.constant 0 : index
    %c0_4 = arith.constant 0 : index
    %c0_5 = arith.constant 0 : index
    %2 = vector.load %arg1[%c0_2, %c0_3, %c0_4, %c0_5] : memref<1x16x16x4xbf16, #tpu.memory_space<vmem>>, vector<1x16x16x4xbf16>
    %3 = vector.shape_cast %2 : vector<1x16x16x4xbf16> to vector<16x16x4xbf16>
    %c2 = arith.constant 2 : index
    %c2_6 = arith.constant 2 : index
    %c0_7 = arith.constant 0 : index
    %4 = vector.load %arg6[%c2, %c2_6, %c0_7] : memref<20x20x4xbf16, #tpu.memory_space<vmem>>, vector<16x16x4xbf16>
    tpu.vector_store %arg6[%c2, %c2_6, %c0_7], %3 {strides = array<i32>} : memref<20x20x4xbf16, #tpu.memory_space<vmem>>, vector<16x16x4xbf16>,
    %c0_8 = arith.constant 0 : index
    %c0_9 = arith.constant 0 : index
    %c0_10 = arith.constant 0 : index
    %5 = vector.load %arg6[%c0_8, %c0_9, %c0_10] : memref<20x20x4xbf16, #tpu.memory_space<vmem>>, vector<16x16x4xbf16>
    %c0_11 = arith.constant 0 : index
    %c0_12 = arith.constant 0 : index
    %c0_13 = arith.constant 0 : index
    %6 = vector.load %arg7[%c0_11, %c0_12, %c0_13] : memref<16x16x36xbf16, #tpu.memory_space<vmem>>, vector<16x16x4xbf16>
    tpu.vector_store %arg7[%c0_11, %c0_12, %c0_13], %5 {strides = array<i32>} : memref<16x16x36xbf16, #tpu.memory_space<vmem>>, vector<16x16x4xbf16>,
    %c0_14 = arith.constant 0 : index
    %c2_15 = arith.constant 2 : index
    %c0_16 = arith.constant 0 : index
    %7 = vector.load %arg6[%c0_14, %c2_15, %c0_16] : memref<20x20x4xbf16, #tpu.memory_space<vmem>>, vector<16x16x4xbf16>
    %c0_17 = arith.constant 0 : index
    %c0_18 = arith.constant 0 : index
    %c4 = arith.constant 4 : index
    %8 = vector.load %arg7[%c0_17, %c0_18, %c4] : memref<16x16x36xbf16, #tpu.memory_space<vmem>>, vector<16x16x4xbf16>
    tpu.vector_store %arg7[%c0_17, %c0_18, %c4], %7 {strides = array<i32>} : memref<16x16x36xbf16, #tpu.memory_space<vmem>>, vector<16x16x4xbf16>,
    %c0_19 = arith.constant 0 : index
    %c4_20 = arith.constant 4 : index
    %c0_21 = arith.constant 0 : index
    %9 = vector.load %arg6[%c0_19, %c4_20, %c0_21] : memref<20x20x4xbf16, #tpu.memory_space<vmem>>, vector<16x16x4xbf16>
    %c0_22 = arith.constant 0 : index
    %c0_23 = arith.constant 0 : index
    %c8 = arith.constant 8 : index
    %10 = vector.load %arg7[%c0_22, %c0_23, %c8] : memref<16x16x36xbf16, #tpu.memory_space<vmem>>, vector<16x16x4xbf16>
    tpu.vector_store %arg7[%c0_22, %c0_23, %c8], %9 {strides = array<i32>} : memref<16x16x36xbf16, #tpu.memory_space<vmem>>, vector<16x16x4xbf16>,
    %c2_24 = arith.constant 2 : index
    %c0_25 = arith.constant 0 : index
    %c0_26 = arith.constant 0 : index
    %11 = vector.load %arg6[%c2_24, %c0_25, %c0_26] : memref<20x20x4xbf16, #tpu.memory_space<vmem>>, vector<16x16x4xbf16>
    %c0_27 = arith.constant 0 : index
    %c0_28 = arith.constant 0 : index
    %c12 = arith.constant 12 : index
    %12 = vector.load %arg7[%c0_27, %c0_28, %c12] : memref<16x16x36xbf16, #tpu.memory_space<vmem>>, vector<16x16x4xbf16>
    tpu.vector_store %arg7[%c0_27, %c0_28, %c12], %11 {strides = array<i32>} : memref<16x16x36xbf16, #tpu.memory_space<vmem>>, vector<16x16x4xbf16>,
    %c2_29 = arith.constant 2 : index
    %c2_30 = arith.constant 2 : index
    %c0_31 = arith.constant 0 : index
    %13 = vector.load %arg6[%c2_29, %c2_30, %c0_31] : memref<20x20x4xbf16, #tpu.memory_space<vmem>>, vector<16x16x4xbf16>
    %c0_32 = arith.constant 0 : index
    %c0_33 = arith.constant 0 : index
    %c16 = arith.constant 16 : index
    %14 = vector.load %arg7[%c0_32, %c0_33, %c16] : memref<16x16x36xbf16, #tpu.memory_space<vmem>>, vector<16x16x4xbf16>
    tpu.vector_store %arg7[%c0_32, %c0_33, %c16], %13 {strides = array<i32>} : memref<16x16x36xbf16, #tpu.memory_space<vmem>>, vector<16x16x4xbf16>,
    %c2_34 = arith.constant 2 : index
    %c4_35 = arith.constant 4 : index
    %c0_36 = arith.constant 0 : index
    %15 = vector.load %arg6[%c2_34, %c4_35, %c0_36] : memref<20x20x4xbf16, #tpu.memory_space<vmem>>, vector<16x16x4xbf16>
    %c0_37 = arith.constant 0 : index
    %c0_38 = arith.constant 0 : index
    %c20 = arith.constant 20 : index
    %16 = vector.load %arg7[%c0_37, %c0_38, %c20] : memref<16x16x36xbf16, #tpu.memory_space<vmem>>, vector<16x16x4xbf16>
    tpu.vector_store %arg7[%c0_37, %c0_38, %c20], %15 {strides = array<i32>} : memref<16x16x36xbf16, #tpu.memory_space<vmem>>, vector<16x16x4xbf16>,
    %c4_39 = arith.constant 4 : index
    %c0_40 = arith.constant 0 : index
    %c0_41 = arith.constant 0 : index
    %17 = vector.load %arg6[%c4_39, %c0_40, %c0_41] : memref<20x20x4xbf16, #tpu.memory_space<vmem>>, vector<16x16x4xbf16>
    %c0_42 = arith.constant 0 : index
    %c0_43 = arith.constant 0 : index
    %c24 = arith.constant 24 : index
    %18 = vector.load %arg7[%c0_42, %c0_43, %c24] : memref<16x16x36xbf16, #tpu.memory_space<vmem>>, vector<16x16x4xbf16>
    tpu.vector_store %arg7[%c0_42, %c0_43, %c24], %17 {strides = array<i32>} : memref<16x16x36xbf16, #tpu.memory_space<vmem>>, vector<16x16x4xbf16>,
    %c4_44 = arith.constant 4 : index
    %c2_45 = arith.constant 2 : index
    %c0_46 = arith.constant 0 : index
    %19 = vector.load %arg6[%c4_44, %c2_45, %c0_46] : memref<20x20x4xbf16, #tpu.memory_space<vmem>>, vector<16x16x4xbf16>
    %c0_47 = arith.constant 0 : index
    %c0_48 = arith.constant 0 : index
    %c28 = arith.constant 28 : index
    %20 = vector.load %arg7[%c0_47, %c0_48, %c28] : memref<16x16x36xbf16, #tpu.memory_space<vmem>>, vector<16x16x4xbf16>
    tpu.vector_store %arg7[%c0_47, %c0_48, %c28], %19 {strides = array<i32>} : memref<16x16x36xbf16, #tpu.memory_space<vmem>>, vector<16x16x4xbf16>,
    %c4_49 = arith.constant 4 : index
    %c4_50 = arith.constant 4 : index
    %c0_51 = arith.constant 0 : index
    %21 = vector.load %arg6[%c4_49, %c4_50, %c0_51] : memref<20x20x4xbf16, #tpu.memory_space<vmem>>, vector<16x16x4xbf16>
    %c0_52 = arith.constant 0 : index
    %c0_53 = arith.constant 0 : index
    %c32 = arith.constant 32 : index
    %22 = vector.load %arg7[%c0_52, %c0_53, %c32] : memref<16x16x36xbf16, #tpu.memory_space<vmem>>, vector<16x16x4xbf16>
    tpu.vector_store %arg7[%c0_52, %c0_53, %c32], %21 {strides = array<i32>} : memref<16x16x36xbf16, #tpu.memory_space<vmem>>, vector<16x16x4xbf16>,
    %c0_54 = arith.constant 0 : index
    %c0_55 = arith.constant 0 : index
    %c0_56 = arith.constant 0 : index
    %23 = vector.load %arg7[%c0_54, %c0_55, %c0_56] : memref<16x16x36xbf16, #tpu.memory_space<vmem>>, vector<16x16x36xbf16>
    %24 = vector.shape_cast %23 : vector<16x16x36xbf16> to vector<256x36xbf16>
    %c0_57 = arith.constant 0 : index
    %c0_58 = arith.constant 0 : index
    %25 = vector.load %arg2[%c0_57, %c0_58] : memref<36x128xbf16, #tpu.memory_space<vmem>>, vector<36x128xbf16>
    %cst_59 = arith.constant dense<0.000000e+00> : vector<256x128xf32>
    %26 = tpu.matmul %24, %25, %cst_59 {dimension_numbers = #tpu.dot_dimension_numbers<[1], [0], [0], [1], [0, 0, 1, 1], [], []>} : vector<256x36xbf16>, vector<36x128xbf16>, vector<256x128xf32> -> vector<256x128xf32>
    %c0_60 = arith.constant 0 : index
    %c0_61 = arith.constant 0 : index
    %27 = vector.load %arg3[%c0_60, %c0_61] : memref<1x128xf32, #tpu.memory_space<vmem>>, vector<1x128xf32>
    %28 = vector.broadcast %27 : vector<1x128xf32> to vector<256x128xf32>
    %29 = arith.mulf %26, %28 : vector<256x128xf32>
    %c0_62 = arith.constant 0 : index
    %c0_63 = arith.constant 0 : index
    %30 = vector.load %arg4[%c0_62, %c0_63] : memref<1x128xf32, #tpu.memory_space<vmem>>, vector<1x128xf32>
    %31 = vector.broadcast %30 : vector<1x128xf32> to vector<256x128xf32>
    %32 = arith.addf %29, %31 : vector<256x128xf32>
    %cst_64 = arith.constant 0.000000e+00 : f32
    %33 = vector.broadcast %cst_64 : f32 to vector<256x128xf32>
    %34 = arith.maximumf %32, %33 : vector<256x128xf32>
    %c0_65 = arith.constant 0 : index
    %c0_66 = arith.constant 0 : index
    %c0_67 = arith.constant 0 : index
    %35 = vector.load %arg5[%c0_65, %c0_66, %c0_67] : memref<1x256x128xf32, #tpu.memory_space<vmem>>, vector<1x256x128xf32>
    %36 = vector.shape_cast %35 : vector<1x256x128xf32> to vector<256x128xf32>
    %37 = vector.shape_cast %34 : vector<256x128xf32> to vector<1x256x128xf32>
    tpu.vector_store %arg5[%c0_65, %c0_66, %c0_67], %37 {strides = array<i32>} : memref<1x256x128xf32, #tpu.memory_space<vmem>>, vector<1x256x128xf32>,
    return
  }
  func.func @transform_0(%arg0: i32) -> (i32, i32, i32, i32) {
    %c0_i32 = arith.constant 0 : i32
    %c0_i32_0 = arith.constant 0 : i32
    %c0_i32_1 = arith.constant 0 : i32
    %c0_i32_2 = arith.constant 0 : i32
    return %arg0, %c0_i32, %c0_i32_0, %c0_i32_1 : i32, i32, i32, i32
  }
  func.func @transform_1(%arg0: i32) -> (i32, i32) {
    %c0_i32 = arith.constant 0 : i32
    %c0_i32_0 = arith.constant 0 : i32
    %c0_i32_1 = arith.constant 0 : i32
    return %c0_i32, %c0_i32_0 : i32, i32
  }
  func.func @transform_2(%arg0: i32) -> (i32, i32) {
    %c0_i32 = arith.constant 0 : i32
    %c0_i32_0 = arith.constant 0 : i32
    %c0_i32_1 = arith.constant 0 : i32
    return %c0_i32, %c0_i32_0 : i32, i32
  }
  func.func @transform_3(%arg0: i32) -> (i32, i32) {
    %c0_i32 = arith.constant 0 : i32
    %c0_i32_0 = arith.constant 0 : i32
    %c0_i32_1 = arith.constant 0 : i32
    return %c0_i32, %c0_i32_0 : i32, i32
  }
  func.func @transform_4(%arg0: i32) -> (i32, i32, i32) {
    %c0_i32 = arith.constant 0 : i32
    %c0_i32_0 = arith.constant 0 : i32
    %c0_i32_1 = arith.constant 0 : i32
    return %arg0, %c0_i32, %c0_i32_0 : i32, i32, i32
  }
}

</mosaic_0001>

<bundles_post_ra>
// kernel: aspp_module_pallas.1
= control target key start
LH: loop header
LB: loop body
LE: loop exit
PB: predicated region body
PF: predicated region fallthrough
CT: control target
= control target key end

     0   :  { %s3736_s15 = smov 0   ;;  %s5466_s0 = inlined_call_operand.vmem [shape: bf16[2,16,16,4], index: 0, kind: input, shape index: {}]   ;;  %s5467_s1 = inlined_call_operand.vmem [shape: bf16[36,128], index: 1, kind: input, shape index: {}]   ;;  %s5468_s2 = inlined_call_operand.vmem [shape: f32[1,128], index: 2, kind: input, shape index: {}]   ;;  %s5469_s3 = inlined_call_operand.vmem [shape: f32[1,128], index: 3, kind: input, shape index: {}]   ;;  %s5470_s4 = inlined_call_operand.vmem [shape: f32[2,256,128], index: 4, kind: output, shape index: {}]  }
   0x1 LB: > { %s3451_s16 = sadd.s32 4294967295, %s3700_s15   ;;  %p3455_p0 = scmp.ge.s32.totalorder %s3700_s15, 1  ;;  %s3700_s15 = sphi %s3736_s15, %s14_s15  }
   0x2   : > { %p162_p1 = scmp.lt.s32.totalorder %s3700_s15, 3 }
   0x4   : > { %p163_p2 = pnand %p3455_p0, %p162_p1 }
   0x5   : > { %s3703_s17 = smov (!%p163_p2), 4   ;;  %p188_p3 = scmp.lt.s32.totalorder (!%p163_p2), %s3451_s16, 1 }
   0x6   : > { %166 = sbr.rel (%p163_p2) target bundleno = 1014 (0x3f6), region = 36  ;;  %s3704_s22 = smov (!%p163_p2), 8  }
   0x7   : > { %s3705_s23 = smov (!%p163_p2), 12   ;;  %s3706_s24 = smov (!%p163_p2), 16  }
   0x8   : > { %s3707_s25 = smov (!%p163_p2), 20   ;;  %s3708_s26 = smov (!%p163_p2), 24  }
   0x9   : > { %s3709_s27 = smov (!%p163_p2), 28   ;;  %s3710_s28 = smov (!%p163_p2), 32  }
   0xb   : > { %vm199_vm0 = vcmask 27648   ;;  %v3702_v0 = vmov 0   ;;  %vm667_vm1 = vcmask 1042432   ;;  %vm668_vm2 = vcmask 1046532   ;;  %s5478_s16 = smov (!%p188_p3, %s3451_s16), 1 }
   0xc   : > { %204 = vst.msk [vmem:[#allocation2 + $0xc] sm:$0xf] %vm199_vm0, %v3702_v0  ;;  %vm3760_vm3 = vmor %vm667_vm1, %vm668_vm2  ;;  %vm202_vm4 = vcmask 25600   ;;  %s3646_s18 = sshll.u32 %s5478_s16, 7  ;;  %vm325_vm5 = vcmask 1040384   ;;  %vm326_vm6 = vcmask 1044484  }
   0xd   : > { %205 = vst.msk [vmem:[#allocation2 + $0x10] sm:$0xf] %vm199_vm0, %v3702_v0  ;;  %s3852_s21 = scalar_lea.vmem %s5466_s0, %s3646_s18  ;;  %vm3899_vm7 = vmor %vm325_vm5, %vm326_vm6  ;;  %vm457_vm8 = vcmask 27649   ;;  %vm460_vm9 = vcmask 24576   ;;  %vm1007_vm10 = vcmask 1041408   ;;  %vm1008_vm11 = vcmask 1045508  }
   0xe   : > { %200 = vst.msk [vmem:[#allocation2] sm:$0xf] %vm199_vm0, %v3702_v0  ;;  %v267_v14 = vld [vmem:[%s3852_s21 + $0x18] sm:$0xf]  ;;  %v263_v16 = vld [vmem:[%s3852_s21 + $0x8] sm:$0xf]  ;;  %vm4169_vm12 = vmor %vm1007_vm10, %vm1008_vm11 }
   0xf   : > { %201 = vst.msk [vmem:[#allocation2 + $0x4] sm:$0xf] %vm199_vm0, %v3702_v0  ;;  %v3869_v20 = vld [vmem:[%s3852_s21 + $0x10] sm:$0xf]  ;;  %v3876_v22 = vld [vmem:[%s3852_s21 + $0x1c] sm:$0xf] }
  0x10   : > { %207 = vst.msk [vmem:[#allocation2 + $0x18] sm:$0xf] %vm199_vm0, %v3702_v0  ;;  %v343_v23 = vrot.slane %v267_v14, 7  ;;  %v264_v25 = vld [vmem:[%s3852_s21 + $0xc] sm:$0xf]  ;;  %v333_v26 = vrot.slane %v263_v16, 7 }
  0x11   : > { %208 = vst.msk [vmem:[#allocation2 + $0x1c] sm:$0xf] %vm199_vm0, %v3702_v0  ;;  %v338_v27 = vrot.slane %v3869_v20, 7  ;;  %v3889_v28 = vld [vmem:[%s3852_s21] sm:$0xf]  ;;  %v345_v31 = vrot.slane %v3876_v22, 7 }
  0x12   : > { %210 = vst.msk [vmem:[#allocation2 + $0x24] sm:$0xf] %vm199_vm0, %v3702_v0  ;;  %v266_v29 = vld [vmem:[%s3852_s21 + $0x14] sm:$0xf]  ;;  %v344_v30 = vrot.slane %v343_v23, 4  ;;  %v334_v33 = vrot.slane %v333_v26, 4 }
  0x13   : > { %v574_v1 = vld [vmem:[#allocation2 + $0xc] sm:$0xe]  ;;  %211 = vst.msk [vmem:[#allocation2 + $0x28] sm:$0xf] %vm199_vm0, %v3702_v0  ;;  %v335_v34 = vrot.slane %v264_v25, 7  ;;  %v328_v35 = vrot.slane %v3889_v28, 7 }
  0x14   : > { %v575_v2 = vld [vmem:[#allocation2 + $0x10] sm:$0xf]  ;;  %v3461_v4 = vrot.slane %v574_v1, 9  ;;  %213 = vst.msk [vmem:[#allocation2 + $0x30] sm:$0xf] %vm199_vm0, %v3702_v0  ;;  %v339_v36 = vrot.slane %v338_v27, 4  ;;  %v346_v41 = vsel %vm3899_vm7, %v344_v30, %v345_v31 }
  0x15   : > { %v679_v5 = vrot.slane %v575_v2, 5  ;;  %214 = vst.msk [vmem:[#allocation2 + $0x34] sm:$0xf] %vm199_vm0, %v3702_v0  ;;  %v571_v6 = vld [vmem:[#allocation2] sm:$0xe]  ;;  %v340_v37 = vrot.slane %v266_v29, 7  ;;  %v336_v44 = vsel %vm3899_vm7, %v334_v33, %v335_v34 }
  0x16   : > { %216 = vst.msk [vmem:[#allocation2 + $0x3c] sm:$0xf] %vm199_vm0, %v3702_v0  ;;  %v572_v7 = vld [vmem:[#allocation2 + $0x4] sm:$0xf]  ;;  %v3460_v8 = vrot.slane %v571_v6, 9  ;;  %v329_v45 = vrot.slane %v328_v35, 4 }
  0x17   : > { %v680_v9 = vsel %vm3760_vm3, %v3461_v4, %v679_v5  ;;  %217 = vst.msk [vmem:[#allocation2 + $0x40] sm:$0xf] %vm199_vm0, %v3702_v0  ;;  %v672_v10 = vrot.slane %v572_v7, 5  ;;  %v681_v12 = vrot.slane %v679_v5, 4  ;;  %v3907_v38 = vld [vmem:[%s3852_s21 + $0x20] sm:$0xf]  ;;  %v341_v54 = vsel %vm3899_vm7, %v339_v36, %v340_v37 }
  0x18   : > { %786 = vrot.lane.b32.xlu1 %v680_v9, %s3703_s17  ;;  %219 = vst.msk [vmem:[#allocation2 + $0x48] sm:$0xf] %vm199_vm0, %v3702_v0  ;;  %v262_v39 = vld [vmem:[%s3852_s21 + $0x4] sm:$0xf]  ;;  %v3920_v42 = vld [vmem:[%s3852_s21 + $0x30] sm:$0xf] }
  0x19   : > { %220 = vst.msk [vmem:[#allocation2 + $0x4c] sm:$0xf] %vm199_vm0, %v3702_v0  ;;  %v673_v11 = vsel %vm3760_vm3, %v3460_v8, %v672_v10  ;;  %v674_v13 = vrot.slane %v672_v10, 4  ;;  %v270_v40 = vld [vmem:[%s3852_s21 + $0x24] sm:$0xf]  ;;  %v348_v46 = vrot.slane %v3907_v38, 7 }
  0x1a   : > { %222 = vst.msk [vmem:[#allocation2 + $0x54] sm:$0xf] %vm199_vm0, %v3702_v0  ;;  %782 = vrot.lane.b32.xlu0 %v673_v11, %s3703_s17  ;;  %v3923_v43 = vld [vmem:[%s3852_s21 + $0x28] sm:$0xf]  ;;  %v272_v47 = vld [vmem:[%s3852_s21 + $0x2c] sm:$0xf] }
  0x1b   : > { %223 = vst.msk [vmem:[#allocation2 + $0x58] sm:$0xf] %vm199_vm0, %v3702_v0  ;;  %v337_v48 = vrot.slane %v335_v34, 4  ;;  %v330_v49 = vrot.slane %v262_v39, 7  ;;  %v350_v50 = vrot.slane %v270_v40, 7  ;;  %v358_v52 = vrot.slane %v3920_v42, 7 }
  0x1c   : > { %225 = vst.msk [vmem:[#allocation2 + $0x60] sm:$0xf] %vm199_vm0, %v3702_v0  ;;  %v3934_v51 = vld [vmem:[%s3852_s21 + $0x34] sm:$0xf]  ;;  %v353_v53 = vrot.slane %v3923_v43, 7  ;;  %v342_v55 = vrot.slane %v340_v37, 4 }
  0x1d   : > { %226 = vst.msk [vmem:[#allocation2 + $0x64] sm:$0xf] %vm199_vm0, %v3702_v0  ;;  %v355_v56 = vrot.slane %v272_v47, 7  ;;  %v3942_v57 = vld [vmem:[%s3852_s21 + $0x38] sm:$0xf]  ;;  %v349_v58 = vrot.slane %v348_v46, 4  ;;  %v331_v1 = vsel %vm3899_vm7, %v329_v45, %v330_v49 }
  0x1e   : > { %228 = vst.msk [vmem:[#allocation2 + $0x6c] sm:$0xf] %vm199_vm0, %v3702_v0  ;;  %v276_v59 = vld [vmem:[%s3852_s21 + $0x3c] sm:$0xf]  ;;  %v352_v60 = vrot.slane %v350_v50, 4  ;;  %v359_v61 = vrot.slane %v358_v52, 4 }
  0x1f   : > { %229 = vst.msk [vmem:[#allocation2 + $0x70] sm:$0xf] %vm199_vm0, %v3702_v0  ;;  %v360_v62 = vrot.slane %v3934_v51, 7  ;;  %v354_v63 = vrot.slane %v353_v53, 4  ;;  %v357_v2 = vrot.slane %v355_v56, 4  ;;  %v365_v4 = vrot.slane %v276_v59, 7 }
  0x20   : > { %231 = vst.msk [vmem:[#allocation2 + $0x78] sm:$0xf] %vm199_vm0, %v3702_v0  ;;  %v3956_v5 = vld [vmem:[%s3852_s21 + $0x40] sm:$0xf]  ;;  %v351_v7 = vsel %vm3899_vm7, %v349_v58, %v350_v50  ;;  %v3962_v8 = vld [vmem:[%s3852_s21 + $0x48] sm:$0xf] }
  0x21   : > { %232 = vst.msk [vmem:[#allocation2 + $0x7c] sm:$0xf] %vm199_vm0, %v3702_v0  ;;  %v332_v11 = vrot.slane %v330_v49, 4  ;;  %v278_v34 = vld [vmem:[%s3852_s21 + $0x44] sm:$0xf]  ;;  %vm878_vm13 = vcmask 60448  }
  0x22   : > { %234 = vst.msk [vmem:[#allocation2 + $0x84] sm:$0xf] %vm199_vm0, %v3702_v0  ;;  %v3996_v36 = vld [vmem:[%s3852_s21 + $0x4c] sm:$0xf]  ;;  %vm1218_vm14 = vcmask 93248   ;;  %vm1411_vm15 = vcmask 126048  }
  0x23   : > { %235 = vst.msk [vmem:[#allocation2 + $0x88] sm:$0xf] %vm199_vm0, %v3702_v0  ;;  %vm2085_vm1 = vcmask 191648   ;;  %vm2279_vm2 = vcmask 224448   ;;  %vm2953_vm5 = vcmask 290048   ;;  %vm3118_vm6 = vcmask 293888  }
  0x24   : > { %237 = vst.msk [vmem:[#allocation2 + $0x90] sm:$0xf] %vm199_vm0, %v3702_v0  ;;  %s3647_s13 = sshll.u32 %s5478_s16, 8 }
  0x25   : > { %238 = vst.msk [vmem:[#allocation2 + $0x94] sm:$0xf] %vm199_vm0, %v3702_v0  ;;  %s5345_s18 = scalar_lea.vmem %s5470_s4, %s3647_s13 }
  0x26   : > { %240 = vst.msk [vmem:[#allocation2 + $0x9c] sm:$0xf] %vm199_vm0, %v3702_v0 }
  0x27   : > { %241 = vst.msk [vmem:[#allocation2 + $0xa0] sm:$0xf] %vm199_vm0, %v3702_v0 }
  0x28   : > { %243 = vst.msk [vmem:[#allocation2 + $0xa8] sm:$0xf] %vm199_vm0, %v3702_v0 }
  0x29   : > { %244 = vst.msk [vmem:[#allocation2 + $0xac] sm:$0xf] %vm199_vm0, %v3702_v0 }
  0x2a   : > { %246 = vst.msk [vmem:[#allocation2 + $0xb4] sm:$0xf] %vm199_vm0, %v3702_v0 }
  0x2b   : > { %247 = vst.msk [vmem:[#allocation2 + $0xb8] sm:$0xf] %vm199_vm0, %v3702_v0 }
  0x2c   : > { %249 = vst.msk [vmem:[#allocation2 + $0xc0] sm:$0xf] %vm199_vm0, %v3702_v0 }
  0x2d   : > { %250 = vst.msk [vmem:[#allocation2 + $0xc4] sm:$0xf] %vm199_vm0, %v3702_v0 }
  0x2e   : > { %252 = vst.msk [vmem:[#allocation2 + $0xcc] sm:$0xf] %vm199_vm0, %v3702_v0 }
  0x2f   : > { %253 = vst.msk [vmem:[#allocation2 + $0xd0] sm:$0xf] %vm199_vm0, %v3702_v0 }
  0x30   : > { %255 = vst.msk [vmem:[#allocation2 + $0xd8] sm:$0xf] %vm199_vm0, %v3702_v0 }
  0x31   : > { %256 = vst.msk [vmem:[#allocation2 + $0xdc] sm:$0xf] %vm199_vm0, %v3702_v0 }
  0x32   : > { %258 = vst.msk [vmem:[#allocation2 + $0xe4] sm:$0xf] %vm199_vm0, %v3702_v0 }
  0x33   : > { %259 = vst.msk [vmem:[#allocation2 + $0xe8] sm:$0xf] %vm199_vm0, %v3702_v0 }
  0x34   : > { %206 = vst.msk [vmem:[#allocation2 + $0x14] sm:$0x3] %vm202_vm4, %v3702_v0 }
  0x35   : > { %203 = vst.msk [vmem:[#allocation2 + $0x8] sm:$0x3] %vm202_vm4, %v3702_v0 }
  0x36   : > { %209 = vst.msk [vmem:[#allocation2 + $0x20] sm:$0x3] %vm202_vm4, %v3702_v0 }
  0x37   : > { %212 = vst.msk [vmem:[#allocation2 + $0x2c] sm:$0x3] %vm202_vm4, %v3702_v0 }
  0x38   : > { %215 = vst.msk [vmem:[#allocation2 + $0x38] sm:$0x3] %vm202_vm4, %v3702_v0 }
  0x39   : > { %218 = vst.msk [vmem:[#allocation2 + $0x44] sm:$0x3] %vm202_vm4, %v3702_v0 }
  0x3a   : > { %221 = vst.msk [vmem:[#allocation2 + $0x50] sm:$0x3] %vm202_vm4, %v3702_v0 }
  0x3b   : > { %v576_v15 = vld [vmem:[#allocation2 + $0x14] sm:$0x1]  ;;  %224 = vst.msk [vmem:[#allocation2 + $0x5c] sm:$0x3] %vm202_vm4, %v3702_v0 }
  0x3c   : > { %v682_v17 = vrot.slane %v576_v15, 5  ;;  %227 = vst.msk [vmem:[#allocation2 + $0x68] sm:$0x3] %vm202_vm4, %v3702_v0  ;;  %v573_v18 = vld [vmem:[#allocation2 + $0x8] sm:$0x1] }
  0x3d   : > { %230 = vst.msk [vmem:[#allocation2 + $0x74] sm:$0x3] %vm202_vm4, %v3702_v0  ;;  %v675_v19 = vrot.slane %v573_v18, 5 }
  0x3e   : > { %v683_v21 = vsel %vm3760_vm3, %v681_v12, %v682_v17  ;;  %233 = vst.msk [vmem:[#allocation2 + $0x80] sm:$0x3] %vm202_vm4, %v3702_v0  ;;  %v368_v17 = vrot.slane %v3956_v5, 7 }
  0x3f   : > { %788 = vrot.lane.b32.xlu1 %v683_v21, %s3703_s17  ;;  %236 = vst.msk [vmem:[#allocation2 + $0x8c] sm:$0x3] %vm202_vm4, %v3702_v0  ;;  %v676_v24 = vsel %vm3760_vm3, %v674_v13, %v675_v19  ;;  %v361_v21 = vsel %vm3899_vm7, %v359_v61, %v360_v62 }
  0x40   : > { %239 = vst.msk [vmem:[#allocation2 + $0x98] sm:$0x3] %vm202_vm4, %v3702_v0  ;;  %784 = vrot.lane.b32.xlu0 %v676_v24, %s3703_s17  ;;  %v369_v37 = vrot.slane %v368_v17, 4 }
  0x41   : > { %242 = vst.msk [vmem:[#allocation2 + $0xa4] sm:$0x3] %vm202_vm4, %v3702_v0 }
  0x42   : > { %245 = vst.msk [vmem:[#allocation2 + $0xb0] sm:$0x3] %vm202_vm4, %v3702_v0 }
  0x43   : > { %248 = vst.msk [vmem:[#allocation2 + $0xbc] sm:$0x3] %vm202_vm4, %v3702_v0 }
  0x44   : > { %251 = vst.msk [vmem:[#allocation2 + $0xc8] sm:$0x3] %vm202_vm4, %v3702_v0 }
  0x45   : > { %254 = vst.msk [vmem:[#allocation2 + $0xd4] sm:$0x3] %vm202_vm4, %v3702_v0 }
  0x46   : > { %257 = vst.msk [vmem:[#allocation2 + $0xe0] sm:$0x3] %vm202_vm4, %v3702_v0 }
  0x47   : > { %260 = vst.msk [vmem:[#allocation2 + $0xec] sm:$0x3] %vm202_vm4, %v3702_v0  ;;  %v363_v0 = vrot.slane %v3942_v57, 7  ;;  %vm2616_vm4 = vcmask 257248  }
  0x48   : > { %468 = vst.msk [vmem:[#allocation2 + $0x3c] sm:$0xe] %vm457_vm8, %v343_v23  ;;  %v367_v23 = vrot.slane %v365_v4, 4 }
  0x49   : > { %469 = vst.msk [vmem:[#allocation2 + $0x40] sm:$0xf] %vm199_vm0, %v346_v41  ;;  %v364_v14 = vrot.slane %v363_v0, 4 }
  0x4a   : > { %462 = vst.msk [vmem:[#allocation2 + $0x24] sm:$0xe] %vm457_vm8, %v333_v26  ;;  %v356_v26 = vsel %vm3899_vm7, %v354_v63, %v355_v56 }
  0x4b   : > { %463 = vst.msk [vmem:[#allocation2 + $0x28] sm:$0xf] %vm199_vm0, %v336_v44  ;;  %v366_v45 = vsel %vm3899_vm7, %v364_v14, %v365_v4 }
  0x4c   : > { %464 = vst.msk [vmem:[#allocation2 + $0x2c] sm:$0x1] %vm460_vm9, %v337_v48  ;;  %v375_v48 = vrot.slane %v3996_v36, 7 }
  0x4d   : > { %466 = vst.msk [vmem:[#allocation2 + $0x34] sm:$0xf] %vm199_vm0, %v341_v54 }
  0x4e   : > { %467 = vst.msk [vmem:[#allocation2 + $0x38] sm:$0x1] %vm460_vm9, %v342_v55 }
  0x4f   : > { %v586_v6 = vld [vmem:[#allocation2 + $0x3c] sm:$0xe]  ;;  %465 = vst.msk [vmem:[#allocation2 + $0x30] sm:$0xe] %vm457_vm8, %v338_v27  ;;  %v373_v27 = vrot.slane %v3962_v8, 7 }
  0x50   : > { %v3964_v9 = vld [vmem:[#allocation2 + $0x40] sm:$0xf]  ;;  %v3465_v10 = vrot.slane %v586_v6, 9  ;;  %458 = vst.msk [vmem:[#allocation2 + $0x18] sm:$0xe] %vm457_vm8, %v328_v35  ;;  %v347_v35 = vrot.slane %v345_v31, 4 }
  0x51   : > { %v707_v12 = vrot.slane %v3964_v9, 5  ;;  %v580_v13 = vld [vmem:[#allocation2 + $0x24] sm:$0xe]  ;;  %459 = vst.msk [vmem:[#allocation2 + $0x1c] sm:$0xf] %vm199_vm0, %v331_v1  ;;  %v374_v22 = vrot.slane %v373_v27, 4 }
  0x52   : > { %v581_v15 = vld [vmem:[#allocation2 + $0x28] sm:$0xf]  ;;  %v3463_v16 = vrot.slane %v580_v13, 9  ;;  %472 = vst.msk [vmem:[#allocation2 + $0x4c] sm:$0xf] %vm199_vm0, %v351_v7 }
  0x53   : > { %v708_v18 = vsel %vm3760_vm3, %v3465_v10, %v707_v12  ;;  %v693_v19 = vrot.slane %v581_v15, 5  ;;  %v582_v20 = vld [vmem:[#allocation2 + $0x2c] sm:$0x1]  ;;  %473 = vst.msk [vmem:[#allocation2 + $0x50] sm:$0x1] %vm460_vm9, %v352_v60  ;;  %v376_v59 = vsel %vm3899_vm7, %v374_v22, %v375_v48  ;;  %v362_v10 = vrot.slane %v360_v62, 4 }
  0x54   : > { %802 = vrot.lane.b32.xlu1 %v708_v18, %s3703_s17  ;;  %v696_v24 = vrot.slane %v582_v20, 5  ;;  %v584_v25 = vld [vmem:[#allocation2 + $0x34] sm:$0xf]  ;;  %471 = vst.msk [vmem:[#allocation2 + $0x48] sm:$0xe] %vm457_vm8, %v348_v46 }
  0x55   : > { %v694_v28 = vsel %vm3760_vm3, %v3463_v16, %v693_v19  ;;  %v695_v29 = vrot.slane %v693_v19, 4  ;;  %v585_v30 = vld [vmem:[#allocation2 + $0x38] sm:$0x1]  ;;  %v700_v33 = vrot.slane %v584_v25, 5  ;;  %477 = vst.msk [vmem:[#allocation2 + $0x60] sm:$0xe] %vm457_vm8, %v358_v52 }
  0x56   : > { %794 = vrot.lane.b32.xlu0 %v694_v28, %s3703_s17  ;;  %478 = vst.msk [vmem:[#allocation2 + $0x64] sm:$0xf] %vm199_vm0, %v361_v21  ;;  %v703_v39 = vrot.slane %v585_v30, 5  ;;  %v583_v44 = vld [vmem:[#allocation2 + $0x30] sm:$0xe]  ;;  %v370_v52 = vrot.slane %v278_v34, 7 }
  0x57   : > { %v702_v38 = vrot.slane %v700_v33, 4  ;;  %v577_v40 = vld [vmem:[#allocation2 + $0x18] sm:$0xe]  ;;  %475 = vst.msk [vmem:[#allocation2 + $0x58] sm:$0xf] %vm199_vm0, %v356_v26  ;;  %v697_v31 = vsel %vm3760_vm3, %v695_v29, %v696_v24  ;;  %v3464_v58 = vrot.slane %v583_v44, 9 }
  0x58   : > { %v578_v41 = vld [vmem:[#allocation2 + $0x1c] sm:$0xf]  ;;  %v3462_v42 = vrot.slane %v577_v40, 9  ;;  %476 = vst.msk [vmem:[#allocation2 + $0x5c] sm:$0x1] %vm460_vm9, %v357_v2  ;;  %v371_v60 = vsel %vm3899_vm7, %v369_v37, %v370_v52  ;;  %v372_v61 = vrot.slane %v370_v52, 4 }
  0x59   : > { %v686_v46 = vrot.slane %v578_v41, 5  ;;  %v590_v47 = vld [vmem:[#allocation2 + $0x4c] sm:$0xf]  ;;  %474 = vst.msk [vmem:[#allocation2 + $0x54] sm:$0xe] %vm457_vm8, %v353_v53  ;;  %v704_v54 = vsel %vm3760_vm3, %v702_v38, %v703_v39  ;;  %v709_v28 = vrot.slane %v707_v12, 4 }
  0x5a   : > { %v591_v49 = vld [vmem:[#allocation2 + $0x50] sm:$0x1]  ;;  %v714_v50 = vrot.slane %v590_v47, 5  ;;  %461 = vst.msk [vmem:[#allocation2 + $0x20] sm:$0x1] %vm460_vm9, %v332_v11 }
  0x5b   : > { %v687_v55 = vsel %vm3760_vm3, %v3462_v42, %v686_v46  ;;  %481 = vst.msk [vmem:[#allocation2 + $0x70] sm:$0xf] %vm199_vm0, %v366_v45  ;;  %v589_v43 = vld [vmem:[#allocation2 + $0x48] sm:$0xe]  ;;  %v717_v56 = vrot.slane %v591_v49, 5  ;;  %v688_v14 = vrot.slane %v686_v46, 4 }
  0x5c   : > { %796 = vrot.lane.b32.xlu1 %v697_v31, %s3703_s17  ;;  %790 = vrot.lane.b32.xlu2 %v687_v55, %s3703_s17  ;;  %482 = vst.msk [vmem:[#allocation2 + $0x74] sm:$0x1] %vm460_vm9, %v367_v23  ;;  %v716_v53 = vrot.slane %v714_v50, 4  ;;  %v3466_v63 = vrot.slane %v589_v43, 9  ;;  %v595_v2 = vld [vmem:[#allocation2 + $0x60] sm:$0xe] }
  0x5d   : > { %480 = vst.msk [vmem:[#allocation2 + $0x6c] sm:$0xe] %vm457_vm8, %v363_v0  ;;  %v701_v0 = vsel %vm3760_vm3, %v3464_v58, %v700_v33  ;;  %v4039_v4 = vld [vmem:[#allocation2 + $0x64] sm:$0xf]  ;;  %v3468_v11 = vrot.slane %v595_v2, 9  ;;  %v377_v55 = vrot.slane %v375_v48, 4 }
  0x5e   : > { %800 = vrot.lane.b32.xlu0 %v704_v54, %s3703_s17  ;;  %470 = vst.msk [vmem:[#allocation2 + $0x44] sm:$0x1] %vm460_vm9, %v347_v35  ;;  %v4031_v1 = vld [vmem:[#allocation2 + $0x58] sm:$0xf]  ;;  %v718_v57 = vsel %vm3760_vm3, %v716_v53, %v717_v56  ;;  %v715_v7 = vsel %vm3760_vm3, %v3466_v63, %v714_v50  ;;  %v281_v15 = vld [vmem:[%s3852_s21 + $0x50] sm:$0xf] }
  0x5f   : > { %486 = vst.msk [vmem:[#allocation2 + $0x84] sm:$0xe] %vm457_vm8, %v373_v27  ;;  %v721_v8 = vrot.slane %v4031_v1, 5  ;;  %v594_v13 = vld [vmem:[#allocation2 + $0x5c] sm:$0x1]  ;;  %v728_v16 = vrot.slane %v4039_v4, 5 }
  0x60   : > { %487 = vst.msk [vmem:[#allocation2 + $0x88] sm:$0xf] %vm199_vm0, %v376_v59  ;;  %v282_v20 = vld [vmem:[%s3852_s21 + $0x54] sm:$0xf]  ;;  %v378_v5 = vrot.slane %v281_v15, 7  ;;  %v724_v62 = vrot.slane %v594_v13, 5 }
  0x61   : > { %484 = vst.msk [vmem:[#allocation2 + $0x7c] sm:$0xf] %vm199_vm0, %v371_v60  ;;  %v579_v6 = vld [vmem:[#allocation2 + $0x20] sm:$0x1]  ;;  %v723_v51 = vrot.slane %v721_v8, 4  ;;  %v729_v26 = vsel %vm3760_vm3, %v3468_v11, %v728_v16  ;;  %v730_v1 = vrot.slane %v728_v16, 4 }
  0x62   : > { %485 = vst.msk [vmem:[#allocation2 + $0x80] sm:$0x1] %vm460_vm9, %v372_v61  ;;  %v689_v18 = vrot.slane %v579_v6, 5  ;;  %v599_v19 = vld [vmem:[#allocation2 + $0x70] sm:$0xf]  ;;  %v379_v24 = vrot.slane %v378_v5, 4 }
  0x63   : > { %483 = vst.msk [vmem:[#allocation2 + $0x78] sm:$0xe] %vm457_vm8, %v368_v17  ;;  %v380_v17 = vrot.slane %v282_v20, 7  ;;  %v600_v21 = vld [vmem:[#allocation2 + $0x74] sm:$0x1]  ;;  %v735_v23 = vrot.slane %v599_v19, 5  ;;  %v725_v35 = vsel %vm3760_vm3, %v723_v51, %v724_v62 }
  0x64   : > { %808 = vrot.lane.b32.xlu1 %v718_v57, %s3703_s17  ;;  %798 = vrot.lane.b32.xlu2 %v701_v0, %s3703_s17  ;;  %479 = vst.msk [vmem:[#allocation2 + $0x68] sm:$0x1] %vm460_vm9, %v362_v10  ;;  %v690_v27 = vsel %vm3760_vm3, %v688_v14, %v689_v18  ;;  %v598_v29 = vld [vmem:[#allocation2 + $0x6c] sm:$0xe]  ;;  %v285_v34 = vld [vmem:[%s3852_s21 + $0x60] sm:$0xf] }
  0x65   : > { %v382_v25 = vrot.slane %v380_v17, 4  ;;  %489 = vst.msk [vmem:[#allocation2 + $0x90] sm:$0xe] %vm457_vm8, %v378_v5  ;;  %v588_v30 = vld [vmem:[#allocation2 + $0x44] sm:$0x1]  ;;  %v381_v33 = vsel %vm3899_vm7, %v379_v24, %v380_v17  ;;  %v738_v37 = vrot.slane %v600_v21, 5 }
  0x66   : > { %806 = vrot.lane.b32.xlu0 %v715_v7, %s3703_s17  ;;  %490 = vst.msk [vmem:[#allocation2 + $0x94] sm:$0xf] %vm199_vm0, %v381_v33  ;;  %v286_v9 = vld [vmem:[%s3852_s21 + $0x64] sm:$0xf]  ;;  %v388_v12 = vrot.slane %v285_v34, 7  ;;  %v737_v38 = vrot.slane %v735_v23, 4 }
  0x67   : > { %491 = vst.msk [vmem:[#allocation2 + $0x98] sm:$0x1] %vm460_vm9, %v382_v25  ;;  %v390_v39 = vrot.slane %v286_v9, 7  ;;  %v283_v40 = vld [vmem:[%s3852_s21 + $0x58] sm:$0xf]  ;;  %v710_v42 = vrot.slane %v588_v30, 5 }
  0x68   : > { %v284_v41 = vld [vmem:[%s3852_s21 + $0x5c] sm:$0xf]  ;;  %v389_v44 = vrot.slane %v388_v12, 4  ;;  %495 = vst.msk [vmem:[#allocation2 + $0xa8] sm:$0xe] %vm457_vm8, %v388_v12  ;;  %v383_v45 = vrot.slane %v283_v40, 7  ;;  %v739_v43 = vsel %vm3760_vm3, %v737_v38, %v738_v37 }
  0x69   : > { %v385_v22 = vrot.slane %v284_v41, 7  ;;  %v287_v31 = vld [vmem:[%s3852_s21 + $0x68] sm:$0xf]  ;;  %v3469_v46 = vrot.slane %v598_v29, 9  ;;  %v4086_v52 = vld [vmem:[#allocation2 + $0x7c] sm:$0xf]  ;;  %v711_v53 = vsel %vm3760_vm3, %v709_v28, %v710_v42 }
  0x6a   : > { %v391_v47 = vsel %vm3899_vm7, %v389_v44, %v390_v39  ;;  %v384_v49 = vrot.slane %v383_v45, 4  ;;  %492 = vst.msk [vmem:[#allocation2 + $0x9c] sm:$0xe] %vm457_vm8, %v383_v45  ;;  %v393_v54 = vrot.slane %v287_v31, 7  ;;  %v604_v56 = vld [vmem:[#allocation2 + $0x84] sm:$0xe] }
  0x6b   : > { %v387_v50 = vrot.slane %v385_v22, 4  ;;  %496 = vst.msk [vmem:[#allocation2 + $0xac] sm:$0xf] %vm199_vm0, %v391_v47  ;;  %v592_v58 = vld [vmem:[#allocation2 + $0x54] sm:$0xe]  ;;  %v736_v36 = vsel %vm3760_vm3, %v3469_v46, %v735_v23  ;;  %v742_v48 = vrot.slane %v4086_v52, 5 }
  0x6c   : > { %814 = vrot.lane.b32.xlu1 %v729_v26, %s3703_s17  ;;  %792 = vrot.lane.b32.xlu2 %v690_v27, %s3703_s17  ;;  %v386_v59 = vsel %vm3899_vm7, %v384_v49, %v385_v22  ;;  %v4098_v60 = vld [vmem:[#allocation2 + $0x88] sm:$0xf]  ;;  %v394_v61 = vrot.slane %v393_v54, 4  ;;  %v288_v63 = vld [vmem:[%s3852_s21 + $0x6c] sm:$0xf]  ;;  %v3471_v2 = vrot.slane %v604_v56, 9 }
  0x6d   : > { %494 = vst.msk [vmem:[#allocation2 + $0xa4] sm:$0x1] %vm460_vm9, %v387_v50  ;;  %v603_v57 = vld [vmem:[#allocation2 + $0x80] sm:$0x1]  ;;  %v395_v0 = vrot.slane %v288_v63, 7  ;;  %v749_v6 = vrot.slane %v4098_v60, 5 }
  0x6e   : > { %812 = vrot.lane.b32.xlu0 %v725_v35, %s3703_s17  ;;  %493 = vst.msk [vmem:[#allocation2 + $0xa0] sm:$0xf] %vm199_vm0, %v386_v59  ;;  %v3467_v7 = vrot.slane %v592_v58, 9  ;;  %v608_v10 = vld [vmem:[#allocation2 + $0x94] sm:$0xf]  ;;  %v744_v14 = vrot.slane %v742_v48, 4 }
  0x6f   : > { %498 = vst.msk [vmem:[#allocation2 + $0xb4] sm:$0xe] %vm457_vm8, %v393_v54  ;;  %v396_v11 = vsel %vm3899_vm7, %v394_v61, %v395_v0  ;;  %v397_v13 = vrot.slane %v395_v0, 4  ;;  %v745_v15 = vrot.slane %v603_v57, 5  ;;  %v750_v18 = vsel %vm3760_vm3, %v3471_v2, %v749_v6  ;;  %v609_v17 = vld [vmem:[#allocation2 + $0x98] sm:$0x1] }
  0x70   : > { %488 = vst.msk [vmem:[#allocation2 + $0x8c] sm:$0x1] %vm460_vm9, %v377_v55  ;;  %v722_v19 = vsel %vm3760_vm3, %v3467_v7, %v721_v8  ;;  %v756_v20 = vrot.slane %v608_v10, 5  ;;  %v392_v5 = vrot.slane %v390_v39, 4  ;;  %v597_v51 = vld [vmem:[#allocation2 + $0x68] sm:$0x1] }
  0x71   : > { %499 = vst.msk [vmem:[#allocation2 + $0xb8] sm:$0xf] %vm199_vm0, %v396_v11  ;;  %v746_v62 = vsel %vm3760_vm3, %v744_v14, %v745_v15  ;;  %v607_v21 = vld [vmem:[#allocation2 + $0x90] sm:$0xe]  ;;  %v759_v24 = vrot.slane %v609_v17, 5  ;;  %v731_v8 = vrot.slane %v597_v51, 5 }
  0x72   : > { %500 = vst.msk [vmem:[#allocation2 + $0xbc] sm:$0x1] %vm460_vm9, %v397_v13  ;;  %v758_v23 = vrot.slane %v756_v20, 4  ;;  %v3472_v25 = vrot.slane %v607_v21, 9  ;;  %v613_v29 = vld [vmem:[#allocation2 + $0xa8] sm:$0xe] }
  0x73   : > { %497 = vst.msk [vmem:[#allocation2 + $0xb0] sm:$0x1] %vm460_vm9, %v392_v5  ;;  %v732_v28 = vsel %vm3760_vm3, %v730_v1, %v731_v8  ;;  %v4135_v30 = vld [vmem:[#allocation2 + $0xac] sm:$0xf]  ;;  %v601_v33 = vld [vmem:[#allocation2 + $0x78] sm:$0xe] }
  0x74   : > { %820 = vrot.lane.b32.xlu1 %v739_v43, %s3703_s17  ;;  %804 = vrot.lane.b32.xlu2 %v711_v53, %s3703_s17  ;;  %v760_v27 = vsel %vm3760_vm3, %v758_v23, %v759_v24  ;;  %v757_v4 = vsel %vm3760_vm3, %v3472_v25, %v756_v20  ;;  %v612_v34 = vld [vmem:[#allocation2 + $0xa4] sm:$0x1]  ;;  %v3474_v35 = vrot.slane %v613_v29, 9  ;;  %v770_v37 = vrot.slane %v4135_v30, 5  ;;  %v914_v53 = vld [vmem:[#allocation2 + $0xc] sm:$0xc] }
  0x75   : > { %v4129_v26 = vld [vmem:[#allocation2 + $0xa0] sm:$0xf]  ;;  %v3470_v9 = vrot.slane %v601_v33, 9  ;;  %v766_v39 = vrot.slane %v612_v34, 5  ;;  %v751_v49 = vrot.slane %v749_v6, 4 }
  0x76   : > { %818 = vrot.lane.b32.xlu0 %v736_v36, %s3703_s17  ;;  %v763_v16 = vrot.slane %v4129_v26, 5  ;;  %v771_v40 = vsel %vm3760_vm3, %v3474_v35, %v770_v37  ;;  %v616_v31 = vld [vmem:[#allocation2 + $0xb4] sm:$0xe]  ;;  %v4155_v54 = vld [vmem:[#allocation2 + $0x4] sm:$0xf]  ;;  %v772_v23 = vrot.slane %v770_v37, 4 }
  0x77   : > { %v743_v41 = vsel %vm3760_vm3, %v3470_v9, %v742_v48  ;;  %v606_v45 = vld [vmem:[#allocation2 + $0x8c] sm:$0x1]  ;;  %v3475_v52 = vrot.slane %v616_v31, 9  ;;  %v4161_v56 = vld [vmem:[#allocation2 + $0x10] sm:$0xf]  ;;  %v1012_v60 = vrot.slane %v4155_v54, 6 }
  0x78   : > { %v617_v12 = vld [vmem:[#allocation2 + $0xb8] sm:$0xf]  ;;  %v765_v38 = vrot.slane %v763_v16, 4  ;;  %v752_v50 = vrot.slane %v606_v45, 5  ;;  %v610_v58 = vld [vmem:[#allocation2 + $0x9c] sm:$0xe] }
  0x79   : > { %v777_v42 = vrot.slane %v617_v12, 5  ;;  %v618_v44 = vld [vmem:[#allocation2 + $0xbc] sm:$0x1]  ;;  %v913_v61 = vld [vmem:[#allocation2 + $0x8] sm:$0x3]  ;;  %v3477_v48 = vrot.slane %v914_v53, 10 }
  0x7a   : > { %v767_v22 = vsel %vm3760_vm3, %v765_v38, %v766_v39  ;;  %v780_v47 = vrot.slane %v618_v44, 5  ;;  %v753_v43 = vsel %vm3760_vm3, %v751_v49, %v752_v50  ;;  %v1019_v63 = vrot.slane %v4161_v56, 6  ;;  %v918_v0 = vld [vmem:[#allocation2 + $0x1c] sm:$0xf]  ;;  %v509_v2 = vld [vmem:[#allocation2 + $0xc] sm:$0xf] }
  0x7b   : > { %v779_v46 = vrot.slane %v777_v42, 4  ;;  %v778_v59 = vsel %vm3760_vm3, %v3475_v52, %v777_v42  ;;  %v3473_v57 = vrot.slane %v610_v58, 9  ;;  %v507_v6 = vld [vmem:[#allocation2] sm:$0xf]  ;;  %v1014_v7 = vrot.slane %v1012_v60, 4 }
  0x7c   : > { %826 = vrot.lane.b32.xlu1 %v750_v18, %s3703_s17  ;;  %810 = vrot.lane.b32.xlu2 %v722_v19, %s3703_s17  ;;  %v1015_v10 = vrot.slane %v913_v61, 6  ;;  %541 = vst.msk [vmem:[#allocation3 + $0x8] sm:$0xf] %vm199_vm0, %v509_v2  ;;  %v511_v14 = vld [vmem:[#allocation2 + $0x18] sm:$0xf]  ;;  %v1020_v15 = vsel %vm4169_vm12, %v3477_v48, %v1019_v63  ;;  %v1026_v19 = vrot.slane %v918_v0, 6 }
  0x7d   : > { %v781_v55 = vsel %vm3760_vm3, %v779_v46, %v780_v47  ;;  %v764_v18 = vsel %vm3760_vm3, %v3473_v57, %v763_v16  ;;  %539 = vst.msk [vmem:[#allocation3] sm:$0xf] %vm199_vm0, %v507_v6  ;;  %v919_v20 = vld [vmem:[#allocation2 + $0x20] sm:$0x3]  ;;  %v615_v5 = vld [vmem:[#allocation2 + $0xb0] sm:$0x1] }
  0x7e   : > { %824 = vrot.lane.b32.xlu0 %v746_v62, %s3703_s17  ;;  %v1016_v17 = vsel %vm4169_vm12, %v1014_v7, %v1015_v10  ;;  %543 = vst.msk [vmem:[#allocation3 + $0x10] sm:$0xf] %vm199_vm0, %v511_v14  ;;  %v917_v51 = vld [vmem:[#allocation2 + $0x18] sm:$0xc]  ;;  %v1028_v62 = vrot.slane %v1026_v19, 4  ;;  %v1029_v21 = vrot.slane %v919_v20, 6 }
  0x7f   : > { %v773_v24 = vrot.slane %v615_v5, 5  ;;  %v510_v1 = vld [vmem:[#allocation2 + $0x10] sm:$0xf]  ;;  %v508_v8 = vld [vmem:[#allocation2 + $0x4] sm:$0xf]  ;;  %v3478_v26 = vrot.slane %v917_v51, 10 }
  0x80   : > { %v515_v25 = vld [vmem:[#allocation2 + $0x30] sm:$0xf]  ;;  %542 = vst.msk [vmem:[#allocation3 + $0xc] sm:$0xf] %vm199_vm0, %v510_v1  ;;  %v4204_v33 = vld [vmem:[#allocation2 + $0x34] sm:$0xf] }
  0x81   : > { %540 = vst.msk [vmem:[#allocation3 + $0x4] sm:$0xf] %vm199_vm0, %v508_v8  ;;  %v774_v29 = vsel %vm3760_vm3, %v772_v23, %v773_v24  ;;  %v923_v30 = vld [vmem:[#allocation2 + $0x30] sm:$0xc]  ;;  %v1027_v16 = vsel %vm4169_vm12, %v3478_v26, %v1026_v19  ;;  %v922_v35 = vld [vmem:[#allocation2 + $0x2c] sm:$0x3] }
  0x82   : > { %547 = vst.msk [vmem:[#allocation3 + $0x20] sm:$0xf] %vm199_vm0, %v515_v25  ;;  %v3480_v37 = vrot.slane %v923_v30, 10  ;;  %v1040_v9 = vrot.slane %v4204_v33, 6  ;;  %v927_v38 = vld [vmem:[#allocation2 + $0x40] sm:$0xf] }
  0x83   : > { %v517_v39 = vld [vmem:[#allocation2 + $0x3c] sm:$0xf]  ;;  %v513_v42 = vld [vmem:[#allocation2 + $0x24] sm:$0xf]  ;;  %v916_v47 = vld [vmem:[#allocation2 + $0x14] sm:$0x3] }
  0x84   : > { %832 = vrot.lane.b32.xlu1 %v760_v27, %s3703_s17  ;;  %816 = vrot.lane.b32.xlu2 %v732_v28, %s3703_s17  ;;  %v4196_v27 = vld [vmem:[#allocation2 + $0x28] sm:$0xf]  ;;  %v1030_v28 = vsel %vm4169_vm12, %v1028_v62, %v1029_v21  ;;  %549 = vst.msk [vmem:[#allocation3 + $0x28] sm:$0xf] %vm199_vm0, %v517_v39  ;;  %v1041_v44 = vsel %vm4169_vm12, %v3480_v37, %v1040_v9  ;;  %v512_v31 = vld [vmem:[#allocation2 + $0x1c] sm:$0xf] }
  0x85   : > { %v1033_v34 = vrot.slane %v4196_v27, 6  ;;  %545 = vst.msk [vmem:[#allocation3 + $0x18] sm:$0xf] %vm199_vm0, %v513_v42  ;;  %v928_v46 = vld [vmem:[#allocation2 + $0x44] sm:$0x3]  ;;  %v1021_v54 = vrot.slane %v1019_v63, 4 }
  0x86   : > { %830 = vrot.lane.b32.xlu0 %v757_v4, %s3703_s17  ;;  %v911_v4 = vld [vmem:[#allocation2] sm:$0xc]  ;;  %544 = vst.msk [vmem:[#allocation3 + $0x14] sm:$0xf] %vm199_vm0, %v512_v31  ;;  %v926_v50 = vld [vmem:[#allocation2 + $0x3c] sm:$0xc] }
  0x87   : > { %v3476_v12 = vrot.slane %v911_v4, 10  ;;  %v514_v53 = vld [vmem:[#allocation2 + $0x28] sm:$0xf]  ;;  %v3481_v58 = vrot.slane %v926_v50, 10  ;;  %v932_v56 = vld [vmem:[#allocation2 + $0x54] sm:$0xc] }
  0x88   : > { %546 = vst.msk [vmem:[#allocation3 + $0x1c] sm:$0xf] %vm199_vm0, %v514_v53  ;;  %v518_v57 = vld [vmem:[#allocation2 + $0x40] sm:$0xf]  ;;  %v4241_v0 = vld [vmem:[#allocation2 + $0x58] sm:$0xf] }
  0x89   : > { %v1013_v45 = vsel %vm4169_vm12, %v3476_v12, %v1012_v60  ;;  %v4234_v60 = vld [vmem:[#allocation2 + $0x4c] sm:$0xf]  ;;  %v920_v2 = vld [vmem:[#allocation2 + $0x24] sm:$0xc]  ;;  %550 = vst.msk [vmem:[#allocation3 + $0x2c] sm:$0xf] %vm199_vm0, %v518_v57 }
  0x8a   : > { %v787_v11 = vpop.permute.xlu1 %786  ;;  %v1054_v10 = vrot.slane %v4234_v60, 6  ;;  %v1061_v14 = vrot.slane %v4241_v0, 6  ;;  %v936_v19 = vld [vmem:[#allocation2 + $0x64] sm:$0xf]  ;;  %v520_v20 = vld [vmem:[#allocation2 + $0x4c] sm:$0xf] }
  0x8b   : > { %881 = vst.msk [vmem:[#allocation3 + $0x8] sm:$0xf] %vm878_vm13, %v787_v11  ;;  %v931_v11 = vld [vmem:[#allocation2 + $0x50] sm:$0x3]  ;;  %v519_v51 = vld [vmem:[#allocation2 + $0x48] sm:$0xf] }
  0x8c   : > { %838 = vrot.lane.b32.xlu1 %v771_v40, %s3703_s17  ;;  %822 = vrot.lane.b32.xlu2 %v743_v41, %s3703_s17  ;;  %v783_v13 = vpop.permute.xlu0 %782  ;;  %v1035_v40 = vrot.slane %v1033_v34, 4  ;;  %v1036_v41 = vrot.slane %v922_v35, 6  ;;  %v1056_v5 = vrot.slane %v1054_v10, 4  ;;  %552 = vst.msk [vmem:[#allocation3 + $0x34] sm:$0xf] %vm199_vm0, %v520_v20  ;;  %v1068_v23 = vrot.slane %v936_v19, 6 }
  0x8d   : > { %879 = vst.msk [vmem:[#allocation3] sm:$0xf] %vm878_vm13, %v783_v13  ;;  %v3483_v13 = vrot.slane %v932_v56, 10  ;;  %v521_v24 = vld [vmem:[#allocation2 + $0x54] sm:$0xf] }
  0x8e   : > { %836 = vrot.lane.b32.xlu0 %v767_v22, %s3703_s17  ;;  %v1047_v22 = vrot.slane %v927_v38, 6  ;;  %v1037_v49 = vsel %vm4169_vm12, %v1035_v40, %v1036_v41  ;;  %551 = vst.msk [vmem:[#allocation3 + $0x30] sm:$0xf] %vm199_vm0, %v519_v51  ;;  %v937_v1 = vld [vmem:[#allocation2 + $0x68] sm:$0x3]  ;;  %v1070_v27 = vrot.slane %v1068_v23, 4 }
  0x8f   : > { %v1062_v62 = vsel %vm4169_vm12, %v3483_v13, %v1061_v14  ;;  %v925_v8 = vld [vmem:[#allocation2 + $0x38] sm:$0x3]  ;;  %553 = vst.msk [vmem:[#allocation3 + $0x38] sm:$0xf] %vm199_vm0, %v521_v24  ;;  %v935_v26 = vld [vmem:[#allocation2 + $0x60] sm:$0xc] }
  0x90   : > { %v1049_v52 = vrot.slane %v1047_v22, 4  ;;  %v1048_v7 = vsel %vm4169_vm12, %v3481_v58, %v1047_v22  ;;  %v1043_v30 = vrot.slane %v925_v8, 6  ;;  %v522_v35 = vld [vmem:[#allocation2 + $0x58] sm:$0xf]  ;;  %v4275_v37 = vld [vmem:[#allocation2 + $0x70] sm:$0xf] }
  0x91   : > { %554 = vst.msk [vmem:[#allocation3 + $0x3c] sm:$0xf] %vm199_vm0, %v522_v35  ;;  %v524_v38 = vld [vmem:[#allocation2 + $0x64] sm:$0xf]  ;;  %v4283_v39 = vld [vmem:[#allocation2 + $0x7c] sm:$0xf] }
  0x92   : > { %v929_v40 = vld [vmem:[#allocation2 + $0x48] sm:$0xc]  ;;  %556 = vst.msk [vmem:[#allocation3 + $0x44] sm:$0xf] %vm199_vm0, %v524_v38  ;;  %v1075_v42 = vrot.slane %v4275_v37, 6  ;;  %v1082_v22 = vrot.slane %v4283_v39, 6 }
  0x93   : > { %v3482_v31 = vrot.slane %v929_v40, 10  ;;  %v934_v56 = vld [vmem:[#allocation2 + $0x5c] sm:$0x3]  ;;  %v944_v57 = vld [vmem:[#allocation2 + $0x84] sm:$0xc] }
  0x94   : > { %844 = vrot.lane.b32.xlu1 %v781_v55, %s3703_s17  ;;  %828 = vrot.lane.b32.xlu2 %v753_v43, %s3703_s17  ;;  %v1050_v55 = vrot.slane %v928_v46, 6  ;;  %v1022_v43 = vrot.slane %v916_v47, 6  ;;  %v1077_v50 = vrot.slane %v1075_v42, 4  ;;  %v3487_v13 = vrot.slane %v944_v57, 10  ;;  %v4318_v19 = vld [vmem:[#allocation2 + $0x94] sm:$0xf] }
  0x95   : > { %v1055_v58 = vsel %vm4169_vm12, %v3482_v31, %v1054_v10  ;;  %v528_v20 = vld [vmem:[#allocation2 + $0x7c] sm:$0xf]  ;;  %v4325_v51 = vld [vmem:[#allocation2 + $0xa0] sm:$0xf]  ;;  %v949_v24 = vld [vmem:[#allocation2 + $0x98] sm:$0x3] }
  0x96   : > { %842 = vrot.lane.b32.xlu0 %v778_v59, %s3703_s17  ;;  %v516_v59 = vld [vmem:[#allocation2 + $0x34] sm:$0xf]  ;;  %v1051_v61 = vsel %vm4169_vm12, %v1049_v52, %v1050_v55  ;;  %v1023_v48 = vsel %vm4169_vm12, %v1021_v54, %v1022_v43  ;;  %v526_v55 = vld [vmem:[#allocation2 + $0x70] sm:$0xf]  ;;  %v525_v43 = vld [vmem:[#allocation2 + $0x6c] sm:$0xf] }
  0x97   : > { %548 = vst.msk [vmem:[#allocation3 + $0x24] sm:$0xf] %vm199_vm0, %v516_v59  ;;  %v1103_v8 = vrot.slane %v4325_v51, 6  ;;  %v955_v38 = vld [vmem:[#allocation2 + $0xb0] sm:$0x3] }
  0x98   : > { %558 = vst.msk [vmem:[#allocation3 + $0x4c] sm:$0xf] %vm199_vm0, %v526_v55  ;;  %v943_v40 = vld [vmem:[#allocation2 + $0x80] sm:$0x3]  ;;  %v957_v55 = vld [vmem:[#allocation2 + $0xb8] sm:$0xf] }
  0x99   : > { %557 = vst.msk [vmem:[#allocation3 + $0x48] sm:$0xf] %vm199_vm0, %v525_v43  ;;  %v1085_v31 = vrot.slane %v943_v40, 6  ;;  %v536_v43 = vld [vmem:[#allocation2 + $0xac] sm:$0xf] }
  0x9a   : > { %560 = vst.msk [vmem:[#allocation3 + $0x54] sm:$0xf] %vm199_vm0, %v528_v20  ;;  %v1445_v32 = vld [vmem:[#allocation2 + $0x1c] sm:$0xf] }
  0x9b   : > { %568 = vst.msk [vmem:[#allocation3 + $0x74] sm:$0xf] %vm199_vm0, %v536_v43 }
  0x9c   : > { %1126 = vrot.lane.b32.xlu1 %v1020_v15, %s3704_s22  ;;  %834 = vrot.lane.b32.xlu2 %v764_v18, %s3703_s17  ;;  %v3479_v15 = vrot.slane %v920_v2, 10 }
  0x9e   : > { %1124 = vrot.lane.b32.xlu0 %v1016_v17, %s3704_s22  ;;  %v1057_v17 = vrot.slane %v931_v11, 6  ;;  %v1034_v21 = vsel %vm4169_vm12, %v3479_v15, %v1033_v34  ;;  %v3484_v34 = vrot.slane %v935_v26, 10  ;;  %v529_v15 = vld [vmem:[#allocation2 + $0x84] sm:$0xf] }
  0x9f   : > { %561 = vst.msk [vmem:[#allocation3 + $0x58] sm:$0xf] %vm199_vm0, %v529_v15 }
  0xa0   : > { %v1058_v25 = vsel %vm4169_vm12, %v1056_v5, %v1057_v17  ;;  %v1069_v41 = vsel %vm4169_vm12, %v3484_v34, %v1068_v23  ;;  %v950_v5 = vld [vmem:[#allocation2 + $0x9c] sm:$0xc]  ;;  %v530_v17 = vld [vmem:[#allocation2 + $0x88] sm:$0xf]  ;;  %v1096_v23 = vrot.slane %v4318_v19, 6 }
  0xa1   : > { %562 = vst.msk [vmem:[#allocation3 + $0x5c] sm:$0xf] %vm199_vm0, %v530_v17  ;;  %v531_v34 = vld [vmem:[#allocation2 + $0x90] sm:$0xf] }
  0xa2   : > { %563 = vst.msk [vmem:[#allocation3 + $0x60] sm:$0xf] %vm199_vm0, %v531_v34 }
  0xa4   : > { %1132 = vrot.lane.b32.xlu1 %v1030_v28, %s3704_s22  ;;  %840 = vrot.lane.b32.xlu2 %v774_v29, %s3703_s17  ;;  %v1071_v28 = vrot.slane %v937_v1, 6  ;;  %v1042_v29 = vrot.slane %v1040_v9, 4  ;;  %v941_v9 = vld [vmem:[#allocation2 + $0x78] sm:$0xc]  ;;  %v3489_v1 = vrot.slane %v950_v5, 10 }
  0xa5   : > { %v1254_v5 = vld [vmem:[#allocation2 + $0x28] sm:$0xf] }
  0xa6   : > { %1130 = vrot.lane.b32.xlu0 %v1027_v16, %s3704_s22  ;;  %v523_v16 = vld [vmem:[#allocation2 + $0x60] sm:$0xf]  ;;  %v1072_v12 = vsel %vm4169_vm12, %v1070_v27, %v1071_v28  ;;  %v1044_v33 = vsel %vm4169_vm12, %v1042_v29, %v1043_v30  ;;  %v954_v28 = vld [vmem:[#allocation2 + $0xac] sm:$0xf]  ;;  %v1098_v29 = vrot.slane %v1096_v23, 4  ;;  %v1099_v30 = vrot.slane %v949_v24, 6 }
  0xa7   : > { %555 = vst.msk [vmem:[#allocation3 + $0x40] sm:$0xf] %vm199_vm0, %v523_v16  ;;  %v1104_v35 = vsel %vm4169_vm12, %v3489_v1, %v1103_v8 }
  0xac   : > { %1138 = vrot.lane.b32.xlu1 %v1041_v44, %s3704_s22  ;;  %1122 = vrot.lane.b32.xlu2 %v1013_v45, %s3704_s22  ;;  %v940_v44 = vld [vmem:[#allocation2 + $0x74] sm:$0x3]  ;;  %v3486_v45 = vrot.slane %v941_v9, 10  ;;  %v533_v9 = vld [vmem:[#allocation2 + $0x9c] sm:$0xf] }
  0xad   : > { %v1078_v52 = vrot.slane %v940_v44, 6  ;;  %v953_v44 = vld [vmem:[#allocation2 + $0xa8] sm:$0xc]  ;;  %565 = vst.msk [vmem:[#allocation3 + $0x68] sm:$0xf] %vm199_vm0, %v533_v9 }
  0xae   : > { %1136 = vrot.lane.b32.xlu0 %v1037_v49, %s3704_s22  ;;  %v945_v49 = vld [vmem:[#allocation2 + $0x88] sm:$0xf]  ;;  %v1083_v53 = vsel %vm4169_vm12, %v3486_v45, %v1082_v22  ;;  %v1084_v45 = vrot.slane %v1082_v22, 4  ;;  %v1255_v9 = vld [vmem:[#allocation2 + $0x30] sm:$0xf] }
  0xaf   : > { %v1089_v59 = vrot.slane %v945_v49, 6  ;;  %v3490_v49 = vrot.slane %v953_v44, 10 }
  0xb0   : > { %v1086_v22 = vsel %vm4169_vm12, %v1084_v45, %v1085_v31  ;;  %v1258_v45 = vld [vmem:[#allocation2 + $0x40] sm:$0xf] }
  0xb1   : > { %v789_v63 = vpop.permute.xlu1 %788  ;;  %v1091_v60 = vrot.slane %v1089_v59, 4 }
  0xb2   : > { %882 = vst.msk [vmem:[#allocation3 + $0xc] sm:$0xf] %vm878_vm13, %v789_v63  ;;  %v785_v6 = vpop.permute.xlu0 %784  ;;  %v1079_v63 = vsel %vm4169_vm12, %v1077_v50, %v1078_v52  ;;  %v535_v50 = vld [vmem:[#allocation2 + $0xa8] sm:$0xf] }
  0xb3   : > { %880 = vst.msk [vmem:[#allocation3 + $0x4] sm:$0xf] %vm878_vm13, %v785_v6  ;;  %v1063_v6 = vrot.slane %v1061_v14, 4 }
  0xb4   : > { %1144 = vrot.lane.b32.xlu1 %v1051_v61, %s3704_s22  ;;  %1128 = vrot.lane.b32.xlu2 %v1023_v48, %s3704_s22  ;;  %v527_v61 = vld [vmem:[#allocation2 + $0x78] sm:$0xf]  ;;  %v946_v48 = vld [vmem:[#allocation2 + $0x8c] sm:$0x3]  ;;  %567 = vst.msk [vmem:[#allocation3 + $0x70] sm:$0xf] %vm199_vm0, %v535_v50 }
  0xb5   : > { %559 = vst.msk [vmem:[#allocation3 + $0x50] sm:$0xf] %vm199_vm0, %v527_v61  ;;  %v1092_v2 = vrot.slane %v946_v48, 6  ;;  %v958_v61 = vld [vmem:[#allocation2 + $0xbc] sm:$0x3] }
  0xb6   : > { %1142 = vrot.lane.b32.xlu0 %v1048_v7, %s3704_s22  ;;  %v791_v18 = vpop.permute.xlu2 %790  ;;  %v1064_v7 = vrot.slane %v934_v56, 6 }
  0xb7   : > { %883 = vst.msk [vmem:[#allocation3 + $0x10] sm:$0xf] %vm878_vm13, %v791_v18  ;;  %v1093_v0 = vsel %vm4169_vm12, %v1091_v60, %v1092_v2  ;;  %v1120_v60 = vrot.slane %v958_v61, 6  ;;  %v538_v2 = vld [vmem:[#allocation2 + $0xb8] sm:$0xf] }
  0xb8   : > { %v1065_v14 = vsel %vm4169_vm12, %v1063_v6, %v1064_v7  ;;  %v537_v7 = vld [vmem:[#allocation2 + $0xb4] sm:$0xf]  ;;  %570 = vst.msk [vmem:[#allocation3 + $0x7c] sm:$0xf] %vm199_vm0, %v538_v2  ;;  %v1271_v2 = vld [vmem:[#allocation2 + $0x90] sm:$0xf] }
  0xb9   : > { %569 = vst.msk [vmem:[#allocation3 + $0x78] sm:$0xf] %vm199_vm0, %v537_v7 }
  0xbc   : > { %1150 = vrot.lane.b32.xlu1 %v1062_v62, %s3704_s22  ;;  %1134 = vrot.lane.b32.xlu2 %v1034_v21, %s3704_s22  ;;  %v938_v62 = vld [vmem:[#allocation2 + $0x6c] sm:$0xc]  ;;  %v1090_v21 = vsel %vm4169_vm12, %v3487_v13, %v1089_v59  ;;  %v1117_v59 = vrot.slane %v957_v55, 6  ;;  %v952_v13 = vld [vmem:[#allocation2 + $0xa4] sm:$0x3] }
  0xbd   : > { %v1106_v19 = vrot.slane %v952_v13, 6  ;;  %v1267_v13 = vld [vmem:[#allocation2 + $0x78] sm:$0xf] }
  0xbe   : > { %1148 = vrot.lane.b32.xlu0 %v1058_v25, %s3704_s22  ;;  %v799_v4 = vpop.permute.xlu2 %798  ;;  %v3485_v25 = vrot.slane %v938_v62, 10  ;;  %v1119_v57 = vrot.slane %v1117_v59, 4  ;;  %v956_v62 = vld [vmem:[#allocation2 + $0xb4] sm:$0xc] }
  0xbf   : > { %887 = vst.msk [vmem:[#allocation3 + $0x20] sm:$0xf] %vm878_vm13, %v799_v4  ;;  %v532_v4 = vld [vmem:[#allocation2 + $0x94] sm:$0xf]  ;;  %v3491_v51 = vrot.slane %v956_v62, 10 }
  0xc0   : > { %564 = vst.msk [vmem:[#allocation3 + $0x64] sm:$0xf] %vm199_vm0, %v532_v4  ;;  %v1121_v15 = vsel %vm4169_vm12, %v1119_v57, %v1120_v60  ;;  %v1252_v4 = vld [vmem:[#allocation2 + $0x1c] sm:$0xf]  ;;  %v1272_v57 = vld [vmem:[#allocation2 + $0x94] sm:$0xf] }
  0xc1   : > { %v1264_v60 = vld [vmem:[#allocation2 + $0x64] sm:$0xf]  ;;  %v1278_v62 = vld [vmem:[#allocation2 + $0xb8] sm:$0xf] }
  0xc4   : > { %1156 = vrot.lane.b32.xlu1 %v1072_v12, %s3704_s22  ;;  %1140 = vrot.lane.b32.xlu2 %v1044_v33, %s3704_s22  ;;  %v1076_v12 = vsel %vm4169_vm12, %v3485_v25, %v1075_v42  ;;  %v1110_v33 = vrot.slane %v954_v28, 6  ;;  %v1113_v42 = vrot.slane %v955_v38, 6  ;;  %v1118_v25 = vsel %vm4169_vm12, %v3491_v51, %v1117_v59  ;;  %v1262_v38 = vld [vmem:[#allocation2 + $0x58] sm:$0xf]  ;;  %v1268_v59 = vld [vmem:[#allocation2 + $0x7c] sm:$0xf] }
  0xc5   : > { %v1277_v51 = vld [vmem:[#allocation2 + $0xb4] sm:$0xf] }
  0xc6   : > { %1154 = vrot.lane.b32.xlu0 %v1069_v41, %s3704_s22  ;;  %v803_v46 = vpop.permute.xlu1 %802  ;;  %v793_v47 = vpop.permute.xlu2 %792  ;;  %v1100_v41 = vsel %vm4169_vm12, %v1098_v29, %v1099_v30  ;;  %v1112_v37 = vrot.slane %v1110_v33, 4  ;;  %v1260_v30 = vld [vmem:[#allocation2 + $0x4c] sm:$0xf] }
  0xc7   : > { %889 = vst.msk [vmem:[#allocation3 + $0x28] sm:$0xf] %vm878_vm13, %v803_v46 }
  0xc8   : > { %v795_v54 = vpop.permute.xlu0 %794  ;;  %884 = vst.msk [vmem:[#allocation3 + $0x14] sm:$0xf] %vm878_vm13, %v793_v47  ;;  %v1114_v39 = vsel %vm4169_vm12, %v1112_v37, %v1113_v42  ;;  %v1266_v37 = vld [vmem:[#allocation2 + $0x70] sm:$0xf] }
  0xc9   : > { %885 = vst.msk [vmem:[#allocation3 + $0x18] sm:$0xf] %vm878_vm13, %v795_v54  ;;  %v534_v54 = vld [vmem:[#allocation2 + $0xa0] sm:$0xf]  ;;  %v289_v42 = vld [vmem:[%s3852_s21 + $0x70] sm:$0xf] }
  0xca   : > { %566 = vst.msk [vmem:[#allocation3 + $0x6c] sm:$0xf] %vm199_vm0, %v534_v54  ;;  %v398_v31 = vrot.slane %v289_v42, 7 }
  0xcc   : > { %1162 = vrot.lane.b32.xlu1 %v1083_v53, %s3704_s22  ;;  %1146 = vrot.lane.b32.xlu2 %v1055_v58, %s3704_s22  ;;  %v947_v53 = vld [vmem:[#allocation2 + $0x90] sm:$0xc]  ;;  %v1111_v58 = vsel %vm4169_vm12, %v3490_v49, %v1110_v33  ;;  %v1263_v33 = vld [vmem:[#allocation2 + $0x60] sm:$0xf]  ;;  %v291_v49 = vld [vmem:[%s3852_s21 + $0x78] sm:$0xf] }
  0xcd   : > { %v3488_v48 = vrot.slane %v947_v53, 10  ;;  %v399_v50 = vrot.slane %v398_v31, 4  ;;  %501 = vst.msk [vmem:[#allocation2 + $0xc0] sm:$0xe] %vm457_vm8, %v398_v31  ;;  %v403_v55 = vrot.slane %v291_v49, 7 }
  0xce   : > { %1160 = vrot.lane.b32.xlu0 %v1079_v63, %s3704_s22  ;;  %v797_v10 = vpop.permute.xlu1 %796  ;;  %v805_v11 = vpop.permute.xlu2 %804  ;;  %v1269_v53 = vld [vmem:[#allocation2 + $0x84] sm:$0xf] }
  0xcf   : > { %886 = vst.msk [vmem:[#allocation3 + $0x1c] sm:$0xf] %vm878_vm13, %v797_v10  ;;  %v1251_v10 = vld [vmem:[#allocation2 + $0x18] sm:$0xf] }
  0xd0   : > { %v801_v18 = vpop.permute.xlu0 %800  ;;  %890 = vst.msk [vmem:[#allocation3 + $0x2c] sm:$0xf] %vm878_vm13, %v805_v11  ;;  %v1097_v11 = vsel %vm4169_vm12, %v3488_v48, %v1096_v23 }
  0xd1   : > { %888 = vst.msk [vmem:[#allocation3 + $0x24] sm:$0xf] %vm878_vm13, %v801_v18  ;;  %v1105_v18 = vrot.slane %v1103_v8, 4  ;;  %v1257_v8 = vld [vmem:[#allocation2 + $0x3c] sm:$0xf] }
  0xd2   : > { %504 = vst.msk [vmem:[#allocation2 + $0xcc] sm:$0xe] %vm457_vm8, %v403_v55 }
  0xd3   : > { %v1107_v17 = vsel %vm4169_vm12, %v1105_v18, %v1106_v19  ;;  %v404_v18 = vrot.slane %v403_v55, 4  ;;  %v292_v19 = vld [vmem:[%s3852_s21 + $0x7c] sm:$0xf] }
  0xd4   : > { %1168 = vrot.lane.b32.xlu1 %v1093_v0, %s3704_s22  ;;  %1152 = vrot.lane.b32.xlu2 %v1065_v14, %s3704_s22 }
  0xd6   : > { %1166 = vrot.lane.b32.xlu0 %v1090_v21, %s3704_s22  ;;  %v809_v26 = vpop.permute.xlu1 %808  ;;  %v811_v27 = vpop.permute.xlu2 %810  ;;  %v1253_v21 = vld [vmem:[#allocation2 + $0x24] sm:$0xf] }
  0xd7   : > { %892 = vst.msk [vmem:[#allocation3 + $0x34] sm:$0xf] %vm878_vm13, %v809_v26  ;;  %v1256_v26 = vld [vmem:[#allocation2 + $0x34] sm:$0xf] }
  0xd8   : > { %v807_v16 = vpop.permute.xlu0 %806  ;;  %893 = vst.msk [vmem:[#allocation3 + $0x38] sm:$0xf] %vm878_vm13, %v811_v27 }
  0xd9   : > { %891 = vst.msk [vmem:[#allocation3 + $0x30] sm:$0xf] %vm878_vm13, %v807_v16  ;;  %v1259_v16 = vld [vmem:[#allocation2 + $0x48] sm:$0xf] }
  0xdc   : > { %1174 = vrot.lane.b32.xlu1 %v1104_v35, %s3704_s22  ;;  %1158 = vrot.lane.b32.xlu2 %v1076_v12, %s3704_s22 }
  0xde   : > { %1172 = vrot.lane.b32.xlu0 %v1100_v41, %s3704_s22  ;;  %v815_v46 = vpop.permute.xlu1 %814  ;;  %v817_v47 = vpop.permute.xlu2 %816 }
  0xdf   : > { %895 = vst.msk [vmem:[#allocation3 + $0x40] sm:$0xf] %vm878_vm13, %v815_v46  ;;  %v1265_v46 = vld [vmem:[#allocation2 + $0x6c] sm:$0xf] }
  0xe0   : > { %v813_v52 = vpop.permute.xlu0 %812  ;;  %896 = vst.msk [vmem:[#allocation3 + $0x44] sm:$0xf] %vm878_vm13, %v817_v47  ;;  %v290_v47 = vld [vmem:[%s3852_s21 + $0x74] sm:$0xf] }
  0xe1   : > { %894 = vst.msk [vmem:[#allocation3 + $0x3c] sm:$0xf] %vm878_vm13, %v813_v52  ;;  %v400_v52 = vrot.slane %v290_v47, 7 }
  0xe3   : > { %v402_v61 = vrot.slane %v400_v52, 4 }
  0xe4   : > { %1180 = vrot.lane.b32.xlu1 %v1114_v39, %s3704_s22  ;;  %1164 = vrot.lane.b32.xlu2 %v1086_v22, %s3704_s22  ;;  %v401_v22 = vsel %vm3899_vm7, %v399_v50, %v400_v52  ;;  %v1454_v50 = vld [vmem:[#allocation2 + $0x40] sm:$0xf] }
  0xe5   : > { %502 = vst.msk [vmem:[#allocation2 + $0xc4] sm:$0xf] %vm199_vm0, %v401_v22  ;;  %v1279_v22 = vld [vmem:[#allocation2 + $0xc0] sm:$0xf] }
  0xe6   : > { %1178 = vrot.lane.b32.xlu0 %v1111_v58, %s3704_s22  ;;  %v821_v56 = vpop.permute.xlu1 %820  ;;  %v823_v63 = vpop.permute.xlu2 %822  ;;  %v1261_v58 = vld [vmem:[#allocation2 + $0x54] sm:$0xf]  ;;  %503 = vst.msk [vmem:[#allocation2 + $0xc8] sm:$0x1] %vm460_vm9, %v402_v61 }
  0xe7   : > { %898 = vst.msk [vmem:[#allocation3 + $0x4c] sm:$0xf] %vm878_vm13, %v821_v56 }
  0xe8   : > { %v819_v6 = vpop.permute.xlu0 %818  ;;  %899 = vst.msk [vmem:[#allocation3 + $0x50] sm:$0xf] %vm878_vm13, %v823_v63 }
  0xe9   : > { %897 = vst.msk [vmem:[#allocation3 + $0x48] sm:$0xf] %vm878_vm13, %v819_v6 }
  0xec   : > { %1315 = vrot.lane.b32.xlu1 %v1251_v10, %s3705_s23  ;;  %1170 = vrot.lane.b32.xlu2 %v1097_v11, %s3704_s22  ;;  %v1275_v11 = vld [vmem:[#allocation2 + $0xa8] sm:$0xf] }
  0xee   : > { %1184 = vrot.lane.b32.xlu0 %v1121_v15, %s3704_s22  ;;  %v827_v20 = vpop.permute.xlu1 %826  ;;  %v829_v0 = vpop.permute.xlu2 %828  ;;  %v1274_v15 = vld [vmem:[#allocation2 + $0xa0] sm:$0xf] }
  0xef   : > { %901 = vst.msk [vmem:[#allocation3 + $0x58] sm:$0xf] %vm878_vm13, %v827_v20  ;;  %v405_v20 = vrot.slane %v292_v19, 7  ;;  %v1458_v19 = vld [vmem:[#allocation2 + $0x50] sm:$0x1] }
  0xf0   : > { %v825_v14 = vpop.permute.xlu0 %824  ;;  %902 = vst.msk [vmem:[#allocation3 + $0x5c] sm:$0xf] %vm878_vm13, %v829_v0 }
  0xf1   : > { %900 = vst.msk [vmem:[#allocation3 + $0x54] sm:$0xf] %vm878_vm13, %v825_v14 }
  0xf4   : > { %1321 = vrot.lane.b32.xlu1 %v1254_v5, %s3705_s23  ;;  %1176 = vrot.lane.b32.xlu2 %v1107_v17, %s3704_s22  ;;  %v406_v5 = vsel %vm3899_vm7, %v404_v18, %v405_v20 }
  0xf5   : > { %505 = vst.msk [vmem:[#allocation2 + $0xd0] sm:$0xf] %vm199_vm0, %v406_v5  ;;  %vm1748_vm0 = vcmask 158848  }
  0xf6   : > { %1319 = vrot.lane.b32.xlu0 %v1253_v21, %s3705_s23  ;;  %v833_v23 = vpop.permute.xlu1 %832  ;;  %v835_v24 = vpop.permute.xlu2 %834  ;;  %v1270_v21 = vld [vmem:[#allocation2 + $0x88] sm:$0xf] }
  0xf7   : > { %904 = vst.msk [vmem:[#allocation3 + $0x64] sm:$0xf] %vm878_vm13, %v833_v23 }
  0xf8   : > { %v831_v1 = vpop.permute.xlu0 %830  ;;  %905 = vst.msk [vmem:[#allocation3 + $0x68] sm:$0xf] %vm878_vm13, %v835_v24 }
  0xf9   : > { %903 = vst.msk [vmem:[#allocation3 + $0x60] sm:$0xf] %vm878_vm13, %v831_v1  ;;  %v407_v1 = vrot.slane %v405_v20, 4 }
  0xfb   : > { %506 = vst.msk [vmem:[#allocation2 + $0xd4] sm:$0x1] %vm460_vm9, %v407_v1 }
  0xfc   : > { %1327 = vrot.lane.b32.xlu1 %v1257_v8, %s3705_s23  ;;  %1182 = vrot.lane.b32.xlu2 %v1118_v25, %s3704_s22  ;;  %v1281_v25 = vld [vmem:[#allocation2 + $0xcc] sm:$0xf] }
  0xfe   : > { %1325 = vrot.lane.b32.xlu0 %v1256_v26, %s3705_s23  ;;  %v839_v27 = vpop.permute.xlu1 %838  ;;  %v841_v28 = vpop.permute.xlu2 %840  ;;  %v1273_v26 = vld [vmem:[#allocation2 + $0x9c] sm:$0xf] }
  0xff   : > { %907 = vst.msk [vmem:[#allocation3 + $0x70] sm:$0xf] %vm878_vm13, %v839_v27  ;;  %v1542_v27 = vrot.slane %v1445_v32, 5 }
 0x100   : > { %v837_v29 = vpop.permute.xlu0 %836  ;;  %908 = vst.msk [vmem:[#allocation3 + $0x74] sm:$0xf] %vm878_vm13, %v841_v28  ;;  %v1446_v28 = vld [vmem:[#allocation2 + $0x20] sm:$0x1] }
 0x101   : > { %906 = vst.msk [vmem:[#allocation3 + $0x6c] sm:$0xf] %vm878_vm13, %v837_v29  ;;  %v1280_v29 = vld [vmem:[#allocation2 + $0xc4] sm:$0xf] }
 0x104   : > { %1333 = vrot.lane.b32.xlu1 %v1260_v30, %s3705_s23  ;;  %1317 = vrot.lane.b32.xlu2 %v1252_v4, %s3705_s23  ;;  %v1444_v30 = vld [vmem:[#allocation2 + $0x18] sm:$0xe]  ;;  %v1544_v4 = vrot.slane %v1542_v27, 4 }
 0x106   : > { %1331 = vrot.lane.b32.xlu0 %v1259_v16, %s3705_s23  ;;  %v845_v34 = vpop.permute.xlu1 %844  ;;  %v1123_v35 = vpop.permute.xlu2 %1122  ;;  %v1545_v16 = vrot.slane %v1446_v28, 5 }
 0x107   : > { %910 = vst.msk [vmem:[#allocation3 + $0x7c] sm:$0xf] %vm878_vm13, %v845_v34 }
 0x108   : > { %v843_v12 = vpop.permute.xlu0 %842  ;;  %1219 = vst.msk [vmem:[#allocation3] sm:$0xf] %vm1218_vm14, %v1123_v35 }
 0x109   : > { %909 = vst.msk [vmem:[#allocation3 + $0x78] sm:$0xf] %vm878_vm13, %v843_v12  ;;  %v3492_v12 = vrot.slane %v1444_v30, 9 }
 0x10c   : > { %1339 = vrot.lane.b32.xlu1 %v1263_v33, %s3705_s23  ;;  %1323 = vrot.lane.b32.xlu2 %v1255_v9, %s3705_s23  ;;  %v4471_v9 = vld [vmem:[#allocation2 + $0x28] sm:$0xf] }
 0x10d   : > { %v1549_v42 = vrot.slane %v4471_v9, 5 }
 0x10e   : > { %1337 = vrot.lane.b32.xlu0 %v1262_v38, %s3705_s23  ;;  %v1127_v40 = vpop.permute.xlu1 %1126  ;;  %v1129_v41 = vpop.permute.xlu2 %1128  ;;  %v1546_v38 = vsel %vm3760_vm3, %v1544_v4, %v1545_v16 }
 0x10f   : > { %1221 = vst.msk [vmem:[#allocation3 + $0x8] sm:$0xf] %vm1218_vm14, %v1127_v40  ;;  %v1276_v40 = vld [vmem:[#allocation2 + $0xac] sm:$0xf]  ;;  %v1551_v52 = vrot.slane %v1549_v42, 4 }
 0x110   : > { %v1125_v44 = vpop.permute.xlu0 %1124  ;;  %1222 = vst.msk [vmem:[#allocation3 + $0xc] sm:$0xf] %vm1218_vm14, %v1129_v41  ;;  %v1450_v41 = vld [vmem:[#allocation2 + $0x30] sm:$0xe] }
 0x111   : > { %1220 = vst.msk [vmem:[#allocation3 + $0x4] sm:$0xf] %vm1218_vm14, %v1125_v44  ;;  %v4476_v44 = vld [vmem:[#allocation2 + $0x34] sm:$0xf]  ;;  %v3494_v31 = vrot.slane %v1450_v41, 9 }
 0x112   : > { %v4540_v41 = vld [vmem:[#allocation2 + $0x7c] sm:$0xf] }
 0x114   : > { %1345 = vrot.lane.b32.xlu1 %v1266_v37, %s3705_s23  ;;  %1329 = vrot.lane.b32.xlu2 %v1258_v45, %s3705_s23  ;;  %v1543_v37 = vsel %vm3760_vm3, %v3492_v12, %v1542_v27  ;;  %v1449_v45 = vld [vmem:[#allocation2 + $0x2c] sm:$0x1]  ;;  %v1462_v27 = vld [vmem:[#allocation2 + $0x60] sm:$0xe] }
 0x115   : > { %v1552_v55 = vrot.slane %v1449_v45, 5  ;;  %v1467_v45 = vld [vmem:[#allocation2 + $0x74] sm:$0x1] }
 0x116   : > { %1343 = vrot.lane.b32.xlu0 %v1265_v46, %s3705_s23  ;;  %v1133_v54 = vpop.permute.xlu1 %1132  ;;  %v1135_v39 = vpop.permute.xlu2 %1134  ;;  %v1556_v46 = vrot.slane %v4476_v44, 5  ;;  %v1456_v44 = vld [vmem:[#allocation2 + $0x48] sm:$0xe] }
 0x117   : > { %1224 = vst.msk [vmem:[#allocation3 + $0x14] sm:$0xf] %vm1218_vm14, %v1133_v54 }
 0x118   : > { %v1131_v43 = vpop.permute.xlu0 %1130  ;;  %1225 = vst.msk [vmem:[#allocation3 + $0x18] sm:$0xf] %vm1218_vm14, %v1135_v39  ;;  %v1557_v39 = vsel %vm3760_vm3, %v3494_v31, %v1556_v46  ;;  %v1558_v30 = vrot.slane %v1556_v46, 4  ;;  %v1598_v46 = vrot.slane %v4540_v41, 5 }
 0x119   : > { %1223 = vst.msk [vmem:[#allocation3 + $0x10] sm:$0xf] %vm1218_vm14, %v1131_v43  ;;  %v1563_v43 = vrot.slane %v1454_v50, 5 }
 0x11b   : > { %v1565_v61 = vrot.slane %v1563_v43, 4 }
 0x11c   : > { %1351 = vrot.lane.b32.xlu1 %v1269_v53, %s3705_s23  ;;  %1335 = vrot.lane.b32.xlu2 %v1261_v58, %s3705_s23  ;;  %v1455_v53 = vld [vmem:[#allocation2 + $0x44] sm:$0x1]  ;;  %v1553_v58 = vsel %vm3760_vm3, %v1551_v52, %v1552_v55  ;;  %v1472_v52 = vld [vmem:[#allocation2 + $0x88] sm:$0xf] }
 0x11e   : > { %1349 = vrot.lane.b32.xlu0 %v1268_v59, %s3705_s23  ;;  %v1139_v48 = vpop.permute.xlu1 %1138  ;;  %v1141_v56 = vpop.permute.xlu2 %1140  ;;  %v1453_v59 = vld [vmem:[#allocation2 + $0x3c] sm:$0xe] }
 0x11f   : > { %1227 = vst.msk [vmem:[#allocation3 + $0x20] sm:$0xf] %vm1218_vm14, %v1139_v48  ;;  %v1566_v48 = vrot.slane %v1455_v53, 5  ;;  %v1605_v53 = vrot.slane %v1472_v52, 5 }
 0x120   : > { %v1137_v63 = vpop.permute.xlu0 %1136  ;;  %1228 = vst.msk [vmem:[#allocation3 + $0x24] sm:$0xf] %vm1218_vm14, %v1141_v56 }
 0x121   : > { %1226 = vst.msk [vmem:[#allocation3 + $0x1c] sm:$0xf] %vm1218_vm14, %v1137_v63 }
 0x124   : > { %1357 = vrot.lane.b32.xlu1 %v1272_v57, %s3705_s23  ;;  %1341 = vrot.lane.b32.xlu2 %v1264_v60, %s3705_s23  ;;  %v3495_v57 = vrot.slane %v1453_v59, 9  ;;  %v1461_v59 = vld [vmem:[#allocation2 + $0x5c] sm:$0x1] }
 0x126   : > { %1355 = vrot.lane.b32.xlu0 %v1271_v2, %s3705_s23  ;;  %v1145_v6 = vpop.permute.xlu1 %1144  ;;  %v1147_v7 = vpop.permute.xlu2 %1146  ;;  %v4499_v2 = vld [vmem:[#allocation2 + $0x4c] sm:$0xf] }
 0x127   : > { %1230 = vst.msk [vmem:[#allocation3 + $0x2c] sm:$0xf] %vm1218_vm14, %v1145_v6  ;;  %v1567_v6 = vsel %vm3760_vm3, %v1565_v61, %v1566_v48  ;;  %v1570_v18 = vrot.slane %v4499_v2, 5  ;;  %v1471_v48 = vld [vmem:[#allocation2 + $0x84] sm:$0xe] }
 0x128   : > { %v1143_v10 = vpop.permute.xlu0 %1142  ;;  %1231 = vst.msk [vmem:[#allocation3 + $0x30] sm:$0xf] %vm1218_vm14, %v1147_v7  ;;  %v1282_v7 = vld [vmem:[#allocation2 + $0xd0] sm:$0xf] }
 0x129   : > { %1229 = vst.msk [vmem:[#allocation3 + $0x28] sm:$0xf] %vm1218_vm14, %v1143_v10  ;;  %v1459_v10 = vld [vmem:[#allocation2 + $0x54] sm:$0xe] }
 0x12a   : > { %v3497_v20 = vrot.slane %v1459_v10, 9 }
 0x12c   : > { %1363 = vrot.lane.b32.xlu1 %v1275_v11, %s3705_s23  ;;  %1347 = vrot.lane.b32.xlu2 %v1267_v13, %s3705_s23  ;;  %v4504_v11 = vld [vmem:[#allocation2 + $0x58] sm:$0xf]  ;;  %v1447_v13 = vld [vmem:[#allocation2 + $0x24] sm:$0xe] }
 0x12e   : > { %1361 = vrot.lane.b32.xlu0 %v1274_v15, %s3705_s23  ;;  %v1151_v0 = vpop.permute.xlu1 %1150  ;;  %v1153_v14 = vpop.permute.xlu2 %1152  ;;  %v1564_v15 = vsel %vm3760_vm3, %v3495_v57, %v1563_v43 }
 0x12f   : > { %1233 = vst.msk [vmem:[#allocation3 + $0x38] sm:$0xf] %vm1218_vm14, %v1151_v0  ;;  %v1577_v0 = vrot.slane %v4504_v11, 5 }
 0x130   : > { %v1149_v17 = vpop.permute.xlu0 %1148  ;;  %1234 = vst.msk [vmem:[#allocation3 + $0x3c] sm:$0xf] %vm1218_vm14, %v1153_v14  ;;  %v3493_v14 = vrot.slane %v1447_v13, 9  ;;  %v4571_v13 = vld [vmem:[#allocation2 + $0x94] sm:$0xf] }
 0x131   : > { %1232 = vst.msk [vmem:[#allocation3 + $0x34] sm:$0xf] %vm1218_vm14, %v1149_v17  ;;  %v1579_v57 = vrot.slane %v1577_v0, 4 }
 0x132   : > { %v1550_v32 = vsel %vm3760_vm3, %v3493_v14, %v1549_v42  ;;  %v1612_v14 = vrot.slane %v4571_v13, 5 }
 0x134   : > { %1369 = vrot.lane.b32.xlu1 %v1278_v62, %s3705_s23  ;;  %1353 = vrot.lane.b32.xlu2 %v1270_v21, %s3705_s23  ;;  %v1463_v62 = vld [vmem:[#allocation2 + $0x64] sm:$0xf]  ;;  %v1572_v21 = vrot.slane %v1570_v18, 4 }
 0x135   : > { %v1584_v1 = vrot.slane %v1463_v62, 5 }
 0x136   : > { %1367 = vrot.lane.b32.xlu0 %v1277_v51, %s3705_s23  ;;  %v1157_v23 = vpop.permute.xlu1 %1156  ;;  %v1159_v24 = vpop.permute.xlu2 %1158  ;;  %v1573_v51 = vrot.slane %v1458_v19, 5  ;;  %v4578_v19 = vld [vmem:[#allocation2 + $0xa0] sm:$0xf] }
 0x137   : > { %1236 = vst.msk [vmem:[#allocation3 + $0x44] sm:$0xf] %vm1218_vm14, %v1157_v23  ;;  %v1586_v28 = vrot.slane %v1584_v1, 4  ;;  %v1619_v62 = vrot.slane %v4578_v19, 5 }
 0x138   : > { %v1155_v8 = vpop.permute.xlu0 %1154  ;;  %1237 = vst.msk [vmem:[#allocation3 + $0x48] sm:$0xf] %vm1218_vm14, %v1159_v24  ;;  %v1578_v24 = vsel %vm3760_vm3, %v3497_v20, %v1577_v0  ;;  %v1465_v20 = vld [vmem:[#allocation2 + $0x6c] sm:$0xe] }
 0x139   : > { %1235 = vst.msk [vmem:[#allocation3 + $0x40] sm:$0xf] %vm1218_vm14, %v1155_v8  ;;  %v1464_v8 = vld [vmem:[#allocation2 + $0x68] sm:$0x1] }
 0x13c   : > { %1375 = vrot.lane.b32.xlu1 %v1281_v25, %s3705_s23  ;;  %1359 = vrot.lane.b32.xlu2 %v1273_v26, %s3705_s23  ;;  %v1452_v25 = vld [vmem:[#allocation2 + $0x38] sm:$0x1]  ;;  %v1574_v26 = vsel %vm3760_vm3, %v1572_v21, %v1573_v51  ;;  %v3499_v21 = vrot.slane %v1465_v20, 9  ;;  %v4647_v20 = vld [vmem:[#allocation2 + $0x1c] sm:$0xf] }
 0x13d   : > { %v1559_v4 = vrot.slane %v1452_v25, 5 }
 0x13e   : > { %1373 = vrot.lane.b32.xlu0 %v1280_v29, %s3705_s23  ;;  %v1163_v34 = vpop.permute.xlu1 %1162  ;;  %v1165_v35 = vpop.permute.xlu2 %1164  ;;  %v1587_v29 = vrot.slane %v1464_v8, 5 }
 0x13f   : > { %1239 = vst.msk [vmem:[#allocation3 + $0x50] sm:$0xf] %vm1218_vm14, %v1163_v34 }
 0x140   : > { %v1161_v33 = vpop.permute.xlu0 %1160  ;;  %1240 = vst.msk [vmem:[#allocation3 + $0x54] sm:$0xf] %vm1218_vm14, %v1165_v35  ;;  %v3498_v35 = vrot.slane %v1462_v27, 9  ;;  %v1588_v9 = vsel %vm3760_vm3, %v1586_v28, %v1587_v29  ;;  %v1482_v28 = vld [vmem:[#allocation2 + $0xb0] sm:$0x1] }
 0x141   : > { %1238 = vst.msk [vmem:[#allocation3 + $0x4c] sm:$0xf] %vm1218_vm14, %v1161_v33  ;;  %v4533_v33 = vld [vmem:[#allocation2 + $0x70] sm:$0xf]  ;;  %v1470_v29 = vld [vmem:[#allocation2 + $0x80] sm:$0x1] }
 0x142   : > { %v1591_v42 = vrot.slane %v4533_v33, 5 }
 0x144   : > { %1654 = vrot.lane.b32.xlu1 %v1546_v38, %s3706_s24  ;;  %1365 = vrot.lane.b32.xlu2 %v1276_v40, %s3705_s23  ;;  %v1560_v38 = vsel %vm3760_vm3, %v1558_v30, %v1559_v4  ;;  %v1468_v40 = vld [vmem:[#allocation2 + $0x78] sm:$0xe]  ;;  %v1593_v55 = vrot.slane %v1591_v42, 4  ;;  %v1480_v4 = vld [vmem:[#allocation2 + $0xa8] sm:$0xe] }
 0x145   : > { %v3500_v31 = vrot.slane %v1468_v40, 9 }
 0x146   : > { %1652 = vrot.lane.b32.xlu0 %v1543_v37, %s3706_s24  ;;  %v1169_v47 = vpop.permute.xlu1 %1168  ;;  %v1171_v49 = vpop.permute.xlu2 %1170  ;;  %v1585_v37 = vsel %vm3760_vm3, %v3498_v35, %v1584_v1  ;;  %v1600_v35 = vrot.slane %v1598_v46, 4 }
 0x147   : > { %1242 = vst.msk [vmem:[#allocation3 + $0x5c] sm:$0xf] %vm1218_vm14, %v1169_v47  ;;  %v3496_v47 = vrot.slane %v1456_v44, 9  ;;  %v4609_v44 = vld [vmem:[#allocation2 + $0xb8] sm:$0xf] }
 0x148   : > { %v1167_v54 = vpop.permute.xlu0 %1166  ;;  %1243 = vst.msk [vmem:[#allocation3 + $0x60] sm:$0xf] %vm1218_vm14, %v1171_v49 }
 0x149   : > { %1241 = vst.msk [vmem:[#allocation3 + $0x58] sm:$0xf] %vm1218_vm14, %v1167_v54  ;;  %v1594_v54 = vrot.slane %v1467_v45, 5  ;;  %v1571_v43 = vsel %vm3760_vm3, %v3496_v47, %v1570_v18  ;;  %v1477_v18 = vld [vmem:[#allocation2 + $0x9c] sm:$0xe]  ;;  %v1633_v47 = vrot.slane %v4609_v44, 5 }
 0x14a   : > { %v4616_v45 = vld [vmem:[#allocation2 + $0xc4] sm:$0xf] }
 0x14b   : > { %v1595_v61 = vsel %vm3760_vm3, %v1593_v55, %v1594_v54  ;;  %v1640_v52 = vrot.slane %v4616_v45, 5 }
 0x14c   : > { %1660 = vrot.lane.b32.xlu1 %v1557_v39, %s3706_s24  ;;  %1371 = vrot.lane.b32.xlu2 %v1279_v22, %s3705_s23  ;;  %v1599_v22 = vsel %vm3760_vm3, %v3500_v31, %v1598_v46  ;;  %v1474_v31 = vld [vmem:[#allocation2 + $0x90] sm:$0xe] }
 0x14d   : > { %v3502_v55 = vrot.slane %v1474_v31, 9  ;;  %v4685_v31 = vld [vmem:[#allocation2 + $0x40] sm:$0xf] }
 0x14e   : > { %1658 = vrot.lane.b32.xlu0 %v1553_v58, %s3706_s24  ;;  %v1175_v56 = vpop.permute.xlu1 %1174  ;;  %v1177_v63 = vpop.permute.xlu2 %1176  ;;  %v1473_v58 = vld [vmem:[#allocation2 + $0x8c] sm:$0x1] }
 0x14f   : > { %1245 = vst.msk [vmem:[#allocation3 + $0x68] sm:$0xf] %vm1218_vm14, %v1175_v56  ;;  %v1607_v56 = vrot.slane %v1605_v53, 4 }
 0x150   : > { %v1173_v60 = vpop.permute.xlu0 %1172  ;;  %1246 = vst.msk [vmem:[#allocation3 + $0x6c] sm:$0xf] %vm1218_vm14, %v1177_v63  ;;  %v1608_v63 = vrot.slane %v1473_v58, 5 }
 0x151   : > { %1244 = vst.msk [vmem:[#allocation3 + $0x64] sm:$0xf] %vm1218_vm14, %v1173_v60  ;;  %v1580_v60 = vrot.slane %v1461_v59, 5 }
 0x153   : > { %v1581_v11 = vsel %vm3760_vm3, %v1579_v57, %v1580_v60  ;;  %v1489_v60 = vld [vmem:[#allocation2 + $0xcc] sm:$0xe] }
 0x154   : > { %1666 = vrot.lane.b32.xlu1 %v1567_v6, %s3706_s24  ;;  %1377 = vrot.lane.b32.xlu2 %v1282_v7, %s3705_s23  ;;  %v3501_v7 = vrot.slane %v1471_v48, 9 }
 0x156   : > { %1664 = vrot.lane.b32.xlu0 %v1564_v15, %s3706_s24  ;;  %v1181_v5 = vpop.permute.xlu1 %1180  ;;  %v1183_v17 = vpop.permute.xlu2 %1182  ;;  %v1609_v15 = vsel %vm3760_vm3, %v1607_v56, %v1608_v63  ;;  %v1606_v0 = vsel %vm3760_vm3, %v3501_v7, %v1605_v53  ;;  %v1491_v56 = vld [vmem:[#allocation2 + $0xd4] sm:$0x1]  ;;  %v1479_v63 = vld [vmem:[#allocation2 + $0xa4] sm:$0x1]  ;;  %v1621_v7 = vrot.slane %v1619_v62, 4 }
 0x157   : > { %1248 = vst.msk [vmem:[#allocation3 + $0x74] sm:$0xf] %vm1218_vm14, %v1181_v5  ;;  %v1476_v5 = vld [vmem:[#allocation2 + $0x98] sm:$0x1] }
 0x158   : > { %v1179_v23 = vpop.permute.xlu0 %1178  ;;  %1249 = vst.msk [vmem:[#allocation3 + $0x78] sm:$0xf] %vm1218_vm14, %v1183_v17  ;;  %v3503_v17 = vrot.slane %v1477_v18, 9  ;;  %v1615_v1 = vrot.slane %v1476_v5, 5  ;;  %v4654_v5 = vld [vmem:[#allocation2 + $0x28] sm:$0xf] }
 0x159   : > { %1247 = vst.msk [vmem:[#allocation3 + $0x70] sm:$0xf] %vm1218_vm14, %v1179_v23 }
 0x15a   : > { %v1620_v25 = vsel %vm3760_vm3, %v3503_v17, %v1619_v62  ;;  %v1483_v17 = vld [vmem:[#allocation2 + $0xb4] sm:$0xe] }
 0x15c   : > { %1672 = vrot.lane.b32.xlu1 %v1578_v24, %s3706_s24  ;;  %1656 = vrot.lane.b32.xlu2 %v1550_v32, %s3706_s24  ;;  %v1481_v24 = vld [vmem:[#allocation2 + $0xac] sm:$0xf]  ;;  %v1614_v32 = vrot.slane %v1612_v14, 4 }
 0x15d   : > { %v1626_v27 = vrot.slane %v1481_v24, 5  ;;  %v1886_v24 = vrot.slane %v4654_v5, 6 }
 0x15e   : > { %1670 = vrot.lane.b32.xlu0 %v1574_v26, %s3706_s24  ;;  %v1316_v16 = vpop.permute.xlu1 %1315  ;;  %v1318_v34 = vpop.permute.xlu2 %1317  ;;  %v1592_v26 = vsel %vm3760_vm3, %v3499_v21, %v1591_v42  ;;  %v1616_v30 = vsel %vm3760_vm3, %v1614_v32, %v1615_v1  ;;  %v1486_v42 = vld [vmem:[#allocation2 + $0xc0] sm:$0xe]  ;;  %v1879_v21 = vrot.slane %v4647_v20, 6  ;;  %v3505_v32 = vrot.slane %v1483_v17, 9  ;;  %v4723_v17 = vld [vmem:[#allocation2 + $0x64] sm:$0xf] }
 0x15f   : > { %1412 = vst.msk [vmem:[#allocation3] sm:$0xf] %vm1411_vm15, %v1316_v16  ;;  %v1628_v16 = vrot.slane %v1626_v27, 4 }
 0x160   : > { %v1185_v12 = vpop.permute.xlu0 %1184  ;;  %1413 = vst.msk [vmem:[#allocation3 + $0x4] sm:$0xf] %vm1411_vm15, %v1318_v34  ;;  %v1629_v34 = vrot.slane %v1482_v28, 5 }
 0x161   : > { %1250 = vst.msk [vmem:[#allocation3 + $0x7c] sm:$0xf] %vm1218_vm14, %v1185_v12  ;;  %v1601_v12 = vrot.slane %v1470_v29, 5 }
 0x163   : > { %v1602_v41 = vsel %vm3760_vm3, %v1600_v35, %v1601_v12  ;;  %v1787_v12 = vld [vmem:[#allocation2 + $0x30] sm:$0xc] }
 0x164   : > { %1678 = vrot.lane.b32.xlu1 %v1588_v9, %s3706_s24  ;;  %1662 = vrot.lane.b32.xlu2 %v1560_v38, %s3706_s24  ;;  %v3504_v38 = vrot.slane %v1480_v4, 9 }
 0x166   : > { %1676 = vrot.lane.b32.xlu0 %v1585_v37, %s3706_s24  ;;  %v1322_v49 = vpop.permute.xlu1 %1321  ;;  %v1324_v50 = vpop.permute.xlu2 %1323  ;;  %v1630_v37 = vsel %vm3760_vm3, %v1628_v16, %v1629_v34  ;;  %v1627_v46 = vsel %vm3760_vm3, %v3504_v38, %v1626_v27  ;;  %v1789_v16 = vld [vmem:[#allocation2 + $0x38] sm:$0x3]  ;;  %v1488_v34 = vld [vmem:[#allocation2 + $0xc8] sm:$0x1]  ;;  %v1642_v38 = vrot.slane %v1640_v52, 4 }
 0x167   : > { %1415 = vst.msk [vmem:[#allocation3 + $0xc] sm:$0xf] %vm1411_vm15, %v1322_v49  ;;  %v1485_v49 = vld [vmem:[#allocation2 + $0xbc] sm:$0x1] }
 0x168   : > { %v1320_v39 = vpop.permute.xlu0 %1319  ;;  %1416 = vst.msk [vmem:[#allocation3 + $0x10] sm:$0xf] %vm1411_vm15, %v1324_v50  ;;  %v3506_v50 = vrot.slane %v1486_v42, 9  ;;  %v1636_v53 = vrot.slane %v1485_v49, 5  ;;  %v4692_v49 = vld [vmem:[#allocation2 + $0x4c] sm:$0xf] }
 0x169   : > { %1414 = vst.msk [vmem:[#allocation3 + $0x8] sm:$0xf] %vm1411_vm15, %v1320_v39 }
 0x16a   : > { %v1641_v59 = vsel %vm3760_vm3, %v3506_v50, %v1640_v52  ;;  %v1781_v50 = vld [vmem:[#allocation2 + $0x18] sm:$0xc] }
 0x16c   : > { %1684 = vrot.lane.b32.xlu1 %v1599_v22, %s3706_s24  ;;  %1668 = vrot.lane.b32.xlu2 %v1571_v43, %s3706_s24  ;;  %v1490_v22 = vld [vmem:[#allocation2 + $0xd0] sm:$0xf]  ;;  %v1635_v43 = vrot.slane %v1633_v47, 4 }
 0x16d   : > { %v1647_v48 = vrot.slane %v1490_v22, 5  ;;  %v1907_v22 = vrot.slane %v4692_v49, 6 }
 0x16e   : > { %1682 = vrot.lane.b32.xlu0 %v1595_v61, %s3706_s24  ;;  %v1328_v2 = vpop.permute.xlu1 %1327  ;;  %v1330_v6 = vpop.permute.xlu2 %1329  ;;  %v1613_v61 = vsel %vm3760_vm3, %v3502_v55, %v1612_v14  ;;  %v1637_v57 = vsel %vm3760_vm3, %v1635_v43, %v1636_v53  ;;  %v1784_v14 = vld [vmem:[#allocation2 + $0x24] sm:$0xc]  ;;  %v1900_v55 = vrot.slane %v4685_v31, 6  ;;  %v3508_v43 = vrot.slane %v1781_v50, 10  ;;  %v4761_v50 = vld [vmem:[#allocation2 + $0x88] sm:$0xf] }
 0x16f   : > { %1418 = vst.msk [vmem:[#allocation3 + $0x18] sm:$0xf] %vm1411_vm15, %v1328_v2  ;;  %v1649_v2 = vrot.slane %v1647_v48, 4 }
 0x170   : > { %v1326_v10 = vpop.permute.xlu0 %1325  ;;  %1419 = vst.msk [vmem:[#allocation3 + $0x1c] sm:$0xf] %vm1411_vm15, %v1330_v6  ;;  %v1650_v6 = vrot.slane %v1491_v56, 5 }
 0x171   : > { %1417 = vst.msk [vmem:[#allocation3 + $0x14] sm:$0xf] %vm1411_vm15, %v1326_v10  ;;  %v1622_v10 = vrot.slane %v1479_v63, 5 }
 0x173   : > { %v1623_v19 = vsel %vm3760_vm3, %v1621_v7, %v1622_v10  ;;  %v1796_v10 = vld [vmem:[#allocation2 + $0x54] sm:$0xc] }
 0x174   : > { %1690 = vrot.lane.b32.xlu1 %v1609_v15, %s3706_s24  ;;  %1674 = vrot.lane.b32.xlu2 %v1581_v11, %s3706_s24  ;;  %v3507_v11 = vrot.slane %v1489_v60, 9 }
 0x176   : > { %1688 = vrot.lane.b32.xlu0 %v1606_v0, %s3706_s24  ;;  %v1334_v51 = vpop.permute.xlu1 %1333  ;;  %v1336_v23 = vpop.permute.xlu2 %1335  ;;  %v1651_v0 = vsel %vm3760_vm3, %v1649_v2, %v1650_v6  ;;  %v1648_v62 = vsel %vm3760_vm3, %v3507_v11, %v1647_v48  ;;  %v1798_v2 = vld [vmem:[#allocation2 + $0x5c] sm:$0x3]  ;;  %v1786_v6 = vld [vmem:[#allocation2 + $0x2c] sm:$0x3]  ;;  %v1888_v11 = vrot.slane %v1886_v24, 4 }
 0x177   : > { %1421 = vst.msk [vmem:[#allocation3 + $0x24] sm:$0xf] %vm1411_vm15, %v1334_v51  ;;  %v1783_v51 = vld [vmem:[#allocation2 + $0x20] sm:$0x3] }
 0x178   : > { %v1332_v8 = vpop.permute.xlu0 %1331  ;;  %1422 = vst.msk [vmem:[#allocation3 + $0x28] sm:$0xf] %vm1411_vm15, %v1336_v23  ;;  %v3509_v23 = vrot.slane %v1784_v14, 10  ;;  %v1882_v27 = vrot.slane %v1783_v51, 6  ;;  %v4730_v51 = vld [vmem:[#allocation2 + $0x70] sm:$0xf] }
 0x179   : > { %1420 = vst.msk [vmem:[#allocation3 + $0x20] sm:$0xf] %vm1411_vm15, %v1332_v8 }
 0x17a   : > { %v1887_v29 = vsel %vm4169_vm12, %v3509_v23, %v1886_v24  ;;  %v1790_v23 = vld [vmem:[#allocation2 + $0x3c] sm:$0xc] }
 0x17c   : > { %1696 = vrot.lane.b32.xlu1 %v1620_v25, %s3706_s24  ;;  %1680 = vrot.lane.b32.xlu2 %v1592_v26, %s3706_s24  ;;  %v1788_v25 = vld [vmem:[#allocation2 + $0x34] sm:$0xf]  ;;  %v1881_v26 = vrot.slane %v1879_v21, 4 }
 0x17d   : > { %v1893_v4 = vrot.slane %v1788_v25, 6  ;;  %v1928_v25 = vrot.slane %v4730_v51, 6 }
 0x17e   : > { %1694 = vrot.lane.b32.xlu0 %v1616_v30, %s3706_s24  ;;  %v1340_v33 = vpop.permute.xlu1 %1339  ;;  %v1342_v9 = vpop.permute.xlu2 %1341  ;;  %v1634_v30 = vsel %vm3760_vm3, %v3505_v32, %v1633_v47  ;;  %v1883_v35 = vsel %vm4169_vm12, %v1881_v26, %v1882_v27  ;;  %v1793_v47 = vld [vmem:[#allocation2 + $0x48] sm:$0xc]  ;;  %v1921_v32 = vrot.slane %v4723_v17, 6  ;;  %v3511_v26 = vrot.slane %v1790_v23, 10  ;;  %v4799_v23 = vld [vmem:[#allocation2 + $0xac] sm:$0xf] }
 0x17f   : > { %1424 = vst.msk [vmem:[#allocation3 + $0x30] sm:$0xf] %vm1411_vm15, %v1340_v33  ;;  %v1895_v33 = vrot.slane %v1893_v4, 4 }
 0x180   : > { %v1338_v40 = vpop.permute.xlu0 %1337  ;;  %1425 = vst.msk [vmem:[#allocation3 + $0x34] sm:$0xf] %vm1411_vm15, %v1342_v9  ;;  %v1896_v9 = vrot.slane %v1789_v16, 6 }
 0x181   : > { %1423 = vst.msk [vmem:[#allocation3 + $0x2c] sm:$0xf] %vm1411_vm15, %v1338_v40  ;;  %v1643_v40 = vrot.slane %v1488_v34, 5 }
 0x183   : > { %v1644_v45 = vsel %vm3760_vm3, %v1642_v38, %v1643_v40  ;;  %v1805_v40 = vld [vmem:[#allocation2 + $0x78] sm:$0xc] }
 0x184   : > { %1702 = vrot.lane.b32.xlu1 %v1630_v37, %s3706_s24  ;;  %1686 = vrot.lane.b32.xlu2 %v1602_v41, %s3706_s24  ;;  %v3510_v41 = vrot.slane %v1787_v12, 10 }
 0x186   : > { %1700 = vrot.lane.b32.xlu0 %v1627_v46, %s3706_s24  ;;  %v1346_v54 = vpop.permute.xlu1 %1345  ;;  %v1348_v39 = vpop.permute.xlu2 %1347  ;;  %v1897_v46 = vsel %vm4169_vm12, %v1895_v33, %v1896_v9  ;;  %v1894_v52 = vsel %vm4169_vm12, %v3510_v41, %v1893_v4  ;;  %v1807_v33 = vld [vmem:[#allocation2 + $0x80] sm:$0x3]  ;;  %v1795_v9 = vld [vmem:[#allocation2 + $0x50] sm:$0x3]  ;;  %v1909_v41 = vrot.slane %v1907_v22, 4 }
 0x187   : > { %1427 = vst.msk [vmem:[#allocation3 + $0x3c] sm:$0xf] %vm1411_vm15, %v1346_v54  ;;  %v1792_v54 = vld [vmem:[#allocation2 + $0x44] sm:$0x3] }
 0x188   : > { %v1344_v58 = vpop.permute.xlu0 %1343  ;;  %1428 = vst.msk [vmem:[#allocation3 + $0x40] sm:$0xf] %vm1411_vm15, %v1348_v39  ;;  %v3512_v39 = vrot.slane %v1793_v47, 10  ;;  %v1903_v48 = vrot.slane %v1792_v54, 6  ;;  %v4768_v54 = vld [vmem:[#allocation2 + $0x94] sm:$0xf] }
 0x189   : > { %1426 = vst.msk [vmem:[#allocation3 + $0x38] sm:$0xf] %vm1411_vm15, %v1344_v58 }
 0x18a   : > { %v1908_v63 = vsel %vm4169_vm12, %v3512_v39, %v1907_v22  ;;  %v1799_v39 = vld [vmem:[#allocation2 + $0x60] sm:$0xc] }
 0x18c   : > { %1708 = vrot.lane.b32.xlu1 %v1641_v59, %s3706_s24  ;;  %1692 = vrot.lane.b32.xlu2 %v1613_v61, %s3706_s24  ;;  %v1797_v59 = vld [vmem:[#allocation2 + $0x58] sm:$0xf]  ;;  %v1902_v61 = vrot.slane %v1900_v55, 4 }
 0x18d   : > { %v1914_v60 = vrot.slane %v1797_v59, 6  ;;  %v1949_v59 = vrot.slane %v4768_v54, 6 }
 0x18e   : > { %1706 = vrot.lane.b32.xlu0 %v1637_v57, %s3706_s24  ;;  %v1352_v13 = vpop.permute.xlu1 %1351  ;;  %v1354_v15 = vpop.permute.xlu2 %1353  ;;  %v1880_v57 = vsel %vm4169_vm12, %v3508_v43, %v1879_v21  ;;  %v1904_v7 = vsel %vm4169_vm12, %v1902_v61, %v1903_v48  ;;  %v1802_v21 = vld [vmem:[#allocation2 + $0x6c] sm:$0xc]  ;;  %v1942_v43 = vrot.slane %v4761_v50, 6  ;;  %v3514_v61 = vrot.slane %v1799_v39, 10  ;;  %v1827_v39 = vld [vmem:[#allocation2 + $0xd0] sm:$0xf] }
 0x18f   : > { %1430 = vst.msk [vmem:[#allocation3 + $0x48] sm:$0xf] %vm1411_vm15, %v1352_v13  ;;  %v1916_v13 = vrot.slane %v1914_v60, 4 }
 0x190   : > { %v1350_v18 = vpop.permute.xlu0 %1349  ;;  %1431 = vst.msk [vmem:[#allocation3 + $0x4c] sm:$0xf] %vm1411_vm15, %v1354_v15  ;;  %v1917_v15 = vrot.slane %v1798_v2, 6 }
 0x191   : > { %1429 = vst.msk [vmem:[#allocation3 + $0x44] sm:$0xf] %vm1411_vm15, %v1350_v18  ;;  %v1889_v18 = vrot.slane %v1786_v6, 6 }
 0x193   : > { %v1890_v5 = vsel %vm4169_vm12, %v1888_v11, %v1889_v18  ;;  %v1814_v18 = vld [vmem:[#allocation2 + $0x9c] sm:$0xc] }
 0x194   : > { %1714 = vrot.lane.b32.xlu1 %v1651_v0, %s3706_s24  ;;  %1698 = vrot.lane.b32.xlu2 %v1623_v19, %s3706_s24  ;;  %v3513_v19 = vrot.slane %v1796_v10, 10 }
 0x196   : > { %1712 = vrot.lane.b32.xlu0 %v1648_v62, %s3706_s24  ;;  %v1358_v1 = vpop.permute.xlu1 %1357  ;;  %v1360_v8 = vpop.permute.xlu2 %1359  ;;  %v1918_v62 = vsel %vm4169_vm12, %v1916_v13, %v1917_v15  ;;  %v1915_v24 = vsel %vm4169_vm12, %v3513_v19, %v1914_v60  ;;  %v1816_v13 = vld [vmem:[#allocation2 + $0xa4] sm:$0x3]  ;;  %v1804_v15 = vld [vmem:[#allocation2 + $0x74] sm:$0x3]  ;;  %v1930_v19 = vrot.slane %v1928_v25, 4 }
 0x197   : > { %1433 = vst.msk [vmem:[#allocation3 + $0x54] sm:$0xf] %vm1411_vm15, %v1358_v1  ;;  %v1801_v1 = vld [vmem:[#allocation2 + $0x68] sm:$0x3] }
 0x198   : > { %v1356_v28 = vpop.permute.xlu0 %1355  ;;  %1434 = vst.msk [vmem:[#allocation3 + $0x58] sm:$0xf] %vm1411_vm15, %v1360_v8  ;;  %v3515_v8 = vrot.slane %v1802_v21, 10  ;;  %v1924_v4 = vrot.slane %v1801_v1, 6  ;;  %v4806_v1 = vld [vmem:[#allocation2 + $0xb8] sm:$0xf] }
 0x199   : > { %1432 = vst.msk [vmem:[#allocation3 + $0x50] sm:$0xf] %vm1411_vm15, %v1356_v28 }
 0x19a   : > { %v1929_v34 = vsel %vm4169_vm12, %v3515_v8, %v1928_v25  ;;  %v1808_v8 = vld [vmem:[#allocation2 + $0x84] sm:$0xc] }
 0x19c   : > { %1993 = vrot.lane.b32.xlu1 %v1887_v29, %s3707_s25  ;;  %1704 = vrot.lane.b32.xlu2 %v1634_v30, %s3706_s24  ;;  %v1806_v29 = vld [vmem:[#allocation2 + $0x7c] sm:$0xf]  ;;  %v1923_v30 = vrot.slane %v1921_v32, 4 }
 0x19d   : > { %v1935_v12 = vrot.slane %v1806_v29, 6  ;;  %v1970_v29 = vrot.slane %v4806_v1, 6 }
 0x19e   : > { %1991 = vrot.lane.b32.xlu0 %v1883_v35, %s3707_s25  ;;  %v1364_v44 = vpop.permute.xlu1 %1363  ;;  %v1366_v37 = vpop.permute.xlu2 %1365  ;;  %v1901_v35 = vsel %vm4169_vm12, %v3511_v26, %v1900_v55  ;;  %v1925_v38 = vsel %vm4169_vm12, %v1923_v30, %v1924_v4  ;;  %v1811_v55 = vld [vmem:[#allocation2 + $0x90] sm:$0xc]  ;;  %v1963_v26 = vrot.slane %v4799_v23, 6  ;;  %v3517_v30 = vrot.slane %v1808_v8, 10 }
 0x19f   : > { %1436 = vst.msk [vmem:[#allocation3 + $0x60] sm:$0xf] %vm1411_vm15, %v1364_v44  ;;  %v1937_v44 = vrot.slane %v1935_v12, 4 }
 0x1a0   : > { %v1362_v42 = vpop.permute.xlu0 %1361  ;;  %1437 = vst.msk [vmem:[#allocation3 + $0x64] sm:$0xf] %vm1411_vm15, %v1366_v37  ;;  %v1938_v37 = vrot.slane %v1807_v33, 6 }
 0x1a1   : > { %1435 = vst.msk [vmem:[#allocation3 + $0x5c] sm:$0xf] %vm1411_vm15, %v1362_v42  ;;  %v1910_v42 = vrot.slane %v1795_v9, 6 }
 0x1a3   : > { %v1911_v49 = vsel %vm4169_vm12, %v1909_v41, %v1910_v42  ;;  %v1823_v42 = vld [vmem:[#allocation2 + $0xc0] sm:$0xc] }
 0x1a4   : > { %1999 = vrot.lane.b32.xlu1 %v1897_v46, %s3707_s25  ;;  %1710 = vrot.lane.b32.xlu2 %v1644_v45, %s3706_s24  ;;  %v3516_v45 = vrot.slane %v1805_v40, 10 }
 0x1a6   : > { %1997 = vrot.lane.b32.xlu0 %v1894_v52, %s3707_s25  ;;  %v1370_v53 = vpop.permute.xlu1 %1369  ;;  %v1372_v58 = vpop.permute.xlu2 %1371  ;;  %v1939_v52 = vsel %vm4169_vm12, %v1937_v44, %v1938_v37  ;;  %v1936_v22 = vsel %vm4169_vm12, %v3516_v45, %v1935_v12  ;;  %v1825_v44 = vld [vmem:[#allocation2 + $0xc8] sm:$0x3]  ;;  %v1813_v37 = vld [vmem:[#allocation2 + $0x98] sm:$0x3]  ;;  %v1951_v45 = vrot.slane %v1949_v59, 4 }
 0x1a7   : > { %1439 = vst.msk [vmem:[#allocation3 + $0x6c] sm:$0xf] %vm1411_vm15, %v1370_v53  ;;  %v1810_v53 = vld [vmem:[#allocation2 + $0x8c] sm:$0x3] }
 0x1a8   : > { %v1368_v56 = vpop.permute.xlu0 %1367  ;;  %1440 = vst.msk [vmem:[#allocation3 + $0x70] sm:$0xf] %vm1411_vm15, %v1372_v58  ;;  %v3518_v58 = vrot.slane %v1811_v55, 10  ;;  %v1945_v60 = vrot.slane %v1810_v53, 6 }
 0x1a9   : > { %1438 = vst.msk [vmem:[#allocation3 + $0x68] sm:$0xf] %vm1411_vm15, %v1368_v56 }
 0x1aa   : > { %v1950_v6 = vsel %vm4169_vm12, %v3518_v58, %v1949_v59  ;;  %v1984_v58 = vrot.slane %v1827_v39, 6  ;;  %v1828_v59 = vld [vmem:[#allocation2 + $0xd4] sm:$0x3] }
 0x1ac   : > { %2005 = vrot.lane.b32.xlu1 %v1908_v63, %s3707_s25  ;;  %1989 = vrot.lane.b32.xlu2 %v1880_v57, %s3707_s25  ;;  %v1815_v63 = vld [vmem:[#allocation2 + $0xa0] sm:$0xf]  ;;  %v1944_v57 = vrot.slane %v1942_v43, 4 }
 0x1ad   : > { %v1956_v10 = vrot.slane %v1815_v63, 6  ;;  %v1986_v63 = vrot.slane %v1984_v58, 4 }
 0x1ae   : > { %2003 = vrot.lane.b32.xlu0 %v1904_v7, %s3707_s25  ;;  %v1376_v20 = vpop.permute.xlu1 %1375  ;;  %v1378_v0 = vpop.permute.xlu2 %1377  ;;  %v1922_v7 = vsel %vm4169_vm12, %v3514_v61, %v1921_v32  ;;  %v1946_v11 = vsel %vm4169_vm12, %v1944_v57, %v1945_v60  ;;  %v1820_v32 = vld [vmem:[#allocation2 + $0xb4] sm:$0xc]  ;;  %v1987_v57 = vrot.slane %v1828_v59, 6 }
 0x1af   : > { %1442 = vst.msk [vmem:[#allocation3 + $0x78] sm:$0xf] %vm1411_vm15, %v1376_v20  ;;  %v1958_v20 = vrot.slane %v1956_v10, 4 }
 0x1b0   : > { %v1374_v14 = vpop.permute.xlu0 %1373  ;;  %1443 = vst.msk [vmem:[#allocation3 + $0x7c] sm:$0xf] %vm1411_vm15, %v1378_v0  ;;  %v1959_v0 = vrot.slane %v1816_v13, 6  ;;  %v1972_v13 = vrot.slane %v1970_v29, 4 }
 0x1b1   : > { %1441 = vst.msk [vmem:[#allocation3 + $0x74] sm:$0xf] %vm1411_vm15, %v1374_v14  ;;  %v1931_v14 = vrot.slane %v1804_v15, 6 }
 0x1b3   : > { %v1932_v51 = vsel %vm4169_vm12, %v1930_v19, %v1931_v14  ;;  %v1826_v14 = vld [vmem:[#allocation2 + $0xcc] sm:$0xc] }
 0x1b4   : > { %2011 = vrot.lane.b32.xlu1 %v1918_v62, %s3707_s25  ;;  %1995 = vrot.lane.b32.xlu2 %v1890_v5, %s3707_s25  ;;  %v3519_v5 = vrot.slane %v1814_v18, 10 }
 0x1b6   : > { %2009 = vrot.lane.b32.xlu0 %v1915_v24, %s3707_s25  ;;  %v1655_v27 = vpop.permute.xlu1 %1654  ;;  %v1657_v28 = vpop.permute.xlu2 %1656  ;;  %v1960_v24 = vsel %vm4169_vm12, %v1958_v20, %v1959_v0  ;;  %v1957_v25 = vsel %vm4169_vm12, %v3519_v5, %v1956_v10  ;;  %v1988_v10 = vsel %vm4169_vm12, %v1986_v63, %v1987_v57  ;;  %v2122_v0 = vld [vmem:[#allocation2 + $0x40] sm:$0xf]  ;;  %v2675_v57 = vld [vmem:[#allocation2 + $0x98] sm:$0x3] }
 0x1b7   : > { %1750 = vst.msk [vmem:[#allocation3 + $0x4] sm:$0xf] %vm1748_vm0, %v1655_v27  ;;  %v1819_v27 = vld [vmem:[#allocation2 + $0xb0] sm:$0x3] }
 0x1b8   : > { %v1653_v16 = vpop.permute.xlu0 %1652  ;;  %1751 = vst.msk [vmem:[#allocation3 + $0x8] sm:$0xf] %vm1748_vm0, %v1657_v28  ;;  %v3521_v28 = vrot.slane %v1820_v32, 10  ;;  %v1966_v12 = vrot.slane %v1819_v27, 6  ;;  %v2124_v32 = vld [vmem:[#allocation2 + $0x4c] sm:$0xf] }
 0x1b9   : > { %1749 = vst.msk [vmem:[#allocation3] sm:$0xf] %vm1748_vm0, %v1653_v16  ;;  %v2120_v27 = vld [vmem:[#allocation2 + $0x34] sm:$0xf] }
 0x1ba   : > { %v1971_v9 = vsel %vm4169_vm12, %v3521_v28, %v1970_v29  ;;  %v2127_v28 = vld [vmem:[#allocation2 + $0x60] sm:$0xf] }
 0x1bc   : > { %2017 = vrot.lane.b32.xlu1 %v1929_v34, %s3707_s25  ;;  %2001 = vrot.lane.b32.xlu2 %v1901_v35, %s3707_s25  ;;  %v1824_v34 = vld [vmem:[#allocation2 + $0xc4] sm:$0xf]  ;;  %v1965_v35 = vrot.slane %v1963_v26, 4 }
 0x1bd   : > { %v1977_v40 = vrot.slane %v1824_v34, 6  ;;  %v2123_v34 = vld [vmem:[#allocation2 + $0x48] sm:$0xf] }
 0x1be   : > { %2015 = vrot.lane.b32.xlu0 %v1925_v38, %s3707_s25  ;;  %v1661_v31 = vpop.permute.xlu1 %1660  ;;  %v1663_v46 = vpop.permute.xlu2 %1662  ;;  %v1943_v38 = vsel %vm4169_vm12, %v3517_v30, %v1942_v43  ;;  %v1967_v41 = vsel %vm4169_vm12, %v1965_v35, %v1966_v12  ;;  %v1817_v43 = vld [vmem:[#allocation2 + $0xa8] sm:$0xc]  ;;  %v2130_v35 = vld [vmem:[#allocation2 + $0x70] sm:$0xf] }
 0x1bf   : > { %1753 = vst.msk [vmem:[#allocation3 + $0x10] sm:$0xf] %vm1748_vm0, %v1661_v31  ;;  %v1979_v31 = vrot.slane %v1977_v40, 4  ;;  %v3520_v61 = vrot.slane %v1817_v43, 10 }
 0x1c0   : > { %v1659_v47 = vpop.permute.xlu0 %1658  ;;  %1754 = vst.msk [vmem:[#allocation3 + $0x14] sm:$0xf] %vm1748_vm0, %v1663_v46  ;;  %v1980_v46 = vrot.slane %v1825_v44, 6  ;;  %v2133_v44 = vld [vmem:[#allocation2 + $0x84] sm:$0xf] }
 0x1c1   : > { %1752 = vst.msk [vmem:[#allocation3 + $0xc] sm:$0xf] %vm1748_vm0, %v1659_v47  ;;  %v1952_v47 = vrot.slane %v1813_v37, 6 }
 0x1c3   : > { %v1953_v54 = vsel %vm4169_vm12, %v1951_v45, %v1952_v47  ;;  %v2129_v45 = vld [vmem:[#allocation2 + $0x6c] sm:$0xf]  ;;  %v2348_v47 = vld [vmem:[#allocation2 + $0xc0] sm:$0xe] }
 0x1c4   : > { %2023 = vrot.lane.b32.xlu1 %v1939_v52, %s3707_s25  ;;  %2007 = vrot.lane.b32.xlu2 %v1911_v49, %s3707_s25  ;;  %v3522_v49 = vrot.slane %v1823_v42, 10  ;;  %v3536_v39 = vrot.slane %v2348_v47, 9  ;;  %v4950_v47 = vld [vmem:[#allocation2 + $0x64] sm:$0xf] }
 0x1c6   : > { %2021 = vrot.lane.b32.xlu0 %v1936_v22, %s3707_s25  ;;  %v1667_v48 = vpop.permute.xlu1 %1666  ;;  %v1669_v56 = vpop.permute.xlu2 %1668  ;;  %v1981_v22 = vsel %vm4169_vm12, %v1979_v31, %v1980_v46  ;;  %v1978_v53 = vsel %vm4169_vm12, %v3522_v49, %v1977_v40  ;;  %v2126_v40 = vld [vmem:[#allocation2 + $0x58] sm:$0xf]  ;;  %v4889_v31 = vld [vmem:[#allocation2 + $0x94] sm:$0xf]  ;;  %v2144_v46 = vld [vmem:[#allocation2 + $0xc4] sm:$0xf] }
 0x1c7   : > { %1756 = vst.msk [vmem:[#allocation3 + $0x1c] sm:$0xf] %vm1748_vm0, %v1667_v48  ;;  %v2466_v49 = vrot.slane %v4889_v31, 5 }
 0x1c8   : > { %v1665_v2 = vpop.permute.xlu0 %1664  ;;  %1757 = vst.msk [vmem:[#allocation3 + $0x20] sm:$0xf] %vm1748_vm0, %v1669_v56 }
 0x1c9   : > { %1755 = vst.msk [vmem:[#allocation3 + $0x18] sm:$0xf] %vm1748_vm0, %v1665_v2  ;;  %v2119_v2 = vld [vmem:[#allocation2 + $0x30] sm:$0xf] }
 0x1cc   : > { %2029 = vrot.lane.b32.xlu1 %v1950_v6, %s3707_s25  ;;  %2013 = vrot.lane.b32.xlu2 %v1922_v7, %s3707_s25  ;;  %v1964_v6 = vsel %vm4169_vm12, %v3520_v61, %v1963_v26  ;;  %v1822_v7 = vld [vmem:[#allocation2 + $0xbc] sm:$0x3]  ;;  %v2128_v26 = vld [vmem:[#allocation2 + $0x64] sm:$0xf] }
 0x1cd   : > { %v1973_v15 = vrot.slane %v1822_v7, 6  ;;  %v2806_v7 = vrot.slane %v2675_v57, 6 }
 0x1ce   : > { %2027 = vrot.lane.b32.xlu0 %v1946_v11, %s3707_s25  ;;  %v1673_v17 = vpop.permute.xlu1 %1672  ;;  %v1675_v62 = vpop.permute.xlu2 %1674 }
 0x1cf   : > { %1759 = vst.msk [vmem:[#allocation3 + $0x28] sm:$0xf] %vm1748_vm0, %v1673_v17  ;;  %v1974_v19 = vsel %vm4169_vm12, %v1972_v13, %v1973_v15  ;;  %v2121_v17 = vld [vmem:[#allocation2 + $0x3c] sm:$0xf] }
 0x1d0   : > { %v1671_v21 = vpop.permute.xlu0 %1670  ;;  %1760 = vst.msk [vmem:[#allocation3 + $0x2c] sm:$0xf] %vm1748_vm0, %v1675_v62  ;;  %v3523_v62 = vrot.slane %v1826_v14, 10  ;;  %v4918_v14 = vld [vmem:[#allocation2 + $0x34] sm:$0xf] }
 0x1d1   : > { %1758 = vst.msk [vmem:[#allocation3 + $0x24] sm:$0xf] %vm1748_vm0, %v1671_v21 }
 0x1d4   : > { %2035 = vrot.lane.b32.xlu1 %v1960_v24, %s3707_s25  ;;  %2019 = vrot.lane.b32.xlu2 %v1932_v51, %s3707_s25  ;;  %v2125_v24 = vld [vmem:[#allocation2 + $0x54] sm:$0xf]  ;;  %v1985_v51 = vsel %vm4169_vm12, %v3523_v62, %v1984_v58  ;;  %v2468_v58 = vrot.slane %v2466_v49, 4 }
 0x1d6   : > { %2033 = vrot.lane.b32.xlu0 %v1957_v25, %s3707_s25  ;;  %v1679_v4 = vpop.permute.xlu1 %1678  ;;  %v1681_v16 = vpop.permute.xlu2 %1680 }
 0x1d7   : > { %1762 = vst.msk [vmem:[#allocation3 + $0x34] sm:$0xf] %vm1748_vm0, %v1679_v4 }
 0x1d8   : > { %v1677_v33 = vpop.permute.xlu0 %1676  ;;  %1763 = vst.msk [vmem:[#allocation3 + $0x38] sm:$0xf] %vm1748_vm0, %v1681_v16  ;;  %v2131_v16 = vld [vmem:[#allocation2 + $0x78] sm:$0xf] }
 0x1d9   : > { %1761 = vst.msk [vmem:[#allocation3 + $0x30] sm:$0xf] %vm1748_vm0, %v1677_v33 }
 0x1dc   : > { %2041 = vrot.lane.b32.xlu1 %v1971_v9, %s3707_s25  ;;  %2025 = vrot.lane.b32.xlu2 %v1943_v38, %s3707_s25  ;;  %v2135_v38 = vld [vmem:[#allocation2 + $0x90] sm:$0xf] }
 0x1de   : > { %2039 = vrot.lane.b32.xlu0 %v1967_v41, %s3707_s25  ;;  %v1685_v50 = vpop.permute.xlu1 %1684  ;;  %v1687_v52 = vpop.permute.xlu2 %1686 }
 0x1df   : > { %1765 = vst.msk [vmem:[#allocation3 + $0x40] sm:$0xf] %vm1748_vm0, %v1685_v50  ;;  %v4892_v50 = vld [vmem:[#allocation2 + $0xc4] sm:$0xf] }
 0x1e0   : > { %v1683_v55 = vpop.permute.xlu0 %1682  ;;  %1766 = vst.msk [vmem:[#allocation3 + $0x44] sm:$0xf] %vm1748_vm0, %v1687_v52  ;;  %v2143_v52 = vld [vmem:[#allocation2 + $0xc0] sm:$0xf] }
 0x1e1   : > { %1764 = vst.msk [vmem:[#allocation3 + $0x3c] sm:$0xf] %vm1748_vm0, %v1683_v55  ;;  %v2338_v55 = vld [vmem:[#allocation2 + $0x98] sm:$0x1] }
 0x1e2   : > { %v2469_v59 = vrot.slane %v2338_v55, 5  ;;  %v2651_v55 = vld [vmem:[#allocation2 + $0x38] sm:$0x3] }
 0x1e4   : > { %2047 = vrot.lane.b32.xlu1 %v1981_v22, %s3707_s25  ;;  %2031 = vrot.lane.b32.xlu2 %v1953_v54, %s3707_s25  ;;  %v2494_v22 = vrot.slane %v4892_v50, 5  ;;  %v2685_v50 = vld [vmem:[#allocation2 + $0xc0] sm:$0xc] }
 0x1e6   : > { %2045 = vrot.lane.b32.xlu0 %v1978_v53, %s3707_s25  ;;  %v1691_v48 = vpop.permute.xlu1 %1690  ;;  %v1693_v56 = vpop.permute.xlu2 %1692  ;;  %v2674_v53 = vld [vmem:[#allocation2 + $0x94] sm:$0xf] }
 0x1e7   : > { %1768 = vst.msk [vmem:[#allocation3 + $0x4c] sm:$0xf] %vm1748_vm0, %v1691_v48  ;;  %v2495_v48 = vsel %vm3760_vm3, %v3536_v39, %v2494_v22  ;;  %v2803_v63 = vrot.slane %v2674_v53, 6 }
 0x1e8   : > { %v1689_v60 = vpop.permute.xlu0 %1688  ;;  %1769 = vst.msk [vmem:[#allocation3 + $0x50] sm:$0xf] %vm1748_vm0, %v1693_v56  ;;  %v2132_v56 = vld [vmem:[#allocation2 + $0x7c] sm:$0xf] }
 0x1e9   : > { %1767 = vst.msk [vmem:[#allocation3 + $0x48] sm:$0xf] %vm1748_vm0, %v1689_v60  ;;  %v2470_v60 = vsel %vm3760_vm3, %v2468_v58, %v2469_v59  ;;  %v2750_v59 = vrot.slane %v2651_v55, 6 }
 0x1ec   : > { %2183 = vrot.lane.b32.xlu1 %v2119_v2, %s3708_s26  ;;  %2037 = vrot.lane.b32.xlu2 %v1964_v6, %s3707_s25  ;;  %v2673_v2 = vld [vmem:[#allocation2 + $0x90] sm:$0xc]  ;;  %v2805_v6 = vrot.slane %v2803_v63, 4 }
 0x1ed   : > { %v3548_v15 = vrot.slane %v2673_v2, 10 }
 0x1ee   : > { %2051 = vrot.lane.b32.xlu0 %v1988_v10, %s3707_s25  ;;  %v1697_v11 = vpop.permute.xlu1 %1696  ;;  %v1699_v18 = vpop.permute.xlu2 %1698 }
 0x1ef   : > { %1771 = vst.msk [vmem:[#allocation3 + $0x58] sm:$0xf] %vm1748_vm0, %v1697_v11  ;;  %v2804_v62 = vsel %vm4169_vm12, %v3548_v15, %v2803_v63  ;;  %v2314_v63 = vld [vmem:[#allocation2 + $0x38] sm:$0x1] }
 0x1f0   : > { %v1695_v20 = vpop.permute.xlu0 %1694  ;;  %1772 = vst.msk [vmem:[#allocation3 + $0x5c] sm:$0xf] %vm1748_vm0, %v1699_v18  ;;  %v4913_v18 = vld [vmem:[#allocation2 + $0xc4] sm:$0xf]  ;;  %v2413_v2 = vrot.slane %v2314_v63, 5 }
 0x1f1   : > { %1770 = vst.msk [vmem:[#allocation3 + $0x54] sm:$0xf] %vm1748_vm0, %v1695_v20  ;;  %v2807_v20 = vsel %vm4169_vm12, %v2805_v6, %v2806_v7 }
 0x1f4   : > { %2189 = vrot.lane.b32.xlu1 %v2122_v0, %s3708_s26  ;;  %2043 = vrot.lane.b32.xlu2 %v1974_v19, %s3707_s25  ;;  %v2136_v0 = vld [vmem:[#allocation2 + $0x94] sm:$0xf]  ;;  %v2312_v19 = vld [vmem:[#allocation2 + $0x30] sm:$0xe] }
 0x1f6   : > { %2187 = vrot.lane.b32.xlu0 %v2121_v17, %s3708_s26  ;;  %v1703_v5 = vpop.permute.xlu1 %1702  ;;  %v1705_v21 = vpop.permute.xlu2 %1704  ;;  %v2336_v17 = vld [vmem:[#allocation2 + $0x90] sm:$0xe] }
 0x1f7   : > { %1774 = vst.msk [vmem:[#allocation3 + $0x64] sm:$0xf] %vm1748_vm0, %v1703_v5  ;;  %v2831_v5 = vrot.slane %v4913_v18, 6  ;;  %v4977_v18 = vld [vmem:[#allocation2 + $0xa0] sm:$0xf] }
 0x1f8   : > { %v1701_v23 = vpop.permute.xlu0 %1700  ;;  %1775 = vst.msk [vmem:[#allocation3 + $0x68] sm:$0xf] %vm1748_vm0, %v1705_v21  ;;  %v2687_v21 = vld [vmem:[#allocation2 + $0xc8] sm:$0x3] }
 0x1f9   : > { %1773 = vst.msk [vmem:[#allocation3 + $0x60] sm:$0xf] %vm1748_vm0, %v1701_v23  ;;  %v3524_v23 = vrot.slane %v2312_v19, 9 }
 0x1fc   : > { %2195 = vrot.lane.b32.xlu1 %v2125_v24, %s3708_s26  ;;  %2049 = vrot.lane.b32.xlu2 %v1985_v51, %s3707_s25  ;;  %v2410_v24 = vrot.slane %v4918_v14, 5  ;;  %v3532_v51 = vrot.slane %v2336_v17, 9  ;;  %v2473_v14 = vrot.slane %v4977_v18, 5 }
 0x1fe   : > { %2193 = vrot.lane.b32.xlu0 %v2124_v32, %s3708_s26  ;;  %v1709_v1 = vpop.permute.xlu1 %1708  ;;  %v1711_v8 = vpop.permute.xlu2 %1710 }
 0x1ff   : > { %1777 = vst.msk [vmem:[#allocation3 + $0x70] sm:$0xf] %vm1748_vm0, %v1709_v1 }
 0x200   : > { %v1707_v25 = vpop.permute.xlu0 %1706  ;;  %1778 = vst.msk [vmem:[#allocation3 + $0x74] sm:$0xf] %vm1748_vm0, %v1711_v8  ;;  %v2325_v8 = vld [vmem:[#allocation2 + $0x64] sm:$0xf] }
 0x201   : > { %1776 = vst.msk [vmem:[#allocation3 + $0x6c] sm:$0xf] %vm1748_vm0, %v1707_v25  ;;  %v2833_v25 = vrot.slane %v2831_v5, 4 }
 0x204   : > { %2201 = vrot.lane.b32.xlu1 %v2128_v26, %s3708_s26  ;;  %2185 = vrot.lane.b32.xlu2 %v2120_v27, %s3708_s26  ;;  %v2834_v26 = vrot.slane %v2687_v21, 6  ;;  %v2352_v21 = vld [vmem:[#allocation2 + $0xd0] sm:$0xf] }
 0x206   : > { %2199 = vrot.lane.b32.xlu0 %v2127_v28, %s3708_s26  ;;  %v1715_v29 = vpop.permute.xlu1 %1714  ;;  %v1990_v30 = vpop.permute.xlu2 %1989  ;;  %v2411_v28 = vsel %vm3760_vm3, %v3524_v23, %v2410_v24 }
 0x207   : > { %1780 = vst.msk [vmem:[#allocation3 + $0x7c] sm:$0xf] %vm1748_vm0, %v1715_v29  ;;  %v2467_v29 = vsel %vm3760_vm3, %v3532_v51, %v2466_v49 }
 0x208   : > { %v1713_v4 = vpop.permute.xlu0 %1712  ;;  %2086 = vst.msk [vmem:[#allocation3] sm:$0xf] %vm2085_vm1, %v1990_v30  ;;  %v2438_v30 = vrot.slane %v2325_v8, 5  ;;  %v2663_v8 = vld [vmem:[#allocation2 + $0x68] sm:$0x3] }
 0x209   : > { %1779 = vst.msk [vmem:[#allocation3 + $0x78] sm:$0xf] %vm1748_vm0, %v1713_v4  ;;  %v2326_v4 = vld [vmem:[#allocation2 + $0x68] sm:$0x1] }
 0x20c   : > { %2207 = vrot.lane.b32.xlu1 %v2131_v16, %s3708_s26  ;;  %2191 = vrot.lane.b32.xlu2 %v2123_v34, %s3708_s26  ;;  %v2350_v16 = vld [vmem:[#allocation2 + $0xc8] sm:$0x1]  ;;  %v2835_v34 = vsel %vm4169_vm12, %v2833_v25, %v2834_v26  ;;  %v2146_v25 = vld [vmem:[#allocation2 + $0xd0] sm:$0xf]  ;;  %v2351_v26 = vld [vmem:[#allocation2 + $0xcc] sm:$0xe] }
 0x20e   : > { %2205 = vrot.lane.b32.xlu0 %v2130_v35, %s3708_s26  ;;  %v1994_v12 = vpop.permute.xlu1 %1993  ;;  %v1996_v33 = vpop.permute.xlu2 %1995  ;;  %v2324_v35 = vld [vmem:[#allocation2 + $0x60] sm:$0xe] }
 0x20f   : > { %2088 = vst.msk [vmem:[#allocation3 + $0x8] sm:$0xf] %vm2085_vm1, %v1994_v12  ;;  %v2440_v12 = vrot.slane %v2438_v30, 4 }
 0x210   : > { %v1992_v9 = vpop.permute.xlu0 %1991  ;;  %2089 = vst.msk [vmem:[#allocation3 + $0xc] sm:$0xf] %vm2085_vm1, %v1996_v33  ;;  %v2441_v33 = vrot.slane %v2326_v4, 5 }
 0x211   : > { %2087 = vst.msk [vmem:[#allocation3 + $0x4] sm:$0xf] %vm2085_vm1, %v1992_v9  ;;  %v2496_v9 = vrot.slane %v2494_v22, 4  ;;  %v2775_v22 = vrot.slane %v4950_v47, 6  ;;  %v2316_v47 = vld [vmem:[#allocation2 + $0x40] sm:$0xf] }
 0x212   : > { %v2442_v31 = vsel %vm3760_vm3, %v2440_v12, %v2441_v33  ;;  %v4997_v12 = vld [vmem:[#allocation2 + $0xa0] sm:$0xf] }
 0x214   : > { %2215 = vrot.lane.b32.xlu1 %v2135_v38, %s3708_s26  ;;  %2197 = vrot.lane.b32.xlu2 %v2126_v40, %s3708_s26  ;;  %v2497_v38 = vrot.slane %v2350_v16, 5 }
 0x216   : > { %2211 = vrot.lane.b32.xlu0 %v2133_v44, %s3708_s26  ;;  %v2000_v37 = vpop.permute.xlu1 %1999  ;;  %v2002_v41 = vpop.permute.xlu2 %2001 }
 0x217   : > { %2091 = vst.msk [vmem:[#allocation3 + $0x14] sm:$0xf] %vm2085_vm1, %v2000_v37  ;;  %v3528_v37 = vrot.slane %v2324_v35, 9 }
 0x218   : > { %v1998_v42 = vpop.permute.xlu0 %1997  ;;  %2092 = vst.msk [vmem:[#allocation3 + $0x18] sm:$0xf] %vm2085_vm1, %v2002_v41 }
 0x219   : > { %2090 = vst.msk [vmem:[#allocation3 + $0x10] sm:$0xf] %vm2085_vm1, %v1998_v42  ;;  %v2650_v42 = vld [vmem:[#allocation2 + $0x34] sm:$0xf] }
 0x21a   : > { %v2747_v49 = vrot.slane %v2650_v42, 6 }
 0x21c   : > { %2233 = vrot.lane.b32.xlu1 %v2144_v46, %s3708_s26  ;;  %2203 = vrot.lane.b32.xlu2 %v2129_v45, %s3708_s26  ;;  %v2498_v46 = vsel %vm3760_vm3, %v2496_v9, %v2497_v38  ;;  %v2661_v45 = vld [vmem:[#allocation2 + $0x60] sm:$0xc]  ;;  %v2749_v58 = vrot.slane %v2747_v49, 4  ;;  %v2688_v38 = vld [vmem:[#allocation2 + $0xcc] sm:$0xc] }
 0x21d   : > { %v3544_v39 = vrot.slane %v2661_v45, 10  ;;  %v3553_v42 = vrot.slane %v2688_v38, 10 }
 0x21e   : > { %2231 = vrot.lane.b32.xlu0 %v2143_v52, %s3708_s26  ;;  %v2006_v54 = vpop.permute.xlu1 %2005  ;;  %v2008_v43 = vpop.permute.xlu2 %2007  ;;  %v2439_v52 = vsel %vm3760_vm3, %v3528_v37, %v2438_v30  ;;  %v2751_v57 = vsel %vm4169_vm12, %v2749_v58, %v2750_v59  ;;  %v2778_v30 = vrot.slane %v2663_v8, 6  ;;  %v2810_v37 = vrot.slane %v4997_v12, 6  ;;  %v2315_v58 = vld [vmem:[#allocation2 + $0x3c] sm:$0xe] }
 0x21f   : > { %2094 = vst.msk [vmem:[#allocation3 + $0x20] sm:$0xf] %vm2085_vm1, %v2006_v54  ;;  %v3552_v54 = vrot.slane %v2685_v50, 10 }
 0x220   : > { %v2004_v61 = vpop.permute.xlu0 %2003  ;;  %2095 = vst.msk [vmem:[#allocation3 + $0x24] sm:$0xf] %vm2085_vm1, %v2008_v43  ;;  %v2812_v50 = vrot.slane %v2810_v37, 4 }
 0x221   : > { %2093 = vst.msk [vmem:[#allocation3 + $0x1c] sm:$0xf] %vm2085_vm1, %v2004_v61 }
 0x224   : > { %2568 = vrot.lane.b32.xlu1 %v2495_v48, %s3709_s27  ;;  %2209 = vrot.lane.b32.xlu2 %v2132_v56, %s3708_s26  ;;  %v2776_v48 = vsel %vm4169_vm12, %v3544_v39, %v2775_v22  ;;  %v2832_v56 = vsel %vm4169_vm12, %v3552_v54, %v2831_v5  ;;  %v2145_v39 = vld [vmem:[#allocation2 + $0xcc] sm:$0xf]  ;;  %v2317_v54 = vld [vmem:[#allocation2 + $0x44] sm:$0x1] }
 0x226   : > { %2554 = vrot.lane.b32.xlu0 %v2470_v60, %s3709_s27  ;;  %v2012_v10 = vpop.permute.xlu1 %2011  ;;  %v2014_v13 = vpop.permute.xlu2 %2013  ;;  %v2412_v60 = vrot.slane %v2410_v24, 4 }
 0x227   : > { %2097 = vst.msk [vmem:[#allocation3 + $0x2c] sm:$0xf] %vm2085_vm1, %v2012_v10 }
 0x228   : > { %v2010_v11 = vpop.permute.xlu0 %2009  ;;  %2098 = vst.msk [vmem:[#allocation3 + $0x30] sm:$0xf] %vm2085_vm1, %v2014_v13  ;;  %v2138_v13 = vld [vmem:[#allocation2 + $0xa0] sm:$0xf]  ;;  %v2414_v15 = vsel %vm3760_vm3, %v2412_v60, %v2413_v2  ;;  %v3525_v60 = vrot.slane %v2315_v58, 9 }
 0x229   : > { %2096 = vst.msk [vmem:[#allocation3 + $0x28] sm:$0xf] %vm2085_vm1, %v2010_v11  ;;  %v2339_v11 = vld [vmem:[#allocation2 + $0x9c] sm:$0xe]  ;;  %v2342_v58 = vld [vmem:[#allocation2 + $0xa8] sm:$0xe] }
 0x22a   : > { %v3533_v19 = vrot.slane %v2339_v11, 9  ;;  %v2676_v11 = vld [vmem:[#allocation2 + $0x9c] sm:$0xc] }
 0x22c   : > { %2891 = vrot.lane.b32.xlu1 %v2807_v20, %s3710_s28  ;;  %2217 = vrot.lane.b32.xlu2 %v2136_v0, %s3708_s26  ;;  %v2649_v20 = vld [vmem:[#allocation2 + $0x30] sm:$0xc]  ;;  %v2137_v0 = vld [vmem:[#allocation2 + $0x9c] sm:$0xf]  ;;  %v2474_v24 = vsel %vm3760_vm3, %v3533_v19, %v2473_v14 }
 0x22d   : > { %v3540_v17 = vrot.slane %v2649_v20, 10 }
 0x22e   : > { %2889 = vrot.lane.b32.xlu0 %v2804_v62, %s3710_s28  ;;  %v2018_v32 = vpop.permute.xlu1 %2017  ;;  %v2020_v1 = vpop.permute.xlu2 %2019 }
 0x22f   : > { %2100 = vst.msk [vmem:[#allocation3 + $0x38] sm:$0xf] %vm2085_vm1, %v2018_v32  ;;  %v2748_v51 = vsel %vm4169_vm12, %v3540_v17, %v2747_v49  ;;  %v2501_v32 = vrot.slane %v2352_v21, 5  ;;  %v3549_v17 = vrot.slane %v2676_v11, 10  ;;  %v2665_v21 = vld [vmem:[#allocation2 + $0x70] sm:$0xf] }
 0x230   : > { %v2016_v27 = vpop.permute.xlu0 %2015  ;;  %2101 = vst.msk [vmem:[#allocation3 + $0x3c] sm:$0xf] %vm2085_vm1, %v2020_v1  ;;  %v2353_v1 = vld [vmem:[#allocation2 + $0xd4] sm:$0x1]  ;;  %v2782_v8 = vrot.slane %v2665_v21, 6 }
 0x231   : > { %2099 = vst.msk [vmem:[#allocation3 + $0x34] sm:$0xf] %vm2085_vm1, %v2016_v27  ;;  %v2503_v27 = vrot.slane %v2501_v32, 4  ;;  %v5106_v11 = vld [vmem:[#allocation2 + $0xac] sm:$0xf] }
 0x234   : > { %2520 = vrot.lane.b32.xlu1 %v2411_v28, %s3709_s27  ;;  %2552 = vrot.lane.b32.xlu2 %v2467_v29, %s3709_s27  ;;  %v2504_v28 = vrot.slane %v2353_v1, 5  ;;  %v2777_v29 = vrot.slane %v2775_v22, 4  ;;  %v2417_v22 = vrot.slane %v2316_v47, 5  ;;  %v2811_v1 = vsel %vm4169_vm12, %v3549_v17, %v2810_v37  ;;  %v2343_v47 = vld [vmem:[#allocation2 + $0xac] sm:$0xf] }
 0x236   : > { %2907 = vrot.lane.b32.xlu0 %v2835_v34, %s3710_s28  ;;  %v2024_v40 = vpop.permute.xlu1 %2023  ;;  %v2026_v44 = vpop.permute.xlu2 %2025  ;;  %v3537_v34 = vrot.slane %v2351_v26, 9  ;;  %v2505_v33 = vsel %vm3760_vm3, %v2503_v27, %v2504_v28  ;;  %v2779_v9 = vsel %vm4169_vm12, %v2777_v29, %v2778_v30  ;;  %v2419_v59 = vrot.slane %v2417_v22, 4  ;;  %v2690_v26 = vld [vmem:[#allocation2 + $0xd4] sm:$0x3]  ;;  %v2664_v28 = vld [vmem:[#allocation2 + $0x6c] sm:$0xc] }
 0x237   : > { %2103 = vst.msk [vmem:[#allocation3 + $0x44] sm:$0xf] %vm2085_vm1, %v2024_v40  ;;  %v5004_v40 = vld [vmem:[#allocation2 + $0xd0] sm:$0xf]  ;;  %v2418_v18 = vsel %vm3760_vm3, %v3525_v60, %v2417_v22  ;;  %v2784_v29 = vrot.slane %v2782_v8, 4  ;;  %v3545_v12 = vrot.slane %v2664_v28, 10 }
 0x238   : > { %v2022_v41 = vpop.permute.xlu0 %2021  ;;  %2104 = vst.msk [vmem:[#allocation3 + $0x48] sm:$0xf] %vm2085_vm1, %v2026_v44  ;;  %v2502_v44 = vsel %vm3760_vm3, %v3537_v34, %v2501_v32  ;;  %v3665_v22 = vld [vmem:[%s5467_s1 + $0x8] sm:$0xff] }
 0x239   : > { %2102 = vst.msk [vmem:[#allocation3 + $0x40] sm:$0xf] %vm2085_vm1, %v2022_v41  ;;  %v2678_v41 = vld [vmem:[#allocation2 + $0xa4] sm:$0x3]  ;;  %v2783_v37 = vsel %vm4169_vm12, %v3545_v12, %v2782_v8  ;;  %v2693_v8 = vld [vmem:[#allocation2 + $0xe0] sm:$0x3] }
 0x23a   : > { %v2848_v28 = vrot.slane %v2693_v8, 6  ;;  %v2148_v12 = vld [vmem:[#allocation2 + $0xdc] sm:$0xf] }
 0x23c   : > { %2538 = vrot.lane.b32.xlu1 %v2442_v31, %s3709_s27  ;;  %2570 = vrot.lane.b32.xlu2 %v2498_v46, %s3709_s27  ;;  %v2838_v31 = vrot.slane %v5004_v40, 6  ;;  %v2327_v40 = vld [vmem:[#allocation2 + $0x6c] sm:$0xe] }
 0x23e   : > { %2536 = vrot.lane.b32.xlu0 %v2439_v52, %s3709_s27  ;;  %v2030_v43 = vpop.permute.xlu1 %2029  ;;  %v2032_v53 = vpop.permute.xlu2 %2031  ;;  %v2813_v52 = vrot.slane %v2678_v41, 6  ;;  %v2839_v55 = vsel %vm4169_vm12, %v3553_v42, %v2838_v31  ;;  %v3529_v42 = vrot.slane %v2327_v40, 9 }
 0x23f   : > { %2106 = vst.msk [vmem:[#allocation3 + $0x50] sm:$0xf] %vm2085_vm1, %v2030_v43  ;;  %v2341_v43 = vld [vmem:[#allocation2 + $0xa4] sm:$0x1] }
 0x240   : > { %v2028_v61 = vpop.permute.xlu0 %2027  ;;  %2107 = vst.msk [vmem:[#allocation3 + $0x54] sm:$0xf] %vm2085_vm1, %v2032_v53  ;;  %v2814_v53 = vsel %vm4169_vm12, %v2812_v50, %v2813_v52 }
 0x241   : > { %2105 = vst.msk [vmem:[#allocation3 + $0x4c] sm:$0xf] %vm2085_vm1, %v2028_v61  ;;  %v2420_v61 = vrot.slane %v2317_v54, 5  ;;  %v2344_v54 = vld [vmem:[#allocation2 + $0xb0] sm:$0x1] }
 0x244   : > { %2873 = vrot.lane.b32.xlu1 %v2776_v48, %s3710_s28  ;;  %2905 = vrot.lane.b32.xlu2 %v2832_v56, %s3710_s28  ;;  %v2475_v48 = vrot.slane %v2473_v14, 4  ;;  %v2476_v56 = vrot.slane %v2341_v43, 5  ;;  %v2654_v43 = vld [vmem:[#allocation2 + $0x44] sm:$0x3] }
 0x246   : > { %2859 = vrot.lane.b32.xlu0 %v2751_v57, %s3710_s28  ;;  %v2036_v6 = vpop.permute.xlu1 %2035  ;;  %v2038_v7 = vpop.permute.xlu2 %2037 }
 0x247   : > { %2109 = vst.msk [vmem:[#allocation3 + $0x5c] sm:$0xf] %vm2085_vm1, %v2036_v6  ;;  %v5031_v6 = vld [vmem:[#allocation2 + $0x70] sm:$0xf] }
 0x248   : > { %v2034_v10 = vpop.permute.xlu0 %2033  ;;  %2110 = vst.msk [vmem:[#allocation3 + $0x60] sm:$0xf] %vm2085_vm1, %v2038_v7  ;;  %v2421_v7 = vsel %vm3760_vm3, %v2419_v59, %v2420_v61  ;;  %v2445_v20 = vrot.slane %v5031_v6, 5  ;;  %v2483_v61 = vrot.slane %v2344_v54, 5  ;;  %v2657_v54 = vld [vmem:[#allocation2 + $0x50] sm:$0x3] }
 0x249   : > { %2108 = vst.msk [vmem:[#allocation3 + $0x58] sm:$0xf] %vm2085_vm1, %v2034_v10  ;;  %v2477_v10 = vsel %vm3760_vm3, %v2475_v48, %v2476_v56  ;;  %v2757_v56 = vrot.slane %v2654_v43, 6  ;;  %v2681_v43 = vld [vmem:[#allocation2 + $0xb0] sm:$0x3] }
 0x24c   : > { %2221 = vrot.lane.b32.xlu1 %v2138_v13, %s3708_s26  ;;  %2522 = vrot.lane.b32.xlu2 %v2414_v15, %s3709_s27  ;;  %v2652_v13 = vld [vmem:[#allocation2 + $0x3c] sm:$0xc]  ;;  %v5038_v15 = vld [vmem:[#allocation2 + $0x40] sm:$0xf] }
 0x24d   : > { %v3541_v19 = vrot.slane %v2652_v13, 10  ;;  %v2754_v14 = vrot.slane %v5038_v15, 6  ;;  %v2679_v15 = vld [vmem:[#allocation2 + $0xa8] sm:$0xc] }
 0x24e   : > { %2219 = vrot.lane.b32.xlu0 %v2137_v0, %s3708_s26  ;;  %v2042_v62 = vpop.permute.xlu1 %2041  ;;  %v2044_v5 = vpop.permute.xlu2 %2043  ;;  %v2329_v0 = vld [vmem:[#allocation2 + $0x74] sm:$0x1] }
 0x24f   : > { %2112 = vst.msk [vmem:[#allocation3 + $0x68] sm:$0xf] %vm2085_vm1, %v2042_v62  ;;  %v2755_v32 = vsel %vm4169_vm12, %v3541_v19, %v2754_v14  ;;  %v2756_v48 = vrot.slane %v2754_v14, 4  ;;  %v3550_v19 = vrot.slane %v2679_v15, 10  ;;  %v2817_v14 = vrot.slane %v5106_v11, 6 }
 0x250   : > { %v2040_v23 = vpop.permute.xlu0 %2039  ;;  %2113 = vst.msk [vmem:[#allocation3 + $0x6c] sm:$0xf] %vm2085_vm1, %v2044_v5  ;;  %v2318_v15 = vld [vmem:[#allocation2 + $0x48] sm:$0xe] }
 0x251   : > { %2111 = vst.msk [vmem:[#allocation3 + $0x64] sm:$0xf] %vm2085_vm1, %v2040_v23  ;;  %v2447_v23 = vrot.slane %v2445_v20, 4  ;;  %v2758_v13 = vsel %vm4169_vm12, %v2756_v48, %v2757_v56  ;;  %v2819_v48 = vrot.slane %v2817_v14, 4  ;;  %v2820_v56 = vrot.slane %v2681_v43, 6 }
 0x254   : > { %2556 = vrot.lane.b32.xlu1 %v2474_v24, %s3709_s27  ;;  %2857 = vrot.lane.b32.xlu2 %v2748_v51, %s3710_s28  ;;  %v2448_v24 = vrot.slane %v2329_v0, 5  ;;  %v2356_v0 = vld [vmem:[#allocation2 + $0xe0] sm:$0x1] }
 0x256   : > { %2237 = vrot.lane.b32.xlu0 %v2146_v25, %s3708_s26  ;;  %v2048_v4 = vpop.permute.xlu1 %2047  ;;  %v2050_v16 = vpop.permute.xlu2 %2049  ;;  %v2666_v25 = vld [vmem:[#allocation2 + $0x74] sm:$0x3]  ;;  %v2449_v27 = vsel %vm3760_vm3, %v2447_v23, %v2448_v24  ;;  %v2511_v23 = vrot.slane %v2356_v0, 5  ;;  %v3526_v0 = vrot.slane %v2318_v15, 9 }
 0x257   : > { %2115 = vst.msk [vmem:[#allocation3 + $0x74] sm:$0xf] %vm2085_vm1, %v2048_v4  ;;  %v2785_v30 = vrot.slane %v2666_v25, 6  ;;  %v2840_v4 = vrot.slane %v2838_v31, 4 }
 0x258   : > { %v2046_v35 = vpop.permute.xlu0 %2045  ;;  %2116 = vst.msk [vmem:[#allocation3 + $0x78] sm:$0xf] %vm2085_vm1, %v2050_v16  ;;  %v2841_v16 = vrot.slane %v2690_v26, 6  ;;  %v2691_v26 = vld [vmem:[#allocation2 + $0xd8] sm:$0xc] }
 0x259   : > { %2114 = vst.msk [vmem:[#allocation3 + $0x70] sm:$0xf] %vm2085_vm1, %v2046_v35 }
 0x25a   : > { %v2842_v38 = vsel %vm4169_vm12, %v2840_v4, %v2841_v16  ;;  %v3554_v4 = vrot.slane %v2691_v26, 10 }
 0x25c   : > { %2574 = vrot.lane.b32.xlu1 %v2505_v33, %s3709_s27  ;;  %2875 = vrot.lane.b32.xlu2 %v2779_v9, %s3710_s28  ;;  %v2786_v9 = vsel %vm4169_vm12, %v2784_v29, %v2785_v30 }
 0x25e   : > { %2572 = vrot.lane.b32.xlu0 %v2502_v44, %s3709_s27  ;;  %v2184_v46 = vpop.permute.xlu1 %2183  ;;  %v2186_v45 = vpop.permute.xlu2 %2185  ;;  %v3022_v44 = vld [vmem:[%s5467_s1 + $0x10] sm:$0x3] }
 0x25f   : > { %2280 = vst.msk [vmem:[#allocation3] sm:$0xf] %vm2279_vm2, %v2184_v46  ;;  %v3112_v41 = vunpack.c.l.b16 %v3022_v44 }
 0x260   : > { %v2052_v49 = vpop.permute.xlu0 %2051  ;;  %2281 = vst.msk [vmem:[#allocation3 + $0x4] sm:$0xf] %vm2279_vm2, %v2186_v45 }
 0x261   : > { %2117 = vst.msk [vmem:[#allocation3 + $0x7c] sm:$0xf] %vm2085_vm1, %v2052_v49  ;;  %v3115_v31 = vpack.c.b16 %v3112_v41, %v3112_v41  ;;  %v2147_v49 = vld [vmem:[#allocation2 + $0xd8] sm:$0xf] }
 0x263   : > { %v3169_v50 = vsel %vm1007_vm10, %v3115_v31, 0 }
 0x264   : > { %2909 = vrot.lane.b32.xlu1 %v2839_v55, %s3710_s28  ;;  %2235 = vrot.lane.b32.xlu2 %v2145_v39, %s3708_s26  ;;  %v2446_v55 = vsel %vm3760_vm3, %v3529_v42, %v2445_v20  ;;  %v2480_v39 = vrot.slane %v2343_v47, 5  ;;  %v2656_v47 = vld [vmem:[#allocation2 + $0x4c] sm:$0xf] }
 0x265   : > { %3667 = vmatpush.bf16.msra.mxu2 %v3169_v50  ;;  %3668 = vmatpush.bf16.msra.mxu3 %v3169_v50 }
 0x266   : > { %2895 = vrot.lane.b32.xlu0 %v2814_v53, %s3710_s28  ;;  %v2190_v63 = vpop.permute.xlu1 %2189  ;;  %v2192_v57 = vpop.permute.xlu2 %2191  ;;  %3176 = vmatpush.bf16.msra.mxu0 %v3169_v50  ;;  %v2140_v53 = vld [vmem:[#allocation2 + $0xac] sm:$0xf]  ;;  %v2482_v59 = vrot.slane %v2480_v39, 4 }
 0x267   : > { %2283 = vst.msk [vmem:[#allocation3 + $0xc] sm:$0xf] %vm2279_vm2, %v2190_v63  ;;  %3666 = vmatpush.bf16.msra.mxu1 %v3169_v50  ;;  %v3664_v63 = vld [vmem:[%s5467_s1] sm:$0xff] }
 0x268   : > { %v2188_v2 = vpop.permute.xlu0 %2187  ;;  %2284 = vst.msk [vmem:[#allocation3 + $0x10] sm:$0xf] %vm2279_vm2, %v2192_v57 }
 0x269   : > { %2282 = vst.msk [vmem:[#allocation3 + $0x8] sm:$0xf] %vm2279_vm2, %v2188_v2  ;;  %3670 = vmatpush.bf16.msra.mxu2 %v3665_v22  ;;  %3671 = vmatpush.bf16.msra.mxu3 %v3665_v22  ;;  %v3534_v2 = vrot.slane %v2342_v58, 9  ;;  %v2655_v58 = vld [vmem:[#allocation2 + $0x48] sm:$0xc] }
 0x26a   : > { %3177 = vmatpush.bf16.msra.mxu0 %v3665_v22 }
 0x26b   : > { %3669 = vmatpush.bf16.msra.mxu1 %v3665_v22  ;;  %v2761_v22 = vrot.slane %v2656_v47, 6 }
 0x26c   : > { %2526 = vrot.lane.b32.xlu1 %v2421_v7, %s3709_s27  ;;  %2558 = vrot.lane.b32.xlu2 %v2477_v10, %s3709_s27  ;;  %v5099_v7 = vld [vmem:[#allocation2 + $0xdc] sm:$0xf]  ;;  %v2484_v10 = vsel %vm3760_vm3, %v2482_v59, %v2483_v61  ;;  %v2764_v61 = vrot.slane %v2657_v54, 6 }
 0x26d   : > { %3673 = vmatpush.bf16.msra.mxu2 %v3664_v63  ;;  %3674 = vmatpush.bf16.msra.mxu3 %v3664_v63  ;;  %v2508_v20 = vrot.slane %v5099_v7, 5  ;;  %v2763_v59 = vrot.slane %v2761_v22, 4  ;;  %v5165_v7 = vld [vmem:[#allocation2 + $0x7c] sm:$0xf] }
 0x26e   : > { %2524 = vrot.lane.b32.xlu0 %v2418_v18, %s3709_s27  ;;  %v2196_v62 = vpop.permute.xlu1 %2195  ;;  %v2198_v5 = vpop.permute.xlu2 %2197  ;;  %3178 = vmatpush.bf16.msra.mxu0 %v3664_v63  ;;  %v2481_v18 = vsel %vm3760_vm3, %v3534_v2, %v2480_v39 }
 0x26f   : > { %2286 = vst.msk [vmem:[#allocation3 + $0x18] sm:$0xf] %vm2279_vm2, %v2196_v62  ;;  %3672 = vmatpush.bf16.msra.mxu1 %v3664_v63  ;;  %v2510_v21 = vrot.slane %v2508_v20, 4 }
 0x270   : > { %v2194_v51 = vpop.permute.xlu0 %2193  ;;  %2287 = vst.msk [vmem:[#allocation3 + $0x1c] sm:$0xf] %vm2279_vm2, %v2198_v5  ;;  %v2692_v5 = vld [vmem:[#allocation2 + $0xdc] sm:$0xf] }
 0x271   : > { %2285 = vst.msk [vmem:[#allocation3 + $0x14] sm:$0xf] %vm2279_vm2, %v2194_v51  ;;  %v2818_v51 = vsel %vm4169_vm12, %v3550_v19, %v2817_v14  ;;  %v2512_v25 = vsel %vm3760_vm3, %v2510_v21, %v2511_v23  ;;  %v2141_v23 = vld [vmem:[#allocation2 + $0xb4] sm:$0xf] }
 0x274   : > { %2861 = vrot.lane.b32.xlu1 %v2755_v32, %s3710_s28  ;;  %2893 = vrot.lane.b32.xlu2 %v2811_v1, %s3710_s28  ;;  %v2139_v32 = vld [vmem:[#allocation2 + $0xa8] sm:$0xf]  ;;  %v2845_v1 = vrot.slane %v2692_v5, 6 }
 0x276   : > { %2542 = vrot.lane.b32.xlu0 %v2449_v27, %s3709_s27  ;;  %v2202_v34 = vpop.permute.xlu1 %2201  ;;  %v2204_v35 = vpop.permute.xlu2 %2203  ;;  %v2847_v27 = vrot.slane %v2845_v1, 4  ;;  %v2846_v40 = vsel %vm4169_vm12, %v3554_v4, %v2845_v1  ;;  %v2357_v4 = vld [vmem:[#allocation2 + $0xe4] sm:$0xe] }
 0x277   : > { %2289 = vst.msk [vmem:[#allocation3 + $0x24] sm:$0xf] %vm2279_vm2, %v2202_v34  ;;  %v5131_v34 = vld [vmem:[#allocation2 + $0x4c] sm:$0xf] }
 0x278   : > { %v2200_v33 = vpop.permute.xlu0 %2199  ;;  %2290 = vst.msk [vmem:[#allocation3 + $0x28] sm:$0xf] %vm2279_vm2, %v2204_v35  ;;  %v2849_v35 = vsel %vm4169_vm12, %v2847_v27, %v2848_v28  ;;  %v2424_v44 = vrot.slane %v5131_v34, 5  ;;  %v5194_v28 = vld [vmem:[#allocation2 + $0xb8] sm:$0xf] }
 0x279   : > { %2288 = vst.msk [vmem:[#allocation3 + $0x20] sm:$0xf] %vm2279_vm2, %v2200_v33  ;;  %v2330_v33 = vld [vmem:[#allocation2 + $0x78] sm:$0xe] }
 0x27a   : > { %v3530_v41 = vrot.slane %v2330_v33, 9  ;;  %v2426_v50 = vrot.slane %v2424_v44, 4  ;;  %v2667_v34 = vld [vmem:[#allocation2 + $0x78] sm:$0xc]  ;;  %v2347_v33 = vld [vmem:[#allocation2 + $0xbc] sm:$0x1] }
 0x27c   : > { %2879 = vrot.lane.b32.xlu1 %v2786_v9, %s3710_s28  ;;  %2911 = vrot.lane.b32.xlu2 %v2842_v38, %s3710_s28  ;;  %v5136_v9 = vld [vmem:[#allocation2 + $0x7c] sm:$0xf]  ;;  %v2354_v38 = vld [vmem:[#allocation2 + $0xd8] sm:$0xe] }
 0x27d   : > { %v2452_v42 = vrot.slane %v5136_v9, 5  ;;  %v3538_v31 = vrot.slane %v2354_v38, 9  ;;  %v3539_v9 = vrot.slane %v2357_v4, 9 }
 0x27e   : > { %2877 = vrot.lane.b32.xlu0 %v2783_v37, %s3710_s28  ;;  %v2208_v46 = vpop.permute.xlu1 %2207  ;;  %v2210_v45 = vpop.permute.xlu2 %2209  ;;  %v2320_v37 = vld [vmem:[#allocation2 + $0x50] sm:$0x1] }
 0x27f   : > { %2292 = vst.msk [vmem:[#allocation3 + $0x30] sm:$0xf] %vm2279_vm2, %v2208_v46  ;;  %v2509_v39 = vsel %vm3760_vm3, %v3538_v31, %v2508_v20  ;;  %v2669_v20 = vld [vmem:[#allocation2 + $0x80] sm:$0x3]  ;;  %v2454_v1 = vrot.slane %v2452_v42, 4 }
 0x280   : > { %v2206_v52 = vpop.permute.xlu0 %2205  ;;  %2293 = vst.msk [vmem:[#allocation3 + $0x34] sm:$0xf] %vm2279_vm2, %v2210_v45 }
 0x281   : > { %2291 = vst.msk [vmem:[#allocation3 + $0x2c] sm:$0xf] %vm2279_vm2, %v2206_v52  ;;  %v2427_v52 = vrot.slane %v2320_v37, 5 }
 0x284   : > { %2239 = vrot.lane.b32.xlu1 %v2147_v49, %s3708_s26  ;;  %2540 = vrot.lane.b32.xlu2 %v2446_v55, %s3709_s27  ;;  %v2453_v55 = vsel %vm3760_vm3, %v3530_v41, %v2452_v42  ;;  %v2683_v41 = vld [vmem:[#allocation2 + $0xb8] sm:$0xf] }
 0x286   : > { %2225 = vrot.lane.b32.xlu0 %v2140_v53, %s3708_s26  ;;  %v2216_v57 = vpop.permute.xlu1 %2215  ;;  %v2218_v60 = vpop.permute.xlu2 %2217  ;;  %v2428_v53 = vsel %vm3760_vm3, %v2426_v50, %v2427_v52  ;;  %v2824_v52 = vrot.slane %v2683_v41, 6 }
 0x287   : > { %2296 = vst.msk [vmem:[#allocation3 + $0x40] sm:$0xf] %vm2279_vm2, %v2216_v57 }
 0x288   : > { %v2212_v6 = vpop.permute.xlu0 %2211  ;;  %2297 = vst.msk [vmem:[#allocation3 + $0x44] sm:$0xf] %vm2279_vm2, %v2218_v60  ;;  %v3542_v60 = vrot.slane %v2655_v58, 10  ;;  %v2826_v54 = vrot.slane %v2824_v52, 4 }
 0x289   : > { %2294 = vst.msk [vmem:[#allocation3 + $0x38] sm:$0xf] %vm2279_vm2, %v2212_v6 }
 0x28a   : > { %v2762_v11 = vsel %vm4169_vm12, %v3542_v60, %v2761_v22  ;;  %v2682_v22 = vld [vmem:[#allocation2 + $0xb4] sm:$0xc] }
 0x28c   : > { %2562 = vrot.lane.b32.xlu1 %v2484_v10, %s3709_s27  ;;  %2863 = vrot.lane.b32.xlu2 %v2758_v13, %s3710_s28  ;;  %v2765_v10 = vsel %vm4169_vm12, %v2763_v59, %v2764_v61  ;;  %v2821_v13 = vsel %vm4169_vm12, %v2819_v48, %v2820_v56  ;;  %v3551_v59 = vrot.slane %v2682_v22, 10  ;;  %v5224_v48 = vld [vmem:[#allocation2 + $0xe8] sm:$0xf] }
 0x28e   : > { %2560 = vrot.lane.b32.xlu0 %v2481_v18, %s3709_s27  ;;  %v2234_v17 = vpop.permute.xlu1 %2233  ;;  %v2553_v62 = vpop.permute.xlu2 %2552  ;;  %v2789_v18 = vrot.slane %v5165_v7, 6  ;;  %v2825_v60 = vsel %vm4169_vm12, %v3551_v59, %v2824_v52  ;;  %v2321_v52 = vld [vmem:[#allocation2 + $0x54] sm:$0xe] }
 0x28f   : > { %2305 = vst.msk [vmem:[#allocation3 + $0x64] sm:$0xf] %vm2279_vm2, %v2234_v17  ;;  %v3527_v22 = vrot.slane %v2321_v52, 9 }
 0x290   : > { %v2232_v24 = vpop.permute.xlu0 %2231  ;;  %2633 = vst.msk [vmem:[#allocation3 + $0x40] sm:$0xf] %vm2616_vm4, %v2553_v62  ;;  %v2791_v17 = vrot.slane %v2789_v18, 4  ;;  %v2792_v62 = vrot.slane %v2669_v20, 6  ;;  %v5239_v20 = vld [vmem:[#allocation2 + $0x58] sm:$0xf] }
 0x291   : > { %2304 = vst.msk [vmem:[#allocation3 + $0x60] sm:$0xf] %vm2279_vm2, %v2232_v24  ;;  %v2425_v24 = vsel %vm3760_vm3, %v3526_v0, %v2424_v44  ;;  %v2134_v0 = vld [vmem:[#allocation2 + $0x88] sm:$0xf] }
 0x294   : > { %2897 = vrot.lane.b32.xlu1 %v2818_v51, %s3710_s28  ;;  %2223 = vrot.lane.b32.xlu2 %v2139_v32, %s3708_s26  ;;  %v2332_v51 = vld [vmem:[#allocation2 + $0x80] sm:$0x1]  ;;  %v2793_v32 = vsel %vm4169_vm12, %v2791_v17, %v2792_v62  ;;  %v5244_v17 = vld [vmem:[#allocation2 + $0x88] sm:$0xf]  ;;  %v2359_v62 = vld [vmem:[#allocation2 + $0xec] sm:$0x1] }
 0x295   : > { %v2455_v8 = vrot.slane %v2332_v51, 5  ;;  %v2459_v51 = vrot.slane %v5244_v17, 5 }
 0x296   : > { %2578 = vrot.lane.b32.xlu0 %v2512_v25, %s3709_s27  ;;  %v2569_v29 = vpop.permute.xlu1 %2568  ;;  %v2571_v30 = vpop.permute.xlu2 %2570 }
 0x297   : > { %2641 = vst.msk [vmem:[#allocation3 + $0x60] sm:$0xf] %vm2616_vm4, %v2569_v29  ;;  %v2150_v29 = vld [vmem:[#allocation2 + $0xe8] sm:$0xf] }
 0x298   : > { %v2555_v16 = vpop.permute.xlu0 %2554  ;;  %2642 = vst.msk [vmem:[#allocation3 + $0x64] sm:$0xf] %vm2616_vm4, %v2571_v30  ;;  %v2456_v30 = vsel %vm3760_vm3, %v2454_v1, %v2455_v8  ;;  %v2518_v1 = vrot.slane %v2359_v62, 5 }
 0x299   : > { %2634 = vst.msk [vmem:[#allocation3 + $0x44] sm:$0xf] %vm2616_vm4, %v2555_v16  ;;  %v5199_v16 = vld [vmem:[#allocation2 + $0xe8] sm:$0xf] }
 0x29a   : > { %v2515_v38 = vrot.slane %v5199_v16, 5 }
 0x29c   : > { %2915 = vrot.lane.b32.xlu1 %v2849_v35, %s3710_s28  ;;  %2241 = vrot.lane.b32.xlu2 %v2148_v12, %s3708_s26  ;;  %v2149_v35 = vld [vmem:[#allocation2 + $0xe4] sm:$0xf]  ;;  %v2487_v12 = vrot.slane %v5194_v28, 5  ;;  %v2516_v50 = vsel %vm3760_vm3, %v3539_v9, %v2515_v38 }
 0x29e   : > { %2913 = vrot.lane.b32.xlu0 %v2846_v40, %s3710_s28  ;;  %v2892_v46 = vpop.permute.xlu1 %2891  ;;  %v2906_v45 = vpop.permute.xlu2 %2905  ;;  %v3546_v40 = vrot.slane %v2667_v34, 10  ;;  %v2489_v31 = vrot.slane %v2487_v12, 4  ;;  %v2660_v34 = vld [vmem:[#allocation2 + $0x5c] sm:$0x3] }
 0x29f   : > { %2971 = vst.msk [vmem:[#allocation3 + $0x44] sm:$0xf] %vm2953_vm5, %v2892_v46  ;;  %v2490_v46 = vrot.slane %v2347_v33, 5  ;;  %v2658_v33 = vld [vmem:[#allocation2 + $0x54] sm:$0xc] }
 0x2a0   : > { %v2890_v49 = vpop.permute.xlu0 %2889  ;;  %2978 = vst.msk [vmem:[#allocation3 + $0x60] sm:$0xf] %vm2953_vm5, %v2906_v45 }
 0x2a1   : > { %2970 = vst.msk [vmem:[#allocation3 + $0x40] sm:$0xf] %vm2953_vm5, %v2890_v49  ;;  %v2790_v49 = vsel %vm4169_vm12, %v3546_v40, %v2789_v18 }
 0x2a4   : > { %2544 = vrot.lane.b32.xlu1 %v2453_v55, %s3709_s27  ;;  %2576 = vrot.lane.b32.xlu2 %v2509_v39, %s3709_s27  ;;  %v2684_v55 = vld [vmem:[#allocation2 + $0xbc] sm:$0x3]  ;;  %v2491_v39 = vsel %vm3760_vm3, %v2489_v31, %v2490_v46 }
 0x2a5   : > { %v2827_v43 = vrot.slane %v2684_v55, 6 }
 0x2a6   : > { %2530 = vrot.lane.b32.xlu0 %v2428_v53, %s3709_s27  ;;  %v2521_v63 = vpop.permute.xlu1 %2520  ;;  %v2523_v57 = vpop.permute.xlu2 %2522 }
 0x2a7   : > { %2617 = vst.msk [vmem:[#allocation3] sm:$0xf] %vm2616_vm4, %v2521_v63  ;;  %v2828_v56 = vsel %vm4169_vm12, %v2826_v54, %v2827_v43  ;;  %v2142_v63 = vld [vmem:[#allocation2 + $0xb8] sm:$0xf] }
 0x2a8   : > { %v2908_v2 = vpop.permute.xlu0 %2907  ;;  %2618 = vst.msk [vmem:[#allocation3 + $0x4] sm:$0xf] %vm2616_vm4, %v2523_v57  ;;  %v3656_v6 = vld [vmem:[#allocation3 + $0x40] sm:$0xff] }
 0x2a9   : > { %2979 = vst.msk [vmem:[#allocation3 + $0x64] sm:$0xf] %vm2953_vm5, %v2908_v2  ;;  %3636 = vmatmul.msk.bf16.vlgmr.msra.gmra.mxu2 %vm3118_vm6, %v3656_v6  ;;  %v2345_v57 = vld [vmem:[#allocation2 + $0xb4] sm:$0xe]  ;;  %v2852_v2 = vrot.slane %v5224_v48, 6 }
 0x2aa   : > { %v2696_v6 = vld [vmem:[#allocation2 + $0xec] sm:$0x3]  ;;  %v3535_v7 = vrot.slane %v2345_v57, 9 }
 0x2ab   : > { %v2854_v15 = vrot.slane %v2852_v2, 4  ;;  %v2335_v48 = vld [vmem:[#allocation2 + $0x8c] sm:$0x1] }
 0x2ac   : > { %2867 = vrot.lane.b32.xlu1 %v2765_v10, %s3710_s28  ;;  %2899 = vrot.lane.b32.xlu2 %v2821_v13, %s3710_s28  ;;  %v2462_v57 = vrot.slane %v2335_v48, 5 }
 0x2ae   : > { %2865 = vrot.lane.b32.xlu0 %v2762_v11, %s3710_s28  ;;  %v2539_v19 = vpop.permute.xlu1 %2538  ;;  %v2858_v14 = vpop.permute.xlu2 %2857  ;;  %v2855_v11 = vrot.slane %v2696_v6, 6 }
 0x2af   : > { %2626 = vst.msk [vmem:[#allocation3 + $0x24] sm:$0xf] %vm2616_vm4, %v2539_v19  ;;  %v2488_v19 = vsel %vm3760_vm3, %v3535_v7, %v2487_v12 }
 0x2b0   : > { %v2537_v5 = vpop.permute.xlu0 %2536  ;;  %2954 = vst.msk [vmem:[#allocation3] sm:$0xf] %vm2953_vm5, %v2858_v14  ;;  %v3660_v21 = vld [vmem:[#allocation3 + $0x60] sm:$0xff]  ;;  %v2333_v14 = vld [vmem:[#allocation2 + $0x84] sm:$0xe] }
 0x2b1   : > { %2625 = vst.msk [vmem:[#allocation3 + $0x20] sm:$0xf] %vm2616_vm4, %v2537_v5  ;;  %3640 = vmatmul.msk.bf16.vlgmr.msra.gmra.mxu3 %vm3118_vm6, %v3660_v21  ;;  %v2856_v5 = vsel %vm4169_vm12, %v2854_v15, %v2855_v11  ;;  %v2431_v21 = vrot.slane %v5239_v20, 5 }
 0x2b4   : > { %2227 = vrot.lane.b32.xlu1 %v2141_v23, %s3708_s26  ;;  %2528 = vrot.lane.b32.xlu2 %v2425_v24, %s3709_s27  ;;  %v2323_v23 = vld [vmem:[#allocation2 + $0x5c] sm:$0x1]  ;;  %v3531_v24 = vrot.slane %v2333_v14, 9 }
 0x2b5   : > { %v2434_v28 = vrot.slane %v2323_v23, 5 }
 0x2b6   : > { %2883 = vrot.lane.b32.xlu0 %v2793_v32, %s3710_s28  ;;  %v2874_v25 = vpop.permute.xlu1 %2873  ;;  %v2876_v26 = vpop.permute.xlu2 %2875  ;;  %v2517_v32 = vrot.slane %v2515_v38, 4  ;;  %v2771_v38 = vrot.slane %v2660_v34, 6  ;;  %v5330_v34 = vld [vmem:[%s5468_s2] ss:$0 sm:$0xff] }
 0x2b7   : > { %2962 = vst.msk [vmem:[#allocation3 + $0x20] sm:$0xf] %vm2953_vm5, %v2874_v25 }
 0x2b8   : > { %v2860_v27 = vpop.permute.xlu0 %2859  ;;  %2963 = vst.msk [vmem:[#allocation3 + $0x24] sm:$0xf] %vm2953_vm5, %v2876_v26  ;;  %v2659_v26 = vld [vmem:[#allocation2 + $0x58] sm:$0xf]  ;;  %v2519_v16 = vsel %vm3760_vm3, %v2517_v32, %v2518_v1 }
 0x2b9   : > { %2955 = vst.msk [vmem:[#allocation3 + $0x4] sm:$0xf] %vm2953_vm5, %v2860_v27  ;;  %v2433_v27 = vrot.slane %v2431_v21, 4  ;;  %v2768_v4 = vrot.slane %v2659_v26, 6 }
 0x2bb   : > { %v2435_v12 = vsel %vm3760_vm3, %v2433_v27, %v2434_v28  ;;  %v2770_v9 = vrot.slane %v2768_v4, 4 }
 0x2bc   : > { %2245 = vrot.lane.b32.xlu1 %v2150_v29, %s3708_s26  ;;  %2546 = vrot.lane.b32.xlu2 %v2456_v30, %s3709_s27  ;;  %v2460_v30 = vsel %vm3760_vm3, %v3531_v24, %v2459_v51 }
 0x2be   : > { %2243 = vrot.lane.b32.xlu0 %v2149_v35, %s3708_s26  ;;  %v2222_v44 = vpop.permute.xlu1 %2221  ;;  %v2236_v37 = vpop.permute.xlu2 %2235  ;;  %v2694_v35 = vld [vmem:[#allocation2 + $0xe4] sm:$0xc] }
 0x2bf   : > { %2299 = vst.msk [vmem:[#allocation3 + $0x4c] sm:$0xf] %vm2279_vm2, %v2222_v44  ;;  %v3652_v42 = vld [vmem:[#allocation3 + $0x20] sm:$0xff]  ;;  %v3555_v40 = vrot.slane %v2694_v35, 10  ;;  %v5335_v35 = vld [vmem:[%s5469_s3] ss:$0 sm:$0xff] }
 0x2c0   : > { %v2220_v45 = vpop.permute.xlu0 %2219  ;;  %2306 = vst.msk [vmem:[#allocation3 + $0x68] sm:$0xf] %vm2279_vm2, %v2236_v37  ;;  %v3648_v47 = vld [vmem:[#allocation3] sm:$0xff]  ;;  %3632 = vmatmul.msk.bf16.vlgmr.msra.gmra.mxu1 %vm3118_vm6, %v3652_v42  ;;  %v3543_v42 = vrot.slane %v2658_v33, 10 }
 0x2c1   : > { %2298 = vst.msk [vmem:[#allocation3 + $0x48] sm:$0xf] %vm2279_vm2, %v2220_v45  ;;  %3628 = vmatmul.msk.bf16.vlgmr.msra.gmra.mxu0 %vm3118_vm6, %v3648_v47  ;;  %v2671_v45 = vld [vmem:[#allocation2 + $0x88] sm:$0xf]  ;;  %v2772_v47 = vsel %vm4169_vm12, %v2770_v9, %v2771_v38 }
 0x2c2   : > { %v2796_v55 = vrot.slane %v2671_v45, 6 }
 0x2c4   : > { %2580 = vrot.lane.b32.xlu1 %v2516_v50, %s3709_s27  ;;  %2881 = vrot.lane.b32.xlu2 %v2790_v49, %s3710_s28  ;;  %v2853_v50 = vsel %vm4169_vm12, %v3555_v40, %v2852_v2  ;;  %v2769_v49 = vsel %vm4169_vm12, %v3543_v42, %v2768_v4 }
 0x2c6   : > { %2566 = vrot.lane.b32.xlu0 %v2491_v39, %s3709_s27  ;;  %v2557_v53 = vpop.permute.xlu1 %2556  ;;  %v2559_v58 = vpop.permute.xlu2 %2558  ;;  %v2672_v39 = vld [vmem:[#allocation2 + $0x8c] sm:$0x3] }
 0x2c7   : > { %2635 = vst.msk [vmem:[#allocation3 + $0x48] sm:$0xf] %vm2616_vm4, %v2557_v53  ;;  %v2798_v53 = vrot.slane %v2796_v55, 4 }
 0x2c8   : > { %v2238_v61 = vpop.permute.xlu0 %2237  ;;  %2636 = vst.msk [vmem:[#allocation3 + $0x4c] sm:$0xf] %vm2616_vm4, %v2559_v58  ;;  %v2799_v58 = vrot.slane %v2672_v39, 6 }
 0x2c9   : > { %2307 = vst.msk [vmem:[#allocation3 + $0x6c] sm:$0xf] %vm2279_vm2, %v2238_v61  ;;  %v2432_v61 = vsel %vm3760_vm3, %v3527_v22, %v2431_v21 }
 0x2cc   : > { %2903 = vrot.lane.b32.xlu1 %v2828_v56, %s3710_s28  ;;  %2229 = vrot.lane.b32.xlu2 %v2142_v63, %s3708_s26  ;;  %v2800_v56 = vsel %vm4169_vm12, %v2798_v53, %v2799_v58  ;;  %v2461_v63 = vrot.slane %v2459_v51, 4 }
 0x2ce   : > { %2901 = vrot.lane.b32.xlu0 %v2825_v60, %s3710_s28  ;;  %v2575_v10 = vpop.permute.xlu1 %2574  ;;  %v2894_v13 = vpop.permute.xlu2 %2893 }
 0x2cf   : > { %2644 = vst.msk [vmem:[#allocation3 + $0x6c] sm:$0xf] %vm2616_vm4, %v2575_v10  ;;  %v2463_v10 = vsel %vm3760_vm3, %v2461_v63, %v2462_v57 }
 0x2d0   : > { %v2573_v18 = vpop.permute.xlu0 %2572  ;;  %2972 = vst.msk [vmem:[#allocation3 + $0x48] sm:$0xf] %vm2953_vm5, %v2894_v13  ;;  %v2670_v13 = vld [vmem:[#allocation2 + $0x84] sm:$0xc] }
 0x2d1   : > { %2643 = vst.msk [vmem:[#allocation3 + $0x68] sm:$0xf] %vm2616_vm4, %v2573_v18  ;;  %v3547_v15 = vrot.slane %v2670_v13, 10 }
 0x2d4   : > { %2213 = vrot.lane.b32.xlu1 %v2134_v0, %s3708_s26  ;;  %2564 = vrot.lane.b32.xlu2 %v2488_v19, %s3709_s27  ;;  %v2797_v19 = vsel %vm4169_vm12, %v3547_v15, %v2796_v55 }
 0x2d6   : > { %2919 = vrot.lane.b32.xlu0 %v2856_v5, %s3710_s28  ;;  %v2910_v8 = vpop.permute.xlu1 %2909  ;;  %v2912_v25 = vpop.permute.xlu2 %2911 }
 0x2d7   : > { %2980 = vst.msk [vmem:[#allocation3 + $0x68] sm:$0xf] %vm2953_vm5, %v2910_v8 }
 0x2d8   : > { %v2896_v29 = vpop.permute.xlu0 %2895  ;;  %2981 = vst.msk [vmem:[#allocation3 + $0x6c] sm:$0xf] %vm2953_vm5, %v2912_v25 }
 0x2d9   : > { %2973 = vst.msk [vmem:[#allocation3 + $0x4c] sm:$0xf] %vm2953_vm5, %v2896_v29 }
 0x2dc   : > { %2548 = vrot.lane.b32.xlu1 %v2460_v30, %s3709_s27  ;;  %2582 = vrot.lane.b32.xlu2 %v2519_v16, %s3709_s27 }
 0x2de   : > { %2534 = vrot.lane.b32.xlu0 %v2435_v12, %s3709_s27  ;;  %v2527_v44 = vpop.permute.xlu1 %2526  ;;  %v2541_v37 = vpop.permute.xlu2 %2540 }
 0x2df   : > { %2620 = vst.msk [vmem:[#allocation3 + $0xc] sm:$0xf] %vm2616_vm4, %v2527_v44  ;;  %v3661_v41 = vld [vmem:[#allocation3 + $0x68] sm:$0xff] }
 0x2e0   : > { %v2525_v31 = vpop.permute.xlu0 %2524  ;;  %2627 = vst.msk [vmem:[#allocation3 + $0x28] sm:$0xf] %vm2616_vm4, %v2541_v37  ;;  %v3657_v46 = vld [vmem:[#allocation3 + $0x48] sm:$0xff]  ;;  %3641 = vmatmul.msk.bf16.gmra.mxu3 %vm3118_vm6, %v3661_v41 }
 0x2e1   : > { %2619 = vst.msk [vmem:[#allocation3 + $0x8] sm:$0xf] %vm2616_vm4, %v2525_v31  ;;  %3637 = vmatmul.msk.bf16.gmra.mxu2 %vm3118_vm6, %v3657_v46 }
 0x2e4   : > { %2871 = vrot.lane.b32.xlu1 %v2772_v47, %s3710_s28  ;;  %2917 = vrot.lane.b32.xlu2 %v2853_v50, %s3710_s28 }
 0x2e6   : > { %2869 = vrot.lane.b32.xlu0 %v2769_v49, %s3710_s28  ;;  %v2862_v54 = vpop.permute.xlu1 %2861  ;;  %v2864_v43 = vpop.permute.xlu2 %2863 }
 0x2e7   : > { %2956 = vst.msk [vmem:[#allocation3 + $0x8] sm:$0xf] %vm2953_vm5, %v2862_v54 }
 0x2e8   : > { %v2543_v59 = vpop.permute.xlu0 %2542  ;;  %2957 = vst.msk [vmem:[#allocation3 + $0xc] sm:$0xf] %vm2953_vm5, %v2864_v43 }
 0x2e9   : > { %2628 = vst.msk [vmem:[#allocation3 + $0x2c] sm:$0xf] %vm2616_vm4, %v2543_v59 }
 0x2ec   : > { %2532 = vrot.lane.b32.xlu2 %v2432_v61, %s3709_s27 }
 0x2ee   : > { %2887 = vrot.lane.b32.xlu0 %v2800_v56, %s3710_s28  ;;  %v2880_v60 = vpop.permute.xlu1 %2879  ;;  %v2224_v2 = vpop.permute.xlu2 %2223 }
 0x2ef   : > { %2965 = vst.msk [vmem:[#allocation3 + $0x2c] sm:$0xf] %vm2953_vm5, %v2880_v60  ;;  %v3649_v6 = vld [vmem:[#allocation3 + $0x8] sm:$0xff] }
 0x2f0   : > { %v2878_v7 = vpop.permute.xlu0 %2877  ;;  %2300 = vst.msk [vmem:[#allocation3 + $0x50] sm:$0xf] %vm2279_vm2, %v2224_v2  ;;  %3629 = vmatmul.msk.bf16.gmra.mxu0 %vm3118_vm6, %v3649_v6 }
 0x2f1   : > { %2964 = vst.msk [vmem:[#allocation3 + $0x28] sm:$0xf] %vm2953_vm5, %v2878_v7 }
 0x2f4   : > { %2550 = vrot.lane.b32.xlu2 %v2463_v10, %s3709_s27 }
 0x2f6   : > { %v2240_v11 = vpop.permute.xlu1 %2239  ;;  %v2242_v18 = vpop.permute.xlu2 %2241 }
 0x2f7   : > { %2308 = vst.msk [vmem:[#allocation3 + $0x70] sm:$0xf] %vm2279_vm2, %v2240_v11 }
 0x2f8   : > { %v2226_v20 = vpop.permute.xlu0 %2225  ;;  %2309 = vst.msk [vmem:[#allocation3 + $0x74] sm:$0xf] %vm2279_vm2, %v2242_v18  ;;  %v3653_v0 = vld [vmem:[#allocation3 + $0x28] sm:$0xff] }
 0x2f9   : > { %2301 = vst.msk [vmem:[#allocation3 + $0x54] sm:$0xf] %vm2279_vm2, %v2226_v20  ;;  %3633 = vmatmul.msk.bf16.gmra.mxu1 %vm3118_vm6, %v3653_v0 }
 0x2fc   : > { %2885 = vrot.lane.b32.xlu2 %v2797_v19, %s3710_s28 }
 0x2fe   : > { %v2563_v3 = vpop.permute.xlu1 %2562  ;;  %v2577_v14 = vpop.permute.xlu2 %2576 }
 0x2ff   : > { %2638 = vst.msk [vmem:[#allocation3 + $0x54] sm:$0xf] %vm2616_vm4, %v2563_v3 }
 0x300   : > { %v2561_v17 = vpop.permute.xlu0 %2560  ;;  %2645 = vst.msk [vmem:[#allocation3 + $0x70] sm:$0xf] %vm2616_vm4, %v2577_v14 }
 0x301   : > { %2637 = vst.msk [vmem:[#allocation3 + $0x50] sm:$0xf] %vm2616_vm4, %v2561_v17 }
 0x306   : > { %v2898_v62 = vpop.permute.xlu1 %2897  ;;  %v2900_v5 = vpop.permute.xlu2 %2899 }
 0x307   : > { %2974 = vst.msk [vmem:[#allocation3 + $0x50] sm:$0xf] %vm2953_vm5, %v2898_v62 }
 0x308   : > { %v2579_v21 = vpop.permute.xlu0 %2578  ;;  %2975 = vst.msk [vmem:[#allocation3 + $0x54] sm:$0xf] %vm2953_vm5, %v2900_v5 }
 0x309   : > { %2646 = vst.msk [vmem:[#allocation3 + $0x74] sm:$0xf] %vm2616_vm4, %v2579_v21 }
 0x30e   : > { %v2916_v36 = vpop.permute.xlu1 %2915  ;;  %v2529_v23 = vpop.permute.xlu2 %2528 }
 0x30f   : > { %2983 = vst.msk [vmem:[#allocation3 + $0x74] sm:$0xf] %vm2953_vm5, %v2916_v36  ;;  %v3658_v24 = vld [vmem:[#allocation3 + $0x50] sm:$0xff] }
 0x310   : > { %v2914_v51 = vpop.permute.xlu0 %2913  ;;  %2621 = vst.msk [vmem:[#allocation3 + $0x10] sm:$0xf] %vm2616_vm4, %v2529_v23  ;;  %3638 = vmatmul.msk.bf16.gmra.mxu2 %vm3118_vm6, %v3658_v24 }
 0x311   : > { %2982 = vst.msk [vmem:[#allocation3 + $0x70] sm:$0xf] %vm2953_vm5, %v2914_v51 }
 0x316   : > { %v2545_v32 = vpop.permute.xlu1 %2544  ;;  %v2547_v1 = vpop.permute.xlu2 %2546 }
 0x317   : > { %2629 = vst.msk [vmem:[#allocation3 + $0x30] sm:$0xf] %vm2616_vm4, %v2545_v32 }
 0x318   : > { %v2531_v8 = vpop.permute.xlu0 %2530  ;;  %v3662_v25 = vld [vmem:[#allocation3 + $0x70] sm:$0xff]  ;;  %2630 = vst.msk [vmem:[#allocation3 + $0x34] sm:$0xf] %vm2616_vm4, %v2547_v1 }
 0x319   : > { %2622 = vst.msk [vmem:[#allocation3 + $0x14] sm:$0xf] %vm2616_vm4, %v2531_v8  ;;  %3642 = vmatmul.msk.bf16.gmra.mxu3 %vm3118_vm6, %v3662_v25 }
 0x31e   : > { %v2868_v26 = vpop.permute.xlu1 %2867  ;;  %v2882_v27 = vpop.permute.xlu2 %2881 }
 0x31f   : > { %2959 = vst.msk [vmem:[#allocation3 + $0x14] sm:$0xf] %vm2953_vm5, %v2868_v26 }
 0x320   : > { %v2866_v28 = vpop.permute.xlu0 %2865  ;;  %2966 = vst.msk [vmem:[#allocation3 + $0x30] sm:$0xf] %vm2953_vm5, %v2882_v27 }
 0x321   : > { %2958 = vst.msk [vmem:[#allocation3 + $0x10] sm:$0xf] %vm2953_vm5, %v2866_v28 }
 0x326   : > { %v2228_v29 = vpop.permute.xlu1 %2227  ;;  %v2230_v30 = vpop.permute.xlu2 %2229 }
 0x327   : > { %2302 = vst.msk [vmem:[#allocation3 + $0x58] sm:$0xf] %vm2279_vm2, %v2228_v29 }
 0x328   : > { %v2884_v4 = vpop.permute.xlu0 %2883  ;;  %v3650_v16 = vld [vmem:[#allocation3 + $0x10] sm:$0xff]  ;;  %2303 = vst.msk [vmem:[#allocation3 + $0x5c] sm:$0xf] %vm2279_vm2, %v2230_v30 }
 0x329   : > { %2967 = vst.msk [vmem:[#allocation3 + $0x34] sm:$0xf] %vm2953_vm5, %v2884_v4  ;;  %3630 = vmatmul.msk.bf16.gmra.mxu0 %vm3118_vm6, %v3650_v16 }
 0x32c   : > { %v3220_v12 = vpop.f32.mrf.mxu2 }
 0x32d   : > { %v3280_v33 = vmul.f32 %v5330_v34, %v3220_v12 }
 0x32e   : > { %v2246_v9 = vpop.permute.xlu1 %2245  ;;  %v2565_v38 = vpop.permute.xlu2 %2564 }
 0x32f   : > { %2311 = vst.msk [vmem:[#allocation3 + $0x7c] sm:$0xf] %vm2279_vm2, %v2246_v9  ;;  %v3316_v40 = vadd.f32 %v5335_v35, %v3280_v33 }
 0x330   : > { %v2244_v44 = vpop.permute.xlu0 %2243  ;;  %v3654_v37 = vld [vmem:[#allocation3 + $0x30] sm:$0xff]  ;;  %2639 = vst.msk [vmem:[#allocation3 + $0x58] sm:$0xf] %vm2616_vm4, %v2565_v38 }
 0x331   : > { %2310 = vst.msk [vmem:[#allocation3 + $0x78] sm:$0xf] %vm2279_vm2, %v2244_v44  ;;  %v3348_v41 = vmax.f32 %v3316_v40, 0.0  ;;  %3634 = vmatmul.msk.bf16.gmra.mxu1 %vm3118_vm6, %v3654_v37 }
 0x333   : > { %3380 = vst [vmem:[%s5345_s18 + $0x80] sm:$0xff] %v3348_v41 }
 0x334   : > { %v3222_v42 = vpop.f32.mrf.mxu2  ;;  %v3240_v31 = vpop.f32.mrf.mxu3 }
 0x335   : > { %v3281_v46 = vmul.f32 %v5330_v34, %v3222_v42  ;;  %v3288_v45 = vmul.f32 %v5330_v34, %v3240_v31 }
 0x336   : > { %v2581_v47 = vpop.permute.xlu1 %2580  ;;  %v2583_v50 = vpop.permute.xlu2 %2582 }
 0x337   : > { %2647 = vst.msk [vmem:[#allocation3 + $0x78] sm:$0xf] %vm2616_vm4, %v2581_v47  ;;  %v3317_v52 = vadd.f32 %v5335_v35, %v3281_v46  ;;  %v3324_v49 = vadd.f32 %v5335_v35, %v3288_v45 }
 0x338   : > { %v2567_v55 = vpop.permute.xlu0 %2566  ;;  %2648 = vst.msk [vmem:[#allocation3 + $0x7c] sm:$0xf] %vm2616_vm4, %v2583_v50 }
 0x339   : > { %2640 = vst.msk [vmem:[#allocation3 + $0x5c] sm:$0xf] %vm2616_vm4, %v2567_v55  ;;  %v3349_v39 = vmax.f32 %v3317_v52, 0.0  ;;  %v3356_v22 = vmax.f32 %v3324_v49, 0.0 }
 0x33b   : > { %3381 = vst [vmem:[%s5345_s18 + $0x88] sm:$0xff] %v3349_v39 }
 0x33c   : > { %3388 = vst [vmem:[%s5345_s18 + $0xc0] sm:$0xff] %v3356_v22  ;;  %v3242_v54 = vpop.f32.mrf.mxu3 }
 0x33d   : > { %v3289_v43 = vmul.f32 %v5330_v34, %v3242_v54  ;;  %v3200_v58 = vpop.f32.mrf.mxu1 }
 0x33e   : > { %v2904_v53 = vpop.permute.xlu1 %2903  ;;  %v3180_v59 = vpop.f32.mrf.mxu0  ;;  %v3272_v61 = vmul.f32 %v5330_v34, %v3200_v58 }
 0x33f   : > { %2977 = vst.msk [vmem:[#allocation3 + $0x5c] sm:$0xf] %vm2953_vm5, %v2904_v53  ;;  %v2918_v48 = vpop.permute.xlu2 %2917  ;;  %v3325_v56 = vadd.f32 %v5335_v35, %v3289_v43  ;;  %v3264_v57 = vmul.f32 %v5330_v34, %v3180_v59 }
 0x340   : > { %v2902_v63 = vpop.permute.xlu0 %2901  ;;  %2984 = vst.msk [vmem:[#allocation3 + $0x78] sm:$0xf] %vm2953_vm5, %v2918_v48  ;;  %v3308_v60 = vadd.f32 %v5335_v35, %v3272_v61 }
 0x341   : > { %2976 = vst.msk [vmem:[#allocation3 + $0x58] sm:$0xf] %vm2953_vm5, %v2902_v63  ;;  %v3357_v2 = vmax.f32 %v3325_v56, 0.0  ;;  %v3300_v6 = vadd.f32 %v5335_v35, %v3264_v57 }
 0x342   : > { %v3340_v7 = vmax.f32 %v3308_v60, 0.0 }
 0x343   : > { %3389 = vst [vmem:[%s5345_s18 + $0xc8] sm:$0xff] %v3357_v2  ;;  %v3332_v10 = vmax.f32 %v3300_v6, 0.0 }
 0x344   : > { %3372 = vst [vmem:[%s5345_s18 + $0x40] sm:$0xff] %v3340_v7 }
 0x345   : > { %3364 = vst [vmem:[%s5345_s18] sm:$0xff] %v3332_v10  ;;  %v3202_v15 = vpop.f32.mrf.mxu1 }
 0x346   : > { %v2214_v13 = vpop.permute.xlu1 %2213  ;;  %v3182_v11 = vpop.f32.mrf.mxu0  ;;  %v3273_v18 = vmul.f32 %v5330_v34, %v3202_v15 }
 0x347   : > { %2295 = vst.msk [vmem:[#allocation3 + $0x3c] sm:$0xf] %vm2279_vm2, %v2214_v13  ;;  %v2533_v20 = vpop.permute.xlu2 %2532  ;;  %v3265_v19 = vmul.f32 %v5330_v34, %v3182_v11 }
 0x348   : > { %v2920_v0 = vpop.permute.xlu0 %2919  ;;  %v3659_v3 = vld [vmem:[#allocation3 + $0x58] sm:$0xff]  ;;  %2623 = vst.msk [vmem:[#allocation3 + $0x18] sm:$0xf] %vm2616_vm4, %v2533_v20  ;;  %v3309_v14 = vadd.f32 %v5335_v35, %v3273_v18 }
 0x349   : > { %2985 = vst.msk [vmem:[#allocation3 + $0x7c] sm:$0xf] %vm2953_vm5, %v2920_v0  ;;  %v3301_v17 = vadd.f32 %v5335_v35, %v3265_v19  ;;  %3639 = vmatmul.msk.bf16.gmra.mxu2 %vm3118_vm6, %v3659_v3 }
 0x34a   : > { %v3341_v62 = vmax.f32 %v3309_v14, 0.0 }
 0x34b   : > { %v3333_v5 = vmax.f32 %v3301_v17, 0.0 }
 0x34c   : > { %3373 = vst [vmem:[%s5345_s18 + $0x48] sm:$0xff] %v3341_v62 }
 0x34d   : > { %3365 = vst [vmem:[%s5345_s18 + $0x8] sm:$0xff] %v3333_v5 }
 0x34e   : > { %v2549_v21 = vpop.permute.xlu1 %2548 }
 0x34f   : > { %2631 = vst.msk [vmem:[#allocation3 + $0x38] sm:$0xf] %vm2616_vm4, %v2549_v21  ;;  %v2551_v36 = vpop.permute.xlu2 %2550 }
 0x350   : > { %v2535_v23 = vpop.permute.xlu0 %2534  ;;  %v3663_v24 = vld [vmem:[#allocation3 + $0x78] sm:$0xff]  ;;  %2632 = vst.msk [vmem:[#allocation3 + $0x3c] sm:$0xf] %vm2616_vm4, %v2551_v36 }
 0x351   : > { %2624 = vst.msk [vmem:[#allocation3 + $0x1c] sm:$0xf] %vm2616_vm4, %v2535_v23  ;;  %3643 = vmatmul.msk.bf16.gmra.mxu3 %vm3118_vm6, %v3663_v24 }
 0x356   : > { %v2872_v51 = vpop.permute.xlu1 %2871 }
 0x357   : > { %2961 = vst.msk [vmem:[#allocation3 + $0x1c] sm:$0xf] %vm2953_vm5, %v2872_v51  ;;  %v2886_v32 = vpop.permute.xlu2 %2885 }
 0x358   : > { %v2870_v1 = vpop.permute.xlu0 %2869  ;;  %2968 = vst.msk [vmem:[#allocation3 + $0x38] sm:$0xf] %vm2953_vm5, %v2886_v32 }
 0x359   : > { %2960 = vst.msk [vmem:[#allocation3 + $0x18] sm:$0xf] %vm2953_vm5, %v2870_v1 }
 0x360   : > { %v2888_v8 = vpop.permute.xlu0 %2887  ;;  %v3651_v25 = vld [vmem:[#allocation3 + $0x18] sm:$0xff] }
 0x361   : > { %2969 = vst.msk [vmem:[#allocation3 + $0x3c] sm:$0xf] %vm2953_vm5, %v2888_v8  ;;  %3631 = vmatmul.msk.bf16.gmra.mxu0 %vm3118_vm6, %v3651_v25 }
 0x363   : > { %v3245_v26 = vpop.f32.mrf.mxu3 }
 0x364   : > { %v3225_v27 = vpop.f32.mrf.mxu2  ;;  %v3290_v28 = vmul.f32 %v5330_v34, %v3245_v26 }
 0x365   : > { %v3282_v29 = vmul.f32 %v5330_v34, %v3225_v27 }
 0x366   : > { %v3326_v30 = vadd.f32 %v5335_v35, %v3290_v28 }
 0x367   : > { %v3318_v4 = vadd.f32 %v5335_v35, %v3282_v29 }
 0x368   : > { %v3655_v16 = vld [vmem:[#allocation3 + $0x38] sm:$0xff]  ;;  %v3358_v12 = vmax.f32 %v3326_v30, 0.0 }
 0x369   : > { %v3350_v33 = vmax.f32 %v3318_v4, 0.0  ;;  %3635 = vmatmul.msk.bf16.gmra.mxu1 %vm3118_vm6, %v3655_v16 }
 0x36a   : > { %3390 = vst [vmem:[%s5345_s18 + $0xd0] sm:$0xff] %v3358_v12 }
 0x36b   : > { %3382 = vst [vmem:[%s5345_s18 + $0x90] sm:$0xff] %v3350_v33  ;;  %v3247_v9 = vpop.f32.mrf.mxu3 }
 0x36c   : > { %v3227_v38 = vpop.f32.mrf.mxu2  ;;  %v3291_v40 = vmul.f32 %v5330_v34, %v3247_v9 }
 0x36d   : > { %v3283_v44 = vmul.f32 %v5330_v34, %v3227_v38  ;;  %v3185_v37 = vpop.f32.mrf.mxu0 }
 0x36e   : > { %v3327_v41 = vadd.f32 %v5335_v35, %v3291_v40  ;;  %v3266_v42 = vmul.f32 %v5330_v34, %v3185_v37 }
 0x36f   : > { %v3319_v31 = vadd.f32 %v5335_v35, %v3283_v44 }
 0x370   : > { %v3359_v46 = vmax.f32 %v3327_v41, 0.0  ;;  %v3302_v45 = vadd.f32 %v5335_v35, %v3266_v42 }
 0x371   : > { %v3351_v47 = vmax.f32 %v3319_v31, 0.0 }
 0x372   : > { %3391 = vst [vmem:[%s5345_s18 + $0xd8] sm:$0xff] %v3359_v46  ;;  %v3334_v50 = vmax.f32 %v3302_v45, 0.0 }
 0x373   : > { %3383 = vst [vmem:[%s5345_s18 + $0x98] sm:$0xff] %v3351_v47 }
 0x374   : > { %3366 = vst [vmem:[%s5345_s18 + $0x10] sm:$0xff] %v3334_v50 }
 0x375   : > { %v3187_v52 = vpop.f32.mrf.mxu0 }
 0x376   : > { %v3267_v49 = vmul.f32 %v5330_v34, %v3187_v52  ;;  %v3205_v55 = vpop.f32.mrf.mxu1 }
 0x377   : > { %v3274_v39 = vmul.f32 %v5330_v34, %v3205_v55 }
 0x378   : > { %v3303_v22 = vadd.f32 %v5335_v35, %v3267_v49 }
 0x379   : > { %v3310_v54 = vadd.f32 %v5335_v35, %v3274_v39 }
 0x37a   : > { %v3335_v43 = vmax.f32 %v3303_v22, 0.0 }
 0x37b   : > { %v3342_v53 = vmax.f32 %v3310_v54, 0.0 }
 0x37c   : > { %3367 = vst [vmem:[%s5345_s18 + $0x18] sm:$0xff] %v3335_v43 }
 0x37d   : > { %3374 = vst [vmem:[%s5345_s18 + $0x50] sm:$0xff] %v3342_v53 }
 0x37e   : > { %v3207_v58 = vpop.f32.mrf.mxu1 }
 0x37f   : > { %v3275_v59 = vmul.f32 %v5330_v34, %v3207_v58 }
 0x381   : > { %v3311_v61 = vadd.f32 %v5335_v35, %v3275_v59 }
 0x383   : > { %v3343_v48 = vmax.f32 %v3311_v61, 0.0 }
 0x385   : > { %3375 = vst [vmem:[%s5345_s18 + $0x58] sm:$0xff] %v3343_v48 }
 0x393   : > { %v3230_v56 = vpop.f32.mrf.mxu2 }
 0x394   : > { %v3284_v63 = vmul.f32 %v5330_v34, %v3230_v56 }
 0x396   : > { %v3320_v57 = vadd.f32 %v5335_v35, %v3284_v63 }
 0x398   : > { %v3352_v60 = vmax.f32 %v3320_v57, 0.0 }
 0x39a   : > { %3384 = vst [vmem:[%s5345_s18 + $0xa0] sm:$0xff] %v3352_v60 }
 0x39b   : > { %v3232_v2 = vpop.f32.mrf.mxu2 }
 0x39c   : > { %v3285_v6 = vmul.f32 %v5330_v34, %v3232_v2  ;;  %v3250_v7 = vpop.f32.mrf.mxu3 }
 0x39d   : > { %v3292_v10 = vmul.f32 %v5330_v34, %v3250_v7 }
 0x39e   : > { %v3321_v13 = vadd.f32 %v5335_v35, %v3285_v6 }
 0x39f   : > { %v3328_v15 = vadd.f32 %v5335_v35, %v3292_v10 }
 0x3a0   : > { %v3353_v11 = vmax.f32 %v3321_v13, 0.0 }
 0x3a1   : > { %v3360_v18 = vmax.f32 %v3328_v15, 0.0 }
 0x3a2   : > { %3385 = vst [vmem:[%s5345_s18 + $0xa8] sm:$0xff] %v3353_v11 }
 0x3a3   : > { %3392 = vst [vmem:[%s5345_s18 + $0xe0] sm:$0xff] %v3360_v18 }
 0x3a4   : > { %v3252_v20 = vpop.f32.mrf.mxu3 }
 0x3a5   : > { %v3293_v0 = vmul.f32 %v5330_v34, %v3252_v20 }
 0x3a6   : > { %v3190_v19 = vpop.f32.mrf.mxu0 }
 0x3a7   : > { %v3329_v3 = vadd.f32 %v5335_v35, %v3293_v0  ;;  %v3268_v14 = vmul.f32 %v5330_v34, %v3190_v19 }
 0x3a9   : > { %v3361_v17 = vmax.f32 %v3329_v3, 0.0  ;;  %v3304_v62 = vadd.f32 %v5335_v35, %v3268_v14 }
 0x3ab   : > { %3393 = vst [vmem:[%s5345_s18 + $0xe8] sm:$0xff] %v3361_v17  ;;  %v3336_v5 = vmax.f32 %v3304_v62, 0.0 }
 0x3ad   : > { %3368 = vst [vmem:[%s5345_s18 + $0x20] sm:$0xff] %v3336_v5 }
 0x3ae   : > { %v3192_v21 = vpop.f32.mrf.mxu0  ;;  %v3210_v36 = vpop.f32.mrf.mxu1 }
 0x3af   : > { %v3269_v23 = vmul.f32 %v5330_v34, %v3192_v21  ;;  %v3276_v24 = vmul.f32 %v5330_v34, %v3210_v36 }
 0x3b1   : > { %v3305_v51 = vadd.f32 %v5335_v35, %v3269_v23  ;;  %v3312_v32 = vadd.f32 %v5335_v35, %v3276_v24 }
 0x3b3   : > { %v3337_v1 = vmax.f32 %v3305_v51, 0.0  ;;  %v3344_v8 = vmax.f32 %v3312_v32, 0.0 }
 0x3b5   : > { %3369 = vst [vmem:[%s5345_s18 + $0x28] sm:$0xff] %v3337_v1 }
 0x3b6   : > { %3376 = vst [vmem:[%s5345_s18 + $0x60] sm:$0xff] %v3344_v8  ;;  %v3212_v25 = vpop.f32.mrf.mxu1 }
 0x3b7   : > { %v3277_v26 = vmul.f32 %v5330_v34, %v3212_v25 }
 0x3b9   : > { %v3313_v27 = vadd.f32 %v5335_v35, %v3277_v26 }
 0x3bb   : > { %v3345_v28 = vmax.f32 %v3313_v27, 0.0 }
 0x3bd   : > { %3377 = vst [vmem:[%s5345_s18 + $0x68] sm:$0xff] %v3345_v28 }
 0x3cc   : > { %v3235_v29 = vpop.f32.mrf.mxu2 }
 0x3cd   : > { %v3286_v30 = vmul.f32 %v5330_v34, %v3235_v29 }
 0x3cf   : > { %v3322_v4 = vadd.f32 %v5335_v35, %v3286_v30 }
 0x3d1   : > { %v3354_v16 = vmax.f32 %v3322_v4, 0.0 }
 0x3d3   : > { %3386 = vst [vmem:[%s5345_s18 + $0xb0] sm:$0xff] %v3354_v16 }
 0x3d4   : > { %v3237_v12 = vpop.f32.mrf.mxu2  ;;  %v3255_v33 = vpop.f32.mrf.mxu3 }
 0x3d5   : > { %v3287_v9 = vmul.f32 %v5330_v34, %v3237_v12  ;;  %v3294_v38 = vmul.f32 %v5330_v34, %v3255_v33 }
 0x3d7   : > { %v3323_v40 = vadd.f32 %v5335_v35, %v3287_v9  ;;  %v3330_v44 = vadd.f32 %v5335_v35, %v3294_v38 }
 0x3d9   : > { %v3355_v37 = vmax.f32 %v3323_v40, 0.0  ;;  %v3362_v41 = vmax.f32 %v3330_v44, 0.0 }
 0x3db   : > { %3387 = vst [vmem:[%s5345_s18 + $0xb8] sm:$0xff] %v3355_v37 }
 0x3dc   : > { %3394 = vst [vmem:[%s5345_s18 + $0xf0] sm:$0xff] %v3362_v41  ;;  %v3257_v42 = vpop.f32.mrf.mxu3 }
 0x3dd   : > { %v3295_v31 = vmul.f32 %v5330_v34, %v3257_v42 }
 0x3de   : > { %v3195_v46 = vpop.f32.mrf.mxu0 }
 0x3df   : > { %v3331_v45 = vadd.f32 %v5335_v35, %v3295_v31  ;;  %v3270_v47 = vmul.f32 %v5330_v34, %v3195_v46 }
 0x3e1   : > { %v3363_v50 = vmax.f32 %v3331_v45, 0.0  ;;  %v3306_v52 = vadd.f32 %v5335_v35, %v3270_v47 }
 0x3e3   : > { %3395 = vst [vmem:[%s5345_s18 + $0xf8] sm:$0xff] %v3363_v50  ;;  %v3338_v49 = vmax.f32 %v3306_v52, 0.0 }
 0x3e5   : > { %3370 = vst [vmem:[%s5345_s18 + $0x30] sm:$0xff] %v3338_v49 }
 0x3e6   : > { %v3197_v55 = vpop.f32.mrf.mxu0  ;;  %v3215_v39 = vpop.f32.mrf.mxu1 }
 0x3e7   : > { %v3271_v22 = vmul.f32 %v5330_v34, %v3197_v55  ;;  %v3278_v54 = vmul.f32 %v5330_v34, %v3215_v39 }
 0x3e9   : > { %v3307_v43 = vadd.f32 %v5335_v35, %v3271_v22  ;;  %v3314_v53 = vadd.f32 %v5335_v35, %v3278_v54 }
 0x3eb   : > { %v3339_v58 = vmax.f32 %v3307_v43, 0.0  ;;  %v3346_v59 = vmax.f32 %v3314_v53, 0.0 }
 0x3ed   : > { %3371 = vst [vmem:[%s5345_s18 + $0x38] sm:$0xff] %v3339_v58 }
 0x3ee   : > { %3378 = vst [vmem:[%s5345_s18 + $0x70] sm:$0xff] %v3346_v59  ;;  %v3217_v61 = vpop.f32.mrf.mxu1 }
 0x3ef   : > { %v3279_v48 = vmul.f32 %v5330_v34, %v3217_v61 }
 0x3f1   : > { %v3315_v56 = vadd.f32 %v5335_v35, %v3279_v48 }
 0x3f3   : > { %v3347_v63 = vmax.f32 %v3315_v56, 0.0 }
 0x3f5   : > { %3379 = vst [vmem:[%s5345_s18 + $0x78] sm:$0xff] %v3347_v63 }
 0x3f6 PF: > { %s14_s15 = sadd.s32 1, %s3700_s15  }
 0x3f7   : > { %p11_p4 = scmp.ge.s32.totalorder %s14_s15, 4  }
 0x3f9   :  { %13 = sbr.rel (!%p11_p4) target bundleno = 1 (0x1), region = 68 }

</bundles_post_ra>
